<compile_context>
chip_gen: v7x
topology: tpu7x:2x2x1
jax: 0.10.0
libtpu: 0.0.40
codegen_flags: <defaults>
</compile_context>

<pallas_src>
import math

import jax
import jax.numpy as jnp
from jax import lax
from jax.experimental import pallas as pl
from jax.experimental.pallas import tpu as pltpu

# ----------------------------- model dimensions (small) -----------------------------
VOCAB = 20          # char vocab size
TGT_VOCAB = 16      # tgt_location_vocab size
EMB = 32            # emb_dim
HIDDEN = 32         # hidden_dim
SRC_LEN = 6
TGT_LEN = 5
BATCH = 4


def _full_spec(shape):
    """Full-array block (single grid step)."""
    n = len(shape)
    return pl.BlockSpec(tuple(shape), lambda i, n=n: (0,) * n)


_COMPILER_PARAMS = pltpu.CompilerParams(
    dimension_semantics=("arbitrary",),
    vmem_limit_bytes=16 * 1024 * 1024,
)


# ===================================== in-kernel helper =====================================

def _lstm_gate_update(gates, c):
    """gates: (R, 4H) pre-activations, c: (R, H).

    One full-width sigmoid + one full-width tanh over the whole (R, 4H) block (2 EUP pushes)
    instead of four 32-lane sliced activations; works for both the sublane-stacked encoder
    rows (R = 2B) and the decoder rows (R = B).
    """
    H = HIDDEN
    sig = jax.nn.sigmoid(gates)
    th = jnp.tanh(gates)
    i_g = sig[:, 0 * H:1 * H]
    f_g = sig[:, 1 * H:2 * H]
    g_g = th[:, 2 * H:3 * H]
    o_g = sig[:, 3 * H:4 * H]
    c_new = f_g * c + i_g * g_g
    h_new = o_g * jnp.tanh(c_new)
    return h_new, c_new


# ============================ parameter packing (hoisted, ONE slab) ============================

def pack_params(params, phase="location_decoder"):
    """One-time transposes/splits/bias-sums + packing of ALL weights into a single lane-aligned
    (rows, 256) f32 slab. Each entry is padded to 256 lanes and a multiple of 8 sublanes so every
    in-kernel static slice is tile aligned; the whole model arrives in one DMA instead of ~30."""
    H, E, B = HIDDEN, EMB, BATCH
    enc0, enc1 = params["enc_lstm"]
    dec = params["loc_dec"] if phase == "location_decoder" else params["split_dec"]

    def bias_block(layer):
        bf = (layer["b_ih_f"] + layer["b_hh_f"]).reshape(1, 4 * H)
        bb = (layer["b_ih_b"] + layer["b_hh_b"]).reshape(1, 4 * H)
        return jnp.concatenate([jnp.tile(bf, (B, 1)), jnp.tile(bb, (B, 1))], axis=0)   # (2B, 4H)

    # fwd/bwd selection mask for the sublane-stacked recurrence: row r keeps the first H input
    # lanes if r < B (forward rows) and the last H lanes otherwise (backward rows).
    sel = jnp.concatenate(
        [jnp.concatenate([jnp.ones((B, H)), jnp.zeros((B, H))], axis=1),
         jnp.concatenate([jnp.zeros((B, H)), jnp.ones((B, H))], axis=1)], axis=0)       # (2B, 2H)

    w0d = dec["w_ih_l0"].T      # (E+H, 4H); rows [:E] pair with emb, rows [E:] with weighted

    entries = [
        # --- encoder: 256-wide fused input projections, sublane-stacked recurrent weights ---
        ("w_ih0", jnp.concatenate([enc0["w_ih_f"].T, enc0["w_ih_b"].T], axis=1)),   # (E, 8H)
        ("w_ih1", jnp.concatenate([enc1["w_ih_f"].T, enc1["w_ih_b"].T], axis=1)),   # (2H, 8H)
        ("w_hh0", jnp.concatenate([enc0["w_hh_f"].T, enc0["w_hh_b"].T], axis=0)),   # (2H, 4H)
        ("w_hh1", jnp.concatenate([enc1["w_hh_f"].T, enc1["w_hh_b"].T], axis=0)),   # (2H, 4H)
        ("b0", bias_block(enc0)),                                                    # (2B, 4H)
        ("b1", bias_block(enc1)),                                                    # (2B, 4H)
        ("fc1_w", params["fc1_w"].T),                                                # (2H, H)
        ("fc2_w", params["fc2_w"].T),                                                # (2H, H)
        ("fc1_b", params["fc1_b"].reshape(1, H)),
        ("fc2_b", params["fc2_b"].reshape(1, H)),
        ("w_kv", jnp.concatenate([params["attn"]["wk"].T,
                                  params["attn"]["wv"].T], axis=1)),                 # (H, 2H)
        ("w_q", params["attn"]["wq"].T),                                             # (E, H)
        ("enc_emb", params["enc_embed"]),                                            # (V, E)
        ("dec_emb", dec["embed"]),                                                   # (Vt, E)
        ("sel", sel),                                                                # (2B, 2H)
        # --- decoder ---
        ("d_wih0_e", w0d[:E]),                                                       # (E, 4H)
        ("d_wih0_w", w0d[E:]),                                                       # (H, 4H)
        ("d_whh0", dec["w_hh_l0"].T),                                                # (H, 4H)
        ("d_b0", (dec["b_ih_l0"] + dec["b_hh_l0"]).reshape(1, 4 * H)),
        ("d_w1", jnp.concatenate([dec["w_ih_l1"].T, dec["w_hh_l1"].T], axis=0)),     # (2H, 4H)
        ("d_b1", (dec["b_ih_l1"] + dec["b_hh_l1"]).reshape(1, 4 * H)),
        ("d_fco_w", dec["fc_out_w"].T),                                              # (H, Vt)
        ("d_fco_b", dec["fc_out_b"].reshape(1, -1)),
    ]

    lanes = 8 * H   # 256
    offsets, shapes, blocks = {}, {}, []
    row = 0
    for name, arr in entries:
        arr = jnp.asarray(arr, jnp.float32)
        nr, nc = arr.shape
        pad_r = (-nr) % 8
        blocks.append(jnp.pad(arr, ((0, pad_r), (0, lanes - nc))))
        offsets[name] = row
        shapes[name] = (nr, nc)
        row += nr + pad_r
    slab = jnp.concatenate(blocks, axis=0)
    return {"slab": slab, "offsets": offsets, "shapes": shapes}


# ===================================== fused forward kernel =====================================

def make_seq2seq_forward(packed):
    offsets = dict(packed["offsets"])
    shapes = dict(packed["shapes"])
    slab_shape = tuple(packed["slab"].shape)
    B, H, S = BATCH, HIDDEN, SRC_LEN
    Td = TGT_LEN - 1
    H4 = 4 * H
    dec_vocab = shapes["dec_emb"][0]
    out_vocab = shapes["d_fco_w"][1]
    inv_sqrt_h = 1.0 / math.sqrt(H)

    def kernel(idx_ref, mask_ref, slab_ref, out_ref, out0_scr, enc1_scr, kv_scr):
        f32 = jnp.float32

        def w(name):
            r = offsets[name]
            nr, nc = shapes[name]
            return slab_ref[r:r + nr, 0:nc]

        # ---- embeddings: in-kernel gather via one-hot matmuls (no XLA gather, no 2nd launch)
        idx = idx_ref[...]                                                    # (S*B + Td*B, 1)
        src_idx = idx[0:S * B, :]
        tgt_idx = idx[S * B:(S + Td) * B, :]
        oh_src = (src_idx == lax.broadcasted_iota(jnp.int32, (S * B, VOCAB), 1)).astype(f32)
        enc_embs = jnp.dot(oh_src, w("enc_emb"), preferred_element_type=f32)  # (S*B, E)
        oh_tgt = (tgt_idx == lax.broadcasted_iota(jnp.int32, (Td * B, dec_vocab), 1)).astype(f32)
        dec_embs = jnp.dot(oh_tgt, w("dec_emb"), preferred_element_type=f32)  # (Td*B, E)

        sel = w("sel")                                                        # (2B, 2H)

        def stacked_bidir_layer(gx_all, whh, bias, out_scr):
            """One bidirectional LSTM layer; fwd/bwd stacked on the sublane axis (2B rows).
            gx_all: (S*B, 8H) hoisted input projections (cols 0:4H fwd, 4H:8H bwd)."""
            h = jnp.zeros((2 * B, H), f32)
            c = jnp.zeros((2 * B, H), f32)
            for t in range(S):
                rf = B * t              # time processed by the forward rows at this step
                rb = B * (S - 1 - t)    # time processed by the backward rows
                gx = jnp.concatenate([gx_all[rf:rf + B, 0:H4],
                                      gx_all[rb:rb + B, H4:2 * H4]], axis=0)   # (2B, 4H)
                hh = jnp.concatenate([h, h], axis=1) * sel                     # (2B, 2H)
                gates = gx + jnp.dot(hh, whh, preferred_element_type=f32) + bias
                h, c = _lstm_gate_update(gates, c)
                out_scr[rf:rf + B, 0:H] = h[0:B]            # fwd output at time t
                out_scr[rb:rb + B, H:2 * H] = h[B:2 * B]    # bwd output at time S-1-t
            return h, c    # rows 0:B = fwd final (t=S-1), rows B:2B = bwd final (t=0)

        # ---- encoder: hoisted (batched-over-time) 256-wide input projections + recurrences
        gx0 = jnp.dot(enc_embs, w("w_ih0"), preferred_element_type=f32)        # (S*B, 8H)
        h0_fin, c0_fin = stacked_bidir_layer(gx0, w("w_hh0"), w("b0"), out0_scr)
        # TODO(synk): inter-layer dropout (p=0.3) is training-only; eval identity here.
        gx1 = jnp.dot(out0_scr[...], w("w_ih1"), preferred_element_type=f32)   # (S*B, 8H)
        h1_fin, c1_fin = stacked_bidir_layer(gx1, w("w_hh1"), w("b1"), enc1_scr)

        # ---- fc1/fc2 on stacked final states -> decoder initial (h, c): one matmul each
        state_h = jnp.concatenate(
            [jnp.concatenate([h0_fin[0:B], h0_fin[B:2 * B]], axis=1),
             jnp.concatenate([h1_fin[0:B], h1_fin[B:2 * B]], axis=1)], axis=0)  # (2B, 2H)
        state_c = jnp.concatenate(
            [jnp.concatenate([c0_fin[0:B], c0_fin[B:2 * B]], axis=1),
             jnp.concatenate([c1_fin[0:B], c1_fin[B:2 * B]], axis=1)], axis=0)
        hn = jnp.dot(state_h, w("fc1_w"), preferred_element_type=f32) + w("fc1_b")
        cn = jnp.dot(state_c, w("fc2_w"), preferred_element_type=f32) + w("fc2_b")

        # ---- enc_outs = fwd + bwd halves; fused K/V projection hoisted to ONE matmul
        enc_flat = enc1_scr[:, 0:H] + enc1_scr[:, H:2 * H]                      # (S*B, H)
        kv = jnp.dot(enc_flat, w("w_kv"), preferred_element_type=f32)           # (S*B, 2H)
        for s in range(S):
            kv_scr[s] = kv[B * s:B * s + B, :]
        kv3 = kv_scr[...]                                                       # (S, B, 2H)
        K3 = kv3[:, :, 0:H]
        V3 = kv3[:, :, H:2 * H]
        is_masked = mask_ref[...] > 0.5                                         # (S, B)

        # ---- decoder attention + layer-0 input projection, hoisted over ALL Td steps
        # (the query is the teacher-forced embedding, not the hidden state, so the whole
        #  attention block is independent of the decoder recurrence).
        q_all = jnp.dot(dec_embs, w("w_q"), preferred_element_type=f32)         # (Td*B, H)
        weighted_steps = []
        for t in range(Td):
            q_t = q_all[B * t:B * t + B, :]                                     # (B, H)
            e = jnp.sum(K3 * q_t[None, :, :], axis=-1) * inv_sqrt_h             # (S, B)
            # softmax over the *batch* axis — faithful to the reference masked-bahdanau path;
            # large finite fill instead of -inf avoids NaN if a whole row were masked.
            e = jnp.where(is_masked, -1e30, e)
            m = jnp.max(e, axis=-1, keepdims=True)
            p = jnp.exp(e - m)
            wgt = p * pl.reciprocal(jnp.sum(p, axis=-1, keepdims=True), approx=True)
            weighted_steps.append(jnp.sum(wgt[:, :, None] * V3, axis=0))        # (B, H)
        weighted_all = jnp.concatenate(weighted_steps, axis=0)                  # (Td*B, H)

        gx0d = (jnp.dot(dec_embs, w("d_wih0_e"), preferred_element_type=f32)
                + jnp.dot(weighted_all, w("d_wih0_w"), preferred_element_type=f32))  # (Td*B, 4H)

        # ---- decoder recurrence: only the state-dependent matmuls remain per step
        d_whh0 = w("d_whh0")
        d_b0 = w("d_b0")
        d_w1 = w("d_w1")
        d_b1 = w("d_b1")
        h0 = hn[0:B]
        h1 = hn[B:2 * B]
        c0 = cn[0:B]
        c1 = cn[B:2 * B]
        h1_steps = []
        for t in range(Td):
            g0 = (gx0d[B * t:B * t + B, :] + d_b0
                  + jnp.dot(h0, d_whh0, preferred_element_type=f32))
            h0, c0 = _lstm_gate_update(g0, c0)
            g1 = (jnp.dot(jnp.concatenate([h0, h1], axis=1), d_w1,
                          preferred_element_type=f32) + d_b1)
            h1, c1 = _lstm_gate_update(g1, c1)
            h1_steps.append(h1)
        h1_all = jnp.concatenate(h1_steps, axis=0)                              # (Td*B, H)

        # ---- fc_out + log_softmax hoisted over all steps; single store
        logits = jnp.dot(h1_all, w("d_fco_w"), preferred_element_type=f32) + w("d_fco_b")
        mx = jnp.max(logits, axis=-1, keepdims=True)
        lse = jnp.log(jnp.sum(jnp.exp(logits - mx), axis=-1, keepdims=True)) + mx
        out_ref[...] = logits - lse

    call = pl.pallas_call(
        kernel,
        grid=(1,),
        in_specs=[_full_spec(((S + Td) * B, 1)),       # token indices (src | tgt[:-1])
                  _full_spec((S, B)),                  # padding mask (1.0 == masked)
                  _full_spec(slab_shape)],             # packed weight slab
        out_specs=_full_spec((Td * B, out_vocab)),
        out_shape=jax.ShapeDtypeStruct((Td * B, out_vocab), jnp.float32),
        scratch_shapes=[pltpu.VMEM((S * B, 2 * H), jnp.float32),   # layer-0 outputs [fwd|bwd]
                        pltpu.VMEM((S * B, 2 * H), jnp.float32),   # layer-1 outputs [fwd|bwd]
                        pltpu.VMEM((S, B, 2 * H), jnp.float32)],   # [K|V]
        compiler_params=_COMPILER_PARAMS,
    )

    def forward(slab, src, tgt, mask_f):
        idx = jnp.concatenate([src.reshape(-1), tgt[:-1].reshape(-1)]).astype(jnp.int32)
        out = call(idx.reshape(-1, 1), mask_f.astype(jnp.float32), slab)
        return out.reshape(Td, B, out_vocab)

    return forward


# ===================================== pure-JAX reference =====================================

def _lstm_seq_ref(x, w_ih, w_hh, b_ih, b_hh, h0, c0):
    b = b_ih + b_hh

    def step(carry, x_t):
        h, c = carry
        g = x_t @ w_ih.T + h @ w_hh.T + b
        i, f, gg, o = jnp.split(g, 4, axis=-1)
        c = jax.nn.sigmoid(f) * c + jax.nn.sigmoid(i) * jnp.tanh(gg)
        h = jax.nn.sigmoid(o) * jnp.tanh(c)
        return (h, c), h

    (h, c), outs = lax.scan(step, (h0, c0), x)
    return outs, h, c


def seq2seq_reference(params, src, tgt, mask_f, phase="location_decoder"):
    H = HIDDEN
    embs = jnp.take(params["enc_embed"], src, axis=0)
    S, B, _ = embs.shape
    zeros = jnp.zeros((B, H), jnp.float32)
    l0, l1 = params["enc_lstm"]

    def bidir(x, lw):
        f_outs, f_h, f_c = _lstm_seq_ref(x, lw["w_ih_f"], lw["w_hh_f"],
                                         lw["b_ih_f"], lw["b_hh_f"], zeros, zeros)
        b_outs, b_h, b_c = _lstm_seq_ref(x[::-1], lw["w_ih_b"], lw["w_hh_b"],
                                         lw["b_ih_b"], lw["b_hh_b"], zeros, zeros)
        b_outs = b_outs[::-1]
        return jnp.concatenate([f_outs, b_outs], -1), (f_h, f_c), (b_h, b_c), f_outs, b_outs

    out0, (h0f, c0f), (h0b, c0b), _, _ = bidir(embs, l0)
    _, (h1f, c1f), (h1b, c1b), f1, b1 = bidir(out0, l1)
    enc_outs = f1 + b1

    h_stack = jnp.stack([jnp.concatenate([h0f, h0b], 1), jnp.concatenate([h1f, h1b], 1)], 0)
    c_stack = jnp.stack([jnp.concatenate([c0f, c0b], 1), jnp.concatenate([c1f, c1b], 1)], 0)
    h_n = h_stack @ params["fc1_w"].T + params["fc1_b"]
    c_n = c_stack @ params["fc2_w"].T + params["fc2_b"]

    attn_p = params["attn"]
    K = enc_outs @ attn_p["wk"].T
    V = enc_outs @ attn_p["wv"].T

    dec = params["loc_dec"] if phase == "location_decoder" else params["split_dec"]
    hidden = (h_n, c_n)
    inp = tgt[0]
    outputs = []
    for i in range(1, tgt.shape[0]):
        emb = jnp.take(dec["embed"], inp, axis=0)
        q = emb @ attn_p["wq"].T
        e = jnp.sum(K * q[None], -1) / math.sqrt(H)
        e = jnp.where(mask_f > 0.5, -jnp.inf, e)
        w = jax.nn.softmax(e, axis=-1)   # softmax over the batch axis, as in the reference code
        weighted = jnp.sum(w[:, :, None] * V, axis=0)
        x = jnp.concatenate([emb, weighted], -1)[None]
        h, c = hidden
        o0, h0, c0 = _lstm_seq_ref(x, dec["w_ih_l0"], dec["w_hh_l0"],
                                   dec["b_ih_l0"], dec["b_hh_l0"], h[0], c[0])
        o1, h1, c1 = _lstm_seq_ref(o0, dec["w_ih_l1"], dec["w_hh_l1"],
                                   dec["b_ih_l1"], dec["b_hh_l1"], h[1], c[1])
        hidden = (jnp.stack([h0, h1]), jnp.stack([c0, c1]))
        logits = o1[0] @ dec["fc_out_w"].T + dec["fc_out_b"]
        outputs.append(jax.nn.log_softmax(logits, -1))
        inp = tgt[i]                      # teacher forcing
    return jnp.stack(outputs)


# ===================================== parameter init =====================================

def init_params(key):
    keys = iter(jax.random.split(key, 64))

    def nrm(shape, scale=0.1):
        return (scale * jax.random.normal(next(keys), shape)).astype(jnp.float32)

    H, E = HIDDEN, EMB

    def enc_lstm_layer(din):
        return {"w_ih_f": nrm((4 * H, din)), "w_hh_f": nrm((4 * H, H)),
                "b_ih_f": nrm((4 * H,)), "b_hh_f": nrm((4 * H,)),
                "w_ih_b": nrm((4 * H, din)), "w_hh_b": nrm((4 * H, H)),
                "b_ih_b": nrm((4 * H,)), "b_hh_b": nrm((4 * H,))}

    def decoder(tgt_vocab):
        return {"embed": nrm((tgt_vocab, E)),
                "w_ih_l0": nrm((4 * H, H + E)), "w_hh_l0": nrm((4 * H, H)),
                "b_ih_l0": nrm((4 * H,)), "b_hh_l0": nrm((4 * H,)),
                "w_ih_l1": nrm((4 * H, H)), "w_hh_l1": nrm((4 * H, H)),
                "b_ih_l1": nrm((4 * H,)), "b_hh_l1": nrm((4 * H,)),
                "fc_out_w": nrm((tgt_vocab, H)), "fc_out_b": nrm((tgt_vocab,))}

    return {
        "enc_embed": nrm((VOCAB, E)),
        "enc_lstm": [enc_lstm_layer(E), enc_lstm_layer(2 * H)],
        "fc1_w": nrm((H, 2 * H)), "fc1_b": nrm((H,)),
        "fc2_w": nrm((H, 2 * H)), "fc2_b": nrm((H,)),
        "attn": {"wq": nrm((H, E)), "wk": nrm((H, H)), "wv": nrm((H, H))},
        "loc_dec": decoder(TGT_VOCAB),
        "split_dec": decoder(VOCAB),
    }


# ===================================== main =====================================

if __name__ == "__main__":
    root = jax.random.PRNGKey(0)
    k_params, k_src, k_tgt = jax.random.split(root, 3)

    params = init_params(k_params)
    packed = pack_params(params, phase="location_decoder")
    forward = jax.jit(make_seq2seq_forward(packed))

    src = jax.random.randint(k_src, (SRC_LEN, BATCH), 0, VOCAB, dtype=jnp.int32)
    tgt = jax.random.randint(k_tgt, (TGT_LEN, BATCH), 0, TGT_VOCAB, dtype=jnp.int32)
    # Boolean padding mask (float, 1.0 = masked); one padded position to exercise the mask
    # path (no source position is fully masked, so -inf vs -1e30 fills are identical).
    mask_f = jnp.zeros((SRC_LEN, BATCH), jnp.float32).at[SRC_LEN - 1, BATCH - 1].set(1.0)

    out = jax.block_until_ready(forward(packed["slab"], src, tgt, mask_f))
    assert out.shape == (TGT_LEN - 1, BATCH, TGT_VOCAB), out.shape

    with jax.default_matmul_precision("highest"):
        ref = jax.block_until_ready(seq2seq_reference(params, src, tgt, mask_f))

    max_err = float(jnp.max(jnp.abs(out - ref)))
    assert jnp.allclose(out, ref, rtol=2e-3, atol=2e-3), max_err

    print("KERNEL_OK")
</pallas_src>

<mosaic_0001>
module attributes {stable_mosaic.version = 11 : i64} {
  func.func @kernel(%arg0: i32, %arg1: memref<40x1xi32, #tpu.memory_space<vmem>>, %arg2: memref<6x4xf32, #tpu.memory_space<vmem>>, %arg3: memref<712x256xf32, #tpu.memory_space<vmem>>, %arg4: memref<16x16xf32, #tpu.memory_space<vmem>>, %arg5: memref<24x64xf32, #tpu.memory_space<vmem>>, %arg6: memref<24x64xf32, #tpu.memory_space<vmem>>, %arg7: memref<6x4x64xf32, #tpu.memory_space<vmem>>) attributes {dimension_semantics = [#tpu.dimension_semantics<arbitrary>], iteration_bounds = array<i64: 1>, scalar_prefetch = 0 : i64, scratch_operands = 3 : i64, tpu.core_type = #tpu.core_type<tc>, window_params = [{pipeline_mode = #tpu.pipeline_mode<synchronous>, transform_indices = @transform_0, window_bounds = array<i64: 40, 1>}, {pipeline_mode = #tpu.pipeline_mode<synchronous>, transform_indices = @transform_1, window_bounds = array<i64: 6, 4>}, {pipeline_mode = #tpu.pipeline_mode<synchronous>, transform_indices = @transform_2, window_bounds = array<i64: 712, 256>}, {pipeline_mode = #tpu.pipeline_mode<synchronous>, transform_indices = @transform_3, window_bounds = array<i64: 16, 16>}]} {
    %c0 = arith.constant 0 : index
    %c0_0 = arith.constant 0 : index
    %0 = vector.load %arg1[%c0, %c0_0] : memref<40x1xi32, #tpu.memory_space<vmem>>, vector<40x1xi32>
    %1 = vector.extract_strided_slice %0 {offsets = [0, 0], sizes = [24, 1], strides = [1, 1]} : vector<40x1xi32> to vector<24x1xi32>
    %2 = vector.extract_strided_slice %0 {offsets = [24, 0], sizes = [16, 1], strides = [1, 1]} : vector<40x1xi32> to vector<16x1xi32>
    %3 = tpu.iota {dimensions = array<i32: 1>} : vector<24x20xi32>
    %4 = vector.broadcast %1 : vector<24x1xi32> to vector<24x20xi32>
    %5 = arith.cmpi eq, %4, %3 : vector<24x20xi32>
    %6 = arith.extui %5 : vector<24x20xi1> to vector<24x20xi32>
    %7 = arith.sitofp %6 : vector<24x20xi32> to vector<24x20xf32>
    %c448 = arith.constant 448 : index
    %c0_1 = arith.constant 0 : index
    %8 = vector.load %arg3[%c448, %c0_1] : memref<712x256xf32, #tpu.memory_space<vmem>>, vector<20x32xf32>
    %cst = arith.constant dense<0.000000e+00> : vector<24x32xf32>
    %9 = tpu.matmul %7, %8, %cst {dimension_numbers = #tpu.dot_dimension_numbers<[1], [0], [0], [1], [0, 0, 1, 1], [], []>} : vector<24x20xf32>, vector<20x32xf32>, vector<24x32xf32> -> vector<24x32xf32>
    %10 = tpu.iota {dimensions = array<i32: 1>} : vector<16x16xi32>
    %11 = vector.broadcast %2 : vector<16x1xi32> to vector<16x16xi32>
    %12 = arith.cmpi eq, %11, %10 : vector<16x16xi32>
    %13 = arith.extui %12 : vector<16x16xi1> to vector<16x16xi32>
    %14 = arith.sitofp %13 : vector<16x16xi32> to vector<16x16xf32>
    %c472 = arith.constant 472 : index
    %c0_2 = arith.constant 0 : index
    %15 = vector.load %arg3[%c472, %c0_2] : memref<712x256xf32, #tpu.memory_space<vmem>>, vector<16x32xf32>
    %cst_3 = arith.constant dense<0.000000e+00> : vector<16x32xf32>
    %16 = tpu.matmul %14, %15, %cst_3 {dimension_numbers = #tpu.dot_dimension_numbers<[1], [0], [0], [1], [0, 0, 1, 1], [], []>} : vector<16x16xf32>, vector<16x32xf32>, vector<16x32xf32> -> vector<16x32xf32>
    %c488 = arith.constant 488 : index
    %c0_4 = arith.constant 0 : index
    %17 = vector.load %arg3[%c488, %c0_4] : memref<712x256xf32, #tpu.memory_space<vmem>>, vector<8x64xf32>
    %c0_5 = arith.constant 0 : index
    %c0_6 = arith.constant 0 : index
    %18 = vector.load %arg3[%c0_5, %c0_6] : memref<712x256xf32, #tpu.memory_space<vmem>>, vector<32x256xf32>
    %cst_7 = arith.constant dense<0.000000e+00> : vector<24x256xf32>
    %19 = tpu.matmul %9, %18, %cst_7 {dimension_numbers = #tpu.dot_dimension_numbers<[1], [0], [0], [1], [0, 0, 1, 1], [], []>} : vector<24x32xf32>, vector<32x256xf32>, vector<24x256xf32> -> vector<24x256xf32>
    %c96 = arith.constant 96 : index
    %c0_8 = arith.constant 0 : index
    %20 = vector.load %arg3[%c96, %c0_8] : memref<712x256xf32, #tpu.memory_space<vmem>>, vector<64x128xf32>
    %c224 = arith.constant 224 : index
    %c0_9 = arith.constant 0 : index
    %21 = vector.load %arg3[%c224, %c0_9] : memref<712x256xf32, #tpu.memory_space<vmem>>, vector<8x128xf32>
    %cst_10 = arith.constant 0.000000e+00 : f32
    %22 = vector.broadcast %cst_10 : f32 to vector<8x32xf32>
    %cst_11 = arith.constant 0.000000e+00 : f32
    %23 = vector.broadcast %cst_11 : f32 to vector<8x32xf32>
    %24 = vector.extract_strided_slice %19 {offsets = [0, 0], sizes = [4, 128], strides = [1, 1]} : vector<24x256xf32> to vector<4x128xf32>
    %25 = vector.extract_strided_slice %19 {offsets = [20, 128], sizes = [4, 128], strides = [1, 1]} : vector<24x256xf32> to vector<4x128xf32>
    %26 = tpu.concatenate %24, %25 in 0 : vector<4x128xf32>, vector<4x128xf32> -> vector<8x128xf32>
    %27 = tpu.concatenate %22, %22 in 1 : vector<8x32xf32>, vector<8x32xf32> -> vector<8x64xf32>
    %28 = arith.mulf %27, %17 : vector<8x64xf32>
    %cst_12 = arith.constant dense<0.000000e+00> : vector<8x128xf32>
    %29 = tpu.matmul %28, %20, %cst_12 {dimension_numbers = #tpu.dot_dimension_numbers<[1], [0], [0], [1], [0, 0, 1, 1], [], []>} : vector<8x64xf32>, vector<64x128xf32>, vector<8x128xf32> -> vector<8x128xf32>
    %30 = arith.addf %26, %29 : vector<8x128xf32>
    %31 = arith.addf %30, %21 : vector<8x128xf32>
    %32 = arith.negf %31 : vector<8x128xf32>
    %33 = math.exp %32 : vector<8x128xf32>
    %cst_13 = arith.constant 1.000000e+00 : f32
    %34 = vector.broadcast %cst_13 : f32 to vector<8x128xf32>
    %35 = arith.addf %34, %33 : vector<8x128xf32>
    %36 = arith.divf %34, %35 : vector<8x128xf32>
    %37 = math.tanh %31 : vector<8x128xf32>
    %38 = vector.extract_strided_slice %36 {offsets = [0, 0], sizes = [8, 32], strides = [1, 1]} : vector<8x128xf32> to vector<8x32xf32>
    %39 = vector.extract_strided_slice %36 {offsets = [0, 32], sizes = [8, 32], strides = [1, 1]} : vector<8x128xf32> to vector<8x32xf32>
    %40 = vector.extract_strided_slice %37 {offsets = [0, 64], sizes = [8, 32], strides = [1, 1]} : vector<8x128xf32> to vector<8x32xf32>
    %41 = vector.extract_strided_slice %36 {offsets = [0, 96], sizes = [8, 32], strides = [1, 1]} : vector<8x128xf32> to vector<8x32xf32>
    %42 = arith.mulf %39, %23 : vector<8x32xf32>
    %43 = arith.mulf %38, %40 : vector<8x32xf32>
    %44 = arith.addf %42, %43 : vector<8x32xf32>
    %45 = math.tanh %44 : vector<8x32xf32>
    %46 = arith.mulf %41, %45 : vector<8x32xf32>
    %47 = vector.extract_strided_slice %46 {offsets = [0, 0], sizes = [4, 32], strides = [1, 1]} : vector<8x32xf32> to vector<4x32xf32>
    %c0_14 = arith.constant 0 : index
    %c0_15 = arith.constant 0 : index
    %48 = vector.load %arg5[%c0_14, %c0_15] : memref<24x64xf32, #tpu.memory_space<vmem>>, vector<4x32xf32>
    tpu.vector_store %arg5[%c0_14, %c0_15], %47 {strides = array<i32>} : memref<24x64xf32, #tpu.memory_space<vmem>>, vector<4x32xf32>,
    %49 = vector.extract_strided_slice %46 {offsets = [4, 0], sizes = [4, 32], strides = [1, 1]} : vector<8x32xf32> to vector<4x32xf32>
    %c20 = arith.constant 20 : index
    %c32 = arith.constant 32 : index
    %50 = vector.load %arg5[%c20, %c32] : memref<24x64xf32, #tpu.memory_space<vmem>>, vector<4x32xf32>
    tpu.vector_store %arg5[%c20, %c32], %49 {strides = array<i32>} : memref<24x64xf32, #tpu.memory_space<vmem>>, vector<4x32xf32>,
    %51 = vector.extract_strided_slice %19 {offsets = [4, 0], sizes = [4, 128], strides = [1, 1]} : vector<24x256xf32> to vector<4x128xf32>
    %52 = vector.extract_strided_slice %19 {offsets = [16, 128], sizes = [4, 128], strides = [1, 1]} : vector<24x256xf32> to vector<4x128xf32>
    %53 = tpu.concatenate %51, %52 in 0 : vector<4x128xf32>, vector<4x128xf32> -> vector<8x128xf32>
    %54 = tpu.concatenate %46, %46 in 1 : vector<8x32xf32>, vector<8x32xf32> -> vector<8x64xf32>
    %55 = arith.mulf %54, %17 : vector<8x64xf32>
    %cst_16 = arith.constant dense<0.000000e+00> : vector<8x128xf32>
    %56 = tpu.matmul %55, %20, %cst_16 {dimension_numbers = #tpu.dot_dimension_numbers<[1], [0], [0], [1], [0, 0, 1, 1], [], []>} : vector<8x64xf32>, vector<64x128xf32>, vector<8x128xf32> -> vector<8x128xf32>
    %57 = arith.addf %53, %56 : vector<8x128xf32>
    %58 = arith.addf %57, %21 : vector<8x128xf32>
    %59 = arith.negf %58 : vector<8x128xf32>
    %60 = math.exp %59 : vector<8x128xf32>
    %cst_17 = arith.constant 1.000000e+00 : f32
    %61 = vector.broadcast %cst_17 : f32 to vector<8x128xf32>
    %62 = arith.addf %61, %60 : vector<8x128xf32>
    %63 = arith.divf %61, %62 : vector<8x128xf32>
    %64 = math.tanh %58 : vector<8x128xf32>
    %65 = vector.extract_strided_slice %63 {offsets = [0, 0], sizes = [8, 32], strides = [1, 1]} : vector<8x128xf32> to vector<8x32xf32>
    %66 = vector.extract_strided_slice %63 {offsets = [0, 32], sizes = [8, 32], strides = [1, 1]} : vector<8x128xf32> to vector<8x32xf32>
    %67 = vector.extract_strided_slice %64 {offsets = [0, 64], sizes = [8, 32], strides = [1, 1]} : vector<8x128xf32> to vector<8x32xf32>
    %68 = vector.extract_strided_slice %63 {offsets = [0, 96], sizes = [8, 32], strides = [1, 1]} : vector<8x128xf32> to vector<8x32xf32>
    %69 = arith.mulf %66, %44 : vector<8x32xf32>
    %70 = arith.mulf %65, %67 : vector<8x32xf32>
    %71 = arith.addf %69, %70 : vector<8x32xf32>
    %72 = math.tanh %71 : vector<8x32xf32>
    %73 = arith.mulf %68, %72 : vector<8x32xf32>
    %74 = vector.extract_strided_slice %73 {offsets = [0, 0], sizes = [4, 32], strides = [1, 1]} : vector<8x32xf32> to vector<4x32xf32>
    %c4 = arith.constant 4 : index
    %c0_18 = arith.constant 0 : index
    %75 = vector.load %arg5[%c4, %c0_18] : memref<24x64xf32, #tpu.memory_space<vmem>>, vector<4x32xf32>
    tpu.vector_store %arg5[%c4, %c0_18], %74 {strides = array<i32>} : memref<24x64xf32, #tpu.memory_space<vmem>>, vector<4x32xf32>,
    %76 = vector.extract_strided_slice %73 {offsets = [4, 0], sizes = [4, 32], strides = [1, 1]} : vector<8x32xf32> to vector<4x32xf32>
    %c16 = arith.constant 16 : index
    %c32_19 = arith.constant 32 : index
    %77 = vector.load %arg5[%c16, %c32_19] : memref<24x64xf32, #tpu.memory_space<vmem>>, vector<4x32xf32>
    tpu.vector_store %arg5[%c16, %c32_19], %76 {strides = array<i32>} : memref<24x64xf32, #tpu.memory_space<vmem>>, vector<4x32xf32>,
    %78 = vector.extract_strided_slice %19 {offsets = [8, 0], sizes = [4, 128], strides = [1, 1]} : vector<24x256xf32> to vector<4x128xf32>
    %79 = vector.extract_strided_slice %19 {offsets = [12, 128], sizes = [4, 128], strides = [1, 1]} : vector<24x256xf32> to vector<4x128xf32>
    %80 = tpu.concatenate %78, %79 in 0 : vector<4x128xf32>, vector<4x128xf32> -> vector<8x128xf32>
    %81 = tpu.concatenate %73, %73 in 1 : vector<8x32xf32>, vector<8x32xf32> -> vector<8x64xf32>
    %82 = arith.mulf %81, %17 : vector<8x64xf32>
    %cst_20 = arith.constant dense<0.000000e+00> : vector<8x128xf32>
    %83 = tpu.matmul %82, %20, %cst_20 {dimension_numbers = #tpu.dot_dimension_numbers<[1], [0], [0], [1], [0, 0, 1, 1], [], []>} : vector<8x64xf32>, vector<64x128xf32>, vector<8x128xf32> -> vector<8x128xf32>
    %84 = arith.addf %80, %83 : vector<8x128xf32>
    %85 = arith.addf %84, %21 : vector<8x128xf32>
    %86 = arith.negf %85 : vector<8x128xf32>
    %87 = math.exp %86 : vector<8x128xf32>
    %cst_21 = arith.constant 1.000000e+00 : f32
    %88 = vector.broadcast %cst_21 : f32 to vector<8x128xf32>
    %89 = arith.addf %88, %87 : vector<8x128xf32>
    %90 = arith.divf %88, %89 : vector<8x128xf32>
    %91 = math.tanh %85 : vector<8x128xf32>
    %92 = vector.extract_strided_slice %90 {offsets = [0, 0], sizes = [8, 32], strides = [1, 1]} : vector<8x128xf32> to vector<8x32xf32>
    %93 = vector.extract_strided_slice %90 {offsets = [0, 32], sizes = [8, 32], strides = [1, 1]} : vector<8x128xf32> to vector<8x32xf32>
    %94 = vector.extract_strided_slice %91 {offsets = [0, 64], sizes = [8, 32], strides = [1, 1]} : vector<8x128xf32> to vector<8x32xf32>
    %95 = vector.extract_strided_slice %90 {offsets = [0, 96], sizes = [8, 32], strides = [1, 1]} : vector<8x128xf32> to vector<8x32xf32>
    %96 = arith.mulf %93, %71 : vector<8x32xf32>
    %97 = arith.mulf %92, %94 : vector<8x32xf32>
    %98 = arith.addf %96, %97 : vector<8x32xf32>
    %99 = math.tanh %98 : vector<8x32xf32>
    %100 = arith.mulf %95, %99 : vector<8x32xf32>
    %101 = vector.extract_strided_slice %100 {offsets = [0, 0], sizes = [4, 32], strides = [1, 1]} : vector<8x32xf32> to vector<4x32xf32>
    %c8 = arith.constant 8 : index
    %c0_22 = arith.constant 0 : index
    %102 = vector.load %arg5[%c8, %c0_22] : memref<24x64xf32, #tpu.memory_space<vmem>>, vector<4x32xf32>
    tpu.vector_store %arg5[%c8, %c0_22], %101 {strides = array<i32>} : memref<24x64xf32, #tpu.memory_space<vmem>>, vector<4x32xf32>,
    %103 = vector.extract_strided_slice %100 {offsets = [4, 0], sizes = [4, 32], strides = [1, 1]} : vector<8x32xf32> to vector<4x32xf32>
    %c12 = arith.constant 12 : index
    %c32_23 = arith.constant 32 : index
    %104 = vector.load %arg5[%c12, %c32_23] : memref<24x64xf32, #tpu.memory_space<vmem>>, vector<4x32xf32>
    tpu.vector_store %arg5[%c12, %c32_23], %103 {strides = array<i32>} : memref<24x64xf32, #tpu.memory_space<vmem>>, vector<4x32xf32>,
    %105 = vector.extract_strided_slice %19 {offsets = [12, 0], sizes = [4, 128], strides = [1, 1]} : vector<24x256xf32> to vector<4x128xf32>
    %106 = vector.extract_strided_slice %19 {offsets = [8, 128], sizes = [4, 128], strides = [1, 1]} : vector<24x256xf32> to vector<4x128xf32>
    %107 = tpu.concatenate %105, %106 in 0 : vector<4x128xf32>, vector<4x128xf32> -> vector<8x128xf32>
    %108 = tpu.concatenate %100, %100 in 1 : vector<8x32xf32>, vector<8x32xf32> -> vector<8x64xf32>
    %109 = arith.mulf %108, %17 : vector<8x64xf32>
    %cst_24 = arith.constant dense<0.000000e+00> : vector<8x128xf32>
    %110 = tpu.matmul %109, %20, %cst_24 {dimension_numbers = #tpu.dot_dimension_numbers<[1], [0], [0], [1], [0, 0, 1, 1], [], []>} : vector<8x64xf32>, vector<64x128xf32>, vector<8x128xf32> -> vector<8x128xf32>
    %111 = arith.addf %107, %110 : vector<8x128xf32>
    %112 = arith.addf %111, %21 : vector<8x128xf32>
    %113 = arith.negf %112 : vector<8x128xf32>
    %114 = math.exp %113 : vector<8x128xf32>
    %cst_25 = arith.constant 1.000000e+00 : f32
    %115 = vector.broadcast %cst_25 : f32 to vector<8x128xf32>
    %116 = arith.addf %115, %114 : vector<8x128xf32>
    %117 = arith.divf %115, %116 : vector<8x128xf32>
    %118 = math.tanh %112 : vector<8x128xf32>
    %119 = vector.extract_strided_slice %117 {offsets = [0, 0], sizes = [8, 32], strides = [1, 1]} : vector<8x128xf32> to vector<8x32xf32>
    %120 = vector.extract_strided_slice %117 {offsets = [0, 32], sizes = [8, 32], strides = [1, 1]} : vector<8x128xf32> to vector<8x32xf32>
    %121 = vector.extract_strided_slice %118 {offsets = [0, 64], sizes = [8, 32], strides = [1, 1]} : vector<8x128xf32> to vector<8x32xf32>
    %122 = vector.extract_strided_slice %117 {offsets = [0, 96], sizes = [8, 32], strides = [1, 1]} : vector<8x128xf32> to vector<8x32xf32>
    %123 = arith.mulf %120, %98 : vector<8x32xf32>
    %124 = arith.mulf %119, %121 : vector<8x32xf32>
    %125 = arith.addf %123, %124 : vector<8x32xf32>
    %126 = math.tanh %125 : vector<8x32xf32>
    %127 = arith.mulf %122, %126 : vector<8x32xf32>
    %128 = vector.extract_strided_slice %127 {offsets = [0, 0], sizes = [4, 32], strides = [1, 1]} : vector<8x32xf32> to vector<4x32xf32>
    %c12_26 = arith.constant 12 : index
    %c0_27 = arith.constant 0 : index
    %129 = vector.load %arg5[%c12_26, %c0_27] : memref<24x64xf32, #tpu.memory_space<vmem>>, vector<4x32xf32>
    tpu.vector_store %arg5[%c12_26, %c0_27], %128 {strides = array<i32>} : memref<24x64xf32, #tpu.memory_space<vmem>>, vector<4x32xf32>,
    %130 = vector.extract_strided_slice %127 {offsets = [4, 0], sizes = [4, 32], strides = [1, 1]} : vector<8x32xf32> to vector<4x32xf32>
    %c8_28 = arith.constant 8 : index
    %c32_29 = arith.constant 32 : index
    %131 = vector.load %arg5[%c8_28, %c32_29] : memref<24x64xf32, #tpu.memory_space<vmem>>, vector<4x32xf32>
    tpu.vector_store %arg5[%c8_28, %c32_29], %130 {strides = array<i32>} : memref<24x64xf32, #tpu.memory_space<vmem>>, vector<4x32xf32>,
    %132 = vector.extract_strided_slice %19 {offsets = [16, 0], sizes = [4, 128], strides = [1, 1]} : vector<24x256xf32> to vector<4x128xf32>
    %133 = vector.extract_strided_slice %19 {offsets = [4, 128], sizes = [4, 128], strides = [1, 1]} : vector<24x256xf32> to vector<4x128xf32>
    %134 = tpu.concatenate %132, %133 in 0 : vector<4x128xf32>, vector<4x128xf32> -> vector<8x128xf32>
    %135 = tpu.concatenate %127, %127 in 1 : vector<8x32xf32>, vector<8x32xf32> -> vector<8x64xf32>
    %136 = arith.mulf %135, %17 : vector<8x64xf32>
    %cst_30 = arith.constant dense<0.000000e+00> : vector<8x128xf32>
    %137 = tpu.matmul %136, %20, %cst_30 {dimension_numbers = #tpu.dot_dimension_numbers<[1], [0], [0], [1], [0, 0, 1, 1], [], []>} : vector<8x64xf32>, vector<64x128xf32>, vector<8x128xf32> -> vector<8x128xf32>
    %138 = arith.addf %134, %137 : vector<8x128xf32>
    %139 = arith.addf %138, %21 : vector<8x128xf32>
    %140 = arith.negf %139 : vector<8x128xf32>
    %141 = math.exp %140 : vector<8x128xf32>
    %cst_31 = arith.constant 1.000000e+00 : f32
    %142 = vector.broadcast %cst_31 : f32 to vector<8x128xf32>
    %143 = arith.addf %142, %141 : vector<8x128xf32>
    %144 = arith.divf %142, %143 : vector<8x128xf32>
    %145 = math.tanh %139 : vector<8x128xf32>
    %146 = vector.extract_strided_slice %144 {offsets = [0, 0], sizes = [8, 32], strides = [1, 1]} : vector<8x128xf32> to vector<8x32xf32>
    %147 = vector.extract_strided_slice %144 {offsets = [0, 32], sizes = [8, 32], strides = [1, 1]} : vector<8x128xf32> to vector<8x32xf32>
    %148 = vector.extract_strided_slice %145 {offsets = [0, 64], sizes = [8, 32], strides = [1, 1]} : vector<8x128xf32> to vector<8x32xf32>
    %149 = vector.extract_strided_slice %144 {offsets = [0, 96], sizes = [8, 32], strides = [1, 1]} : vector<8x128xf32> to vector<8x32xf32>
    %150 = arith.mulf %147, %125 : vector<8x32xf32>
    %151 = arith.mulf %146, %148 : vector<8x32xf32>
    %152 = arith.addf %150, %151 : vector<8x32xf32>
    %153 = math.tanh %152 : vector<8x32xf32>
    %154 = arith.mulf %149, %153 : vector<8x32xf32>
    %155 = vector.extract_strided_slice %154 {offsets = [0, 0], sizes = [4, 32], strides = [1, 1]} : vector<8x32xf32> to vector<4x32xf32>
    %c16_32 = arith.constant 16 : index
    %c0_33 = arith.constant 0 : index
    %156 = vector.load %arg5[%c16_32, %c0_33] : memref<24x64xf32, #tpu.memory_space<vmem>>, vector<4x32xf32>
    tpu.vector_store %arg5[%c16_32, %c0_33], %155 {strides = array<i32>} : memref<24x64xf32, #tpu.memory_space<vmem>>, vector<4x32xf32>,
    %157 = vector.extract_strided_slice %154 {offsets = [4, 0], sizes = [4, 32], strides = [1, 1]} : vector<8x32xf32> to vector<4x32xf32>
    %c4_34 = arith.constant 4 : index
    %c32_35 = arith.constant 32 : index
    %158 = vector.load %arg5[%c4_34, %c32_35] : memref<24x64xf32, #tpu.memory_space<vmem>>, vector<4x32xf32>
    tpu.vector_store %arg5[%c4_34, %c32_35], %157 {strides = array<i32>} : memref<24x64xf32, #tpu.memory_space<vmem>>, vector<4x32xf32>,
    %159 = vector.extract_strided_slice %19 {offsets = [20, 0], sizes = [4, 128], strides = [1, 1]} : vector<24x256xf32> to vector<4x128xf32>
    %160 = vector.extract_strided_slice %19 {offsets = [0, 128], sizes = [4, 128], strides = [1, 1]} : vector<24x256xf32> to vector<4x128xf32>
    %161 = tpu.concatenate %159, %160 in 0 : vector<4x128xf32>, vector<4x128xf32> -> vector<8x128xf32>
    %162 = tpu.concatenate %154, %154 in 1 : vector<8x32xf32>, vector<8x32xf32> -> vector<8x64xf32>
    %163 = arith.mulf %162, %17 : vector<8x64xf32>
    %cst_36 = arith.constant dense<0.000000e+00> : vector<8x128xf32>
    %164 = tpu.matmul %163, %20, %cst_36 {dimension_numbers = #tpu.dot_dimension_numbers<[1], [0], [0], [1], [0, 0, 1, 1], [], []>} : vector<8x64xf32>, vector<64x128xf32>, vector<8x128xf32> -> vector<8x128xf32>
    %165 = arith.addf %161, %164 : vector<8x128xf32>
    %166 = arith.addf %165, %21 : vector<8x128xf32>
    %167 = arith.negf %166 : vector<8x128xf32>
    %168 = math.exp %167 : vector<8x128xf32>
    %cst_37 = arith.constant 1.000000e+00 : f32
    %169 = vector.broadcast %cst_37 : f32 to vector<8x128xf32>
    %170 = arith.addf %169, %168 : vector<8x128xf32>
    %171 = arith.divf %169, %170 : vector<8x128xf32>
    %172 = math.tanh %166 : vector<8x128xf32>
    %173 = vector.extract_strided_slice %171 {offsets = [0, 0], sizes = [8, 32], strides = [1, 1]} : vector<8x128xf32> to vector<8x32xf32>
    %174 = vector.extract_strided_slice %171 {offsets = [0, 32], sizes = [8, 32], strides = [1, 1]} : vector<8x128xf32> to vector<8x32xf32>
    %175 = vector.extract_strided_slice %172 {offsets = [0, 64], sizes = [8, 32], strides = [1, 1]} : vector<8x128xf32> to vector<8x32xf32>
    %176 = vector.extract_strided_slice %171 {offsets = [0, 96], sizes = [8, 32], strides = [1, 1]} : vector<8x128xf32> to vector<8x32xf32>
    %177 = arith.mulf %174, %152 : vector<8x32xf32>
    %178 = arith.mulf %173, %175 : vector<8x32xf32>
    %179 = arith.addf %177, %178 : vector<8x32xf32>
    %180 = math.tanh %179 : vector<8x32xf32>
    %181 = arith.mulf %176, %180 : vector<8x32xf32>
    %182 = vector.extract_strided_slice %181 {offsets = [0, 0], sizes = [4, 32], strides = [1, 1]} : vector<8x32xf32> to vector<4x32xf32>
    %c20_38 = arith.constant 20 : index
    %c0_39 = arith.constant 0 : index
    %183 = vector.load %arg5[%c20_38, %c0_39] : memref<24x64xf32, #tpu.memory_space<vmem>>, vector<4x32xf32>
    tpu.vector_store %arg5[%c20_38, %c0_39], %182 {strides = array<i32>} : memref<24x64xf32, #tpu.memory_space<vmem>>, vector<4x32xf32>,
    %184 = vector.extract_strided_slice %181 {offsets = [4, 0], sizes = [4, 32], strides = [1, 1]} : vector<8x32xf32> to vector<4x32xf32>
    %c0_40 = arith.constant 0 : index
    %c32_41 = arith.constant 32 : index
    %185 = vector.load %arg5[%c0_40, %c32_41] : memref<24x64xf32, #tpu.memory_space<vmem>>, vector<4x32xf32>
    tpu.vector_store %arg5[%c0_40, %c32_41], %184 {strides = array<i32>} : memref<24x64xf32, #tpu.memory_space<vmem>>, vector<4x32xf32>,
    %c0_42 = arith.constant 0 : index
    %c0_43 = arith.constant 0 : index
    %186 = vector.load %arg5[%c0_42, %c0_43] : memref<24x64xf32, #tpu.memory_space<vmem>>, vector<24x64xf32>
    %c32_44 = arith.constant 32 : index
    %c0_45 = arith.constant 0 : index
    %187 = vector.load %arg3[%c32_44, %c0_45] : memref<712x256xf32, #tpu.memory_space<vmem>>, vector<64x256xf32>
    %cst_46 = arith.constant dense<0.000000e+00> : vector<24x256xf32>
    %188 = tpu.matmul %186, %187, %cst_46 {dimension_numbers = #tpu.dot_dimension_numbers<[1], [0], [0], [1], [0, 0, 1, 1], [], []>} : vector<24x64xf32>, vector<64x256xf32>, vector<24x256xf32> -> vector<24x256xf32>
    %c160 = arith.constant 160 : index
    %c0_47 = arith.constant 0 : index
    %189 = vector.load %arg3[%c160, %c0_47] : memref<712x256xf32, #tpu.memory_space<vmem>>, vector<64x128xf32>
    %c232 = arith.constant 232 : index
    %c0_48 = arith.constant 0 : index
    %190 = vector.load %arg3[%c232, %c0_48] : memref<712x256xf32, #tpu.memory_space<vmem>>, vector<8x128xf32>
    %cst_49 = arith.constant 0.000000e+00 : f32
    %191 = vector.broadcast %cst_49 : f32 to vector<8x32xf32>
    %cst_50 = arith.constant 0.000000e+00 : f32
    %192 = vector.broadcast %cst_50 : f32 to vector<8x32xf32>
    %193 = vector.extract_strided_slice %188 {offsets = [0, 0], sizes = [4, 128], strides = [1, 1]} : vector<24x256xf32> to vector<4x128xf32>
    %194 = vector.extract_strided_slice %188 {offsets = [20, 128], sizes = [4, 128], strides = [1, 1]} : vector<24x256xf32> to vector<4x128xf32>
    %195 = tpu.concatenate %193, %194 in 0 : vector<4x128xf32>, vector<4x128xf32> -> vector<8x128xf32>
    %196 = tpu.concatenate %191, %191 in 1 : vector<8x32xf32>, vector<8x32xf32> -> vector<8x64xf32>
    %197 = arith.mulf %196, %17 : vector<8x64xf32>
    %cst_51 = arith.constant dense<0.000000e+00> : vector<8x128xf32>
    %198 = tpu.matmul %197, %189, %cst_51 {dimension_numbers = #tpu.dot_dimension_numbers<[1], [0], [0], [1], [0, 0, 1, 1], [], []>} : vector<8x64xf32>, vector<64x128xf32>, vector<8x128xf32> -> vector<8x128xf32>
    %199 = arith.addf %195, %198 : vector<8x128xf32>
    %200 = arith.addf %199, %190 : vector<8x128xf32>
    %201 = arith.negf %200 : vector<8x128xf32>
    %202 = math.exp %201 : vector<8x128xf32>
    %cst_52 = arith.constant 1.000000e+00 : f32
    %203 = vector.broadcast %cst_52 : f32 to vector<8x128xf32>
    %204 = arith.addf %203, %202 : vector<8x128xf32>
    %205 = arith.divf %203, %204 : vector<8x128xf32>
    %206 = math.tanh %200 : vector<8x128xf32>
    %207 = vector.extract_strided_slice %205 {offsets = [0, 0], sizes = [8, 32], strides = [1, 1]} : vector<8x128xf32> to vector<8x32xf32>
    %208 = vector.extract_strided_slice %205 {offsets = [0, 32], sizes = [8, 32], strides = [1, 1]} : vector<8x128xf32> to vector<8x32xf32>
    %209 = vector.extract_strided_slice %206 {offsets = [0, 64], sizes = [8, 32], strides = [1, 1]} : vector<8x128xf32> to vector<8x32xf32>
    %210 = vector.extract_strided_slice %205 {offsets = [0, 96], sizes = [8, 32], strides = [1, 1]} : vector<8x128xf32> to vector<8x32xf32>
    %211 = arith.mulf %208, %192 : vector<8x32xf32>
    %212 = arith.mulf %207, %209 : vector<8x32xf32>
    %213 = arith.addf %211, %212 : vector<8x32xf32>
    %214 = math.tanh %213 : vector<8x32xf32>
    %215 = arith.mulf %210, %214 : vector<8x32xf32>
    %216 = vector.extract_strided_slice %215 {offsets = [0, 0], sizes = [4, 32], strides = [1, 1]} : vector<8x32xf32> to vector<4x32xf32>
    %c0_53 = arith.constant 0 : index
    %c0_54 = arith.constant 0 : index
    %217 = vector.load %arg6[%c0_53, %c0_54] : memref<24x64xf32, #tpu.memory_space<vmem>>, vector<4x32xf32>
    tpu.vector_store %arg6[%c0_53, %c0_54], %216 {strides = array<i32>} : memref<24x64xf32, #tpu.memory_space<vmem>>, vector<4x32xf32>,
    %218 = vector.extract_strided_slice %215 {offsets = [4, 0], sizes = [4, 32], strides = [1, 1]} : vector<8x32xf32> to vector<4x32xf32>
    %c20_55 = arith.constant 20 : index
    %c32_56 = arith.constant 32 : index
    %219 = vector.load %arg6[%c20_55, %c32_56] : memref<24x64xf32, #tpu.memory_space<vmem>>, vector<4x32xf32>
    tpu.vector_store %arg6[%c20_55, %c32_56], %218 {strides = array<i32>} : memref<24x64xf32, #tpu.memory_space<vmem>>, vector<4x32xf32>,
    %220 = vector.extract_strided_slice %188 {offsets = [4, 0], sizes = [4, 128], strides = [1, 1]} : vector<24x256xf32> to vector<4x128xf32>
    %221 = vector.extract_strided_slice %188 {offsets = [16, 128], sizes = [4, 128], strides = [1, 1]} : vector<24x256xf32> to vector<4x128xf32>
    %222 = tpu.concatenate %220, %221 in 0 : vector<4x128xf32>, vector<4x128xf32> -> vector<8x128xf32>
    %223 = tpu.concatenate %215, %215 in 1 : vector<8x32xf32>, vector<8x32xf32> -> vector<8x64xf32>
    %224 = arith.mulf %223, %17 : vector<8x64xf32>
    %cst_57 = arith.constant dense<0.000000e+00> : vector<8x128xf32>
    %225 = tpu.matmul %224, %189, %cst_57 {dimension_numbers = #tpu.dot_dimension_numbers<[1], [0], [0], [1], [0, 0, 1, 1], [], []>} : vector<8x64xf32>, vector<64x128xf32>, vector<8x128xf32> -> vector<8x128xf32>
    %226 = arith.addf %222, %225 : vector<8x128xf32>
    %227 = arith.addf %226, %190 : vector<8x128xf32>
    %228 = arith.negf %227 : vector<8x128xf32>
    %229 = math.exp %228 : vector<8x128xf32>
    %cst_58 = arith.constant 1.000000e+00 : f32
    %230 = vector.broadcast %cst_58 : f32 to vector<8x128xf32>
    %231 = arith.addf %230, %229 : vector<8x128xf32>
    %232 = arith.divf %230, %231 : vector<8x128xf32>
    %233 = math.tanh %227 : vector<8x128xf32>
    %234 = vector.extract_strided_slice %232 {offsets = [0, 0], sizes = [8, 32], strides = [1, 1]} : vector<8x128xf32> to vector<8x32xf32>
    %235 = vector.extract_strided_slice %232 {offsets = [0, 32], sizes = [8, 32], strides = [1, 1]} : vector<8x128xf32> to vector<8x32xf32>
    %236 = vector.extract_strided_slice %233 {offsets = [0, 64], sizes = [8, 32], strides = [1, 1]} : vector<8x128xf32> to vector<8x32xf32>
    %237 = vector.extract_strided_slice %232 {offsets = [0, 96], sizes = [8, 32], strides = [1, 1]} : vector<8x128xf32> to vector<8x32xf32>
    %238 = arith.mulf %235, %213 : vector<8x32xf32>
    %239 = arith.mulf %234, %236 : vector<8x32xf32>
    %240 = arith.addf %238, %239 : vector<8x32xf32>
    %241 = math.tanh %240 : vector<8x32xf32>
    %242 = arith.mulf %237, %241 : vector<8x32xf32>
    %243 = vector.extract_strided_slice %242 {offsets = [0, 0], sizes = [4, 32], strides = [1, 1]} : vector<8x32xf32> to vector<4x32xf32>
    %c4_59 = arith.constant 4 : index
    %c0_60 = arith.constant 0 : index
    %244 = vector.load %arg6[%c4_59, %c0_60] : memref<24x64xf32, #tpu.memory_space<vmem>>, vector<4x32xf32>
    tpu.vector_store %arg6[%c4_59, %c0_60], %243 {strides = array<i32>} : memref<24x64xf32, #tpu.memory_space<vmem>>, vector<4x32xf32>,
    %245 = vector.extract_strided_slice %242 {offsets = [4, 0], sizes = [4, 32], strides = [1, 1]} : vector<8x32xf32> to vector<4x32xf32>
    %c16_61 = arith.constant 16 : index
    %c32_62 = arith.constant 32 : index
    %246 = vector.load %arg6[%c16_61, %c32_62] : memref<24x64xf32, #tpu.memory_space<vmem>>, vector<4x32xf32>
    tpu.vector_store %arg6[%c16_61, %c32_62], %245 {strides = array<i32>} : memref<24x64xf32, #tpu.memory_space<vmem>>, vector<4x32xf32>,
    %247 = vector.extract_strided_slice %188 {offsets = [8, 0], sizes = [4, 128], strides = [1, 1]} : vector<24x256xf32> to vector<4x128xf32>
    %248 = vector.extract_strided_slice %188 {offsets = [12, 128], sizes = [4, 128], strides = [1, 1]} : vector<24x256xf32> to vector<4x128xf32>
    %249 = tpu.concatenate %247, %248 in 0 : vector<4x128xf32>, vector<4x128xf32> -> vector<8x128xf32>
    %250 = tpu.concatenate %242, %242 in 1 : vector<8x32xf32>, vector<8x32xf32> -> vector<8x64xf32>
    %251 = arith.mulf %250, %17 : vector<8x64xf32>
    %cst_63 = arith.constant dense<0.000000e+00> : vector<8x128xf32>
    %252 = tpu.matmul %251, %189, %cst_63 {dimension_numbers = #tpu.dot_dimension_numbers<[1], [0], [0], [1], [0, 0, 1, 1], [], []>} : vector<8x64xf32>, vector<64x128xf32>, vector<8x128xf32> -> vector<8x128xf32>
    %253 = arith.addf %249, %252 : vector<8x128xf32>
    %254 = arith.addf %253, %190 : vector<8x128xf32>
    %255 = arith.negf %254 : vector<8x128xf32>
    %256 = math.exp %255 : vector<8x128xf32>
    %cst_64 = arith.constant 1.000000e+00 : f32
    %257 = vector.broadcast %cst_64 : f32 to vector<8x128xf32>
    %258 = arith.addf %257, %256 : vector<8x128xf32>
    %259 = arith.divf %257, %258 : vector<8x128xf32>
    %260 = math.tanh %254 : vector<8x128xf32>
    %261 = vector.extract_strided_slice %259 {offsets = [0, 0], sizes = [8, 32], strides = [1, 1]} : vector<8x128xf32> to vector<8x32xf32>
    %262 = vector.extract_strided_slice %259 {offsets = [0, 32], sizes = [8, 32], strides = [1, 1]} : vector<8x128xf32> to vector<8x32xf32>
    %263 = vector.extract_strided_slice %260 {offsets = [0, 64], sizes = [8, 32], strides = [1, 1]} : vector<8x128xf32> to vector<8x32xf32>
    %264 = vector.extract_strided_slice %259 {offsets = [0, 96], sizes = [8, 32], strides = [1, 1]} : vector<8x128xf32> to vector<8x32xf32>
    %265 = arith.mulf %262, %240 : vector<8x32xf32>
    %266 = arith.mulf %261, %263 : vector<8x32xf32>
    %267 = arith.addf %265, %266 : vector<8x32xf32>
    %268 = math.tanh %267 : vector<8x32xf32>
    %269 = arith.mulf %264, %268 : vector<8x32xf32>
    %270 = vector.extract_strided_slice %269 {offsets = [0, 0], sizes = [4, 32], strides = [1, 1]} : vector<8x32xf32> to vector<4x32xf32>
    %c8_65 = arith.constant 8 : index
    %c0_66 = arith.constant 0 : index
    %271 = vector.load %arg6[%c8_65, %c0_66] : memref<24x64xf32, #tpu.memory_space<vmem>>, vector<4x32xf32>
    tpu.vector_store %arg6[%c8_65, %c0_66], %270 {strides = array<i32>} : memref<24x64xf32, #tpu.memory_space<vmem>>, vector<4x32xf32>,
    %272 = vector.extract_strided_slice %269 {offsets = [4, 0], sizes = [4, 32], strides = [1, 1]} : vector<8x32xf32> to vector<4x32xf32>
    %c12_67 = arith.constant 12 : index
    %c32_68 = arith.constant 32 : index
    %273 = vector.load %arg6[%c12_67, %c32_68] : memref<24x64xf32, #tpu.memory_space<vmem>>, vector<4x32xf32>
    tpu.vector_store %arg6[%c12_67, %c32_68], %272 {strides = array<i32>} : memref<24x64xf32, #tpu.memory_space<vmem>>, vector<4x32xf32>,
    %274 = vector.extract_strided_slice %188 {offsets = [12, 0], sizes = [4, 128], strides = [1, 1]} : vector<24x256xf32> to vector<4x128xf32>
    %275 = vector.extract_strided_slice %188 {offsets = [8, 128], sizes = [4, 128], strides = [1, 1]} : vector<24x256xf32> to vector<4x128xf32>
    %276 = tpu.concatenate %274, %275 in 0 : vector<4x128xf32>, vector<4x128xf32> -> vector<8x128xf32>
    %277 = tpu.concatenate %269, %269 in 1 : vector<8x32xf32>, vector<8x32xf32> -> vector<8x64xf32>
    %278 = arith.mulf %277, %17 : vector<8x64xf32>
    %cst_69 = arith.constant dense<0.000000e+00> : vector<8x128xf32>
    %279 = tpu.matmul %278, %189, %cst_69 {dimension_numbers = #tpu.dot_dimension_numbers<[1], [0], [0], [1], [0, 0, 1, 1], [], []>} : vector<8x64xf32>, vector<64x128xf32>, vector<8x128xf32> -> vector<8x128xf32>
    %280 = arith.addf %276, %279 : vector<8x128xf32>
    %281 = arith.addf %280, %190 : vector<8x128xf32>
    %282 = arith.negf %281 : vector<8x128xf32>
    %283 = math.exp %282 : vector<8x128xf32>
    %cst_70 = arith.constant 1.000000e+00 : f32
    %284 = vector.broadcast %cst_70 : f32 to vector<8x128xf32>
    %285 = arith.addf %284, %283 : vector<8x128xf32>
    %286 = arith.divf %284, %285 : vector<8x128xf32>
    %287 = math.tanh %281 : vector<8x128xf32>
    %288 = vector.extract_strided_slice %286 {offsets = [0, 0], sizes = [8, 32], strides = [1, 1]} : vector<8x128xf32> to vector<8x32xf32>
    %289 = vector.extract_strided_slice %286 {offsets = [0, 32], sizes = [8, 32], strides = [1, 1]} : vector<8x128xf32> to vector<8x32xf32>
    %290 = vector.extract_strided_slice %287 {offsets = [0, 64], sizes = [8, 32], strides = [1, 1]} : vector<8x128xf32> to vector<8x32xf32>
    %291 = vector.extract_strided_slice %286 {offsets = [0, 96], sizes = [8, 32], strides = [1, 1]} : vector<8x128xf32> to vector<8x32xf32>
    %292 = arith.mulf %289, %267 : vector<8x32xf32>
    %293 = arith.mulf %288, %290 : vector<8x32xf32>
    %294 = arith.addf %292, %293 : vector<8x32xf32>
    %295 = math.tanh %294 : vector<8x32xf32>
    %296 = arith.mulf %291, %295 : vector<8x32xf32>
    %297 = vector.extract_strided_slice %296 {offsets = [0, 0], sizes = [4, 32], strides = [1, 1]} : vector<8x32xf32> to vector<4x32xf32>
    %c12_71 = arith.constant 12 : index
    %c0_72 = arith.constant 0 : index
    %298 = vector.load %arg6[%c12_71, %c0_72] : memref<24x64xf32, #tpu.memory_space<vmem>>, vector<4x32xf32>
    tpu.vector_store %arg6[%c12_71, %c0_72], %297 {strides = array<i32>} : memref<24x64xf32, #tpu.memory_space<vmem>>, vector<4x32xf32>,
    %299 = vector.extract_strided_slice %296 {offsets = [4, 0], sizes = [4, 32], strides = [1, 1]} : vector<8x32xf32> to vector<4x32xf32>
    %c8_73 = arith.constant 8 : index
    %c32_74 = arith.constant 32 : index
    %300 = vector.load %arg6[%c8_73, %c32_74] : memref<24x64xf32, #tpu.memory_space<vmem>>, vector<4x32xf32>
    tpu.vector_store %arg6[%c8_73, %c32_74], %299 {strides = array<i32>} : memref<24x64xf32, #tpu.memory_space<vmem>>, vector<4x32xf32>,
    %301 = vector.extract_strided_slice %188 {offsets = [16, 0], sizes = [4, 128], strides = [1, 1]} : vector<24x256xf32> to vector<4x128xf32>
    %302 = vector.extract_strided_slice %188 {offsets = [4, 128], sizes = [4, 128], strides = [1, 1]} : vector<24x256xf32> to vector<4x128xf32>
    %303 = tpu.concatenate %301, %302 in 0 : vector<4x128xf32>, vector<4x128xf32> -> vector<8x128xf32>
    %304 = tpu.concatenate %296, %296 in 1 : vector<8x32xf32>, vector<8x32xf32> -> vector<8x64xf32>
    %305 = arith.mulf %304, %17 : vector<8x64xf32>
    %cst_75 = arith.constant dense<0.000000e+00> : vector<8x128xf32>
    %306 = tpu.matmul %305, %189, %cst_75 {dimension_numbers = #tpu.dot_dimension_numbers<[1], [0], [0], [1], [0, 0, 1, 1], [], []>} : vector<8x64xf32>, vector<64x128xf32>, vector<8x128xf32> -> vector<8x128xf32>
    %307 = arith.addf %303, %306 : vector<8x128xf32>
    %308 = arith.addf %307, %190 : vector<8x128xf32>
    %309 = arith.negf %308 : vector<8x128xf32>
    %310 = math.exp %309 : vector<8x128xf32>
    %cst_76 = arith.constant 1.000000e+00 : f32
    %311 = vector.broadcast %cst_76 : f32 to vector<8x128xf32>
    %312 = arith.addf %311, %310 : vector<8x128xf32>
    %313 = arith.divf %311, %312 : vector<8x128xf32>
    %314 = math.tanh %308 : vector<8x128xf32>
    %315 = vector.extract_strided_slice %313 {offsets = [0, 0], sizes = [8, 32], strides = [1, 1]} : vector<8x128xf32> to vector<8x32xf32>
    %316 = vector.extract_strided_slice %313 {offsets = [0, 32], sizes = [8, 32], strides = [1, 1]} : vector<8x128xf32> to vector<8x32xf32>
    %317 = vector.extract_strided_slice %314 {offsets = [0, 64], sizes = [8, 32], strides = [1, 1]} : vector<8x128xf32> to vector<8x32xf32>
    %318 = vector.extract_strided_slice %313 {offsets = [0, 96], sizes = [8, 32], strides = [1, 1]} : vector<8x128xf32> to vector<8x32xf32>
    %319 = arith.mulf %316, %294 : vector<8x32xf32>
    %320 = arith.mulf %315, %317 : vector<8x32xf32>
    %321 = arith.addf %319, %320 : vector<8x32xf32>
    %322 = math.tanh %321 : vector<8x32xf32>
    %323 = arith.mulf %318, %322 : vector<8x32xf32>
    %324 = vector.extract_strided_slice %323 {offsets = [0, 0], sizes = [4, 32], strides = [1, 1]} : vector<8x32xf32> to vector<4x32xf32>
    %c16_77 = arith.constant 16 : index
    %c0_78 = arith.constant 0 : index
    %325 = vector.load %arg6[%c16_77, %c0_78] : memref<24x64xf32, #tpu.memory_space<vmem>>, vector<4x32xf32>
    tpu.vector_store %arg6[%c16_77, %c0_78], %324 {strides = array<i32>} : memref<24x64xf32, #tpu.memory_space<vmem>>, vector<4x32xf32>,
    %326 = vector.extract_strided_slice %323 {offsets = [4, 0], sizes = [4, 32], strides = [1, 1]} : vector<8x32xf32> to vector<4x32xf32>
    %c4_79 = arith.constant 4 : index
    %c32_80 = arith.constant 32 : index
    %327 = vector.load %arg6[%c4_79, %c32_80] : memref<24x64xf32, #tpu.memory_space<vmem>>, vector<4x32xf32>
    tpu.vector_store %arg6[%c4_79, %c32_80], %326 {strides = array<i32>} : memref<24x64xf32, #tpu.memory_space<vmem>>, vector<4x32xf32>,
    %328 = vector.extract_strided_slice %188 {offsets = [20, 0], sizes = [4, 128], strides = [1, 1]} : vector<24x256xf32> to vector<4x128xf32>
    %329 = vector.extract_strided_slice %188 {offsets = [0, 128], sizes = [4, 128], strides = [1, 1]} : vector<24x256xf32> to vector<4x128xf32>
    %330 = tpu.concatenate %328, %329 in 0 : vector<4x128xf32>, vector<4x128xf32> -> vector<8x128xf32>
    %331 = tpu.concatenate %323, %323 in 1 : vector<8x32xf32>, vector<8x32xf32> -> vector<8x64xf32>
    %332 = arith.mulf %331, %17 : vector<8x64xf32>
    %cst_81 = arith.constant dense<0.000000e+00> : vector<8x128xf32>
    %333 = tpu.matmul %332, %189, %cst_81 {dimension_numbers = #tpu.dot_dimension_numbers<[1], [0], [0], [1], [0, 0, 1, 1], [], []>} : vector<8x64xf32>, vector<64x128xf32>, vector<8x128xf32> -> vector<8x128xf32>
    %334 = arith.addf %330, %333 : vector<8x128xf32>
    %335 = arith.addf %334, %190 : vector<8x128xf32>
    %336 = arith.negf %335 : vector<8x128xf32>
    %337 = math.exp %336 : vector<8x128xf32>
    %cst_82 = arith.constant 1.000000e+00 : f32
    %338 = vector.broadcast %cst_82 : f32 to vector<8x128xf32>
    %339 = arith.addf %338, %337 : vector<8x128xf32>
    %340 = arith.divf %338, %339 : vector<8x128xf32>
    %341 = math.tanh %335 : vector<8x128xf32>
    %342 = vector.extract_strided_slice %340 {offsets = [0, 0], sizes = [8, 32], strides = [1, 1]} : vector<8x128xf32> to vector<8x32xf32>
    %343 = vector.extract_strided_slice %340 {offsets = [0, 32], sizes = [8, 32], strides = [1, 1]} : vector<8x128xf32> to vector<8x32xf32>
    %344 = vector.extract_strided_slice %341 {offsets = [0, 64], sizes = [8, 32], strides = [1, 1]} : vector<8x128xf32> to vector<8x32xf32>
    %345 = vector.extract_strided_slice %340 {offsets = [0, 96], sizes = [8, 32], strides = [1, 1]} : vector<8x128xf32> to vector<8x32xf32>
    %346 = arith.mulf %343, %321 : vector<8x32xf32>
    %347 = arith.mulf %342, %344 : vector<8x32xf32>
    %348 = arith.addf %346, %347 : vector<8x32xf32>
    %349 = math.tanh %348 : vector<8x32xf32>
    %350 = arith.mulf %345, %349 : vector<8x32xf32>
    %351 = vector.extract_strided_slice %350 {offsets = [0, 0], sizes = [4, 32], strides = [1, 1]} : vector<8x32xf32> to vector<4x32xf32>
    %c20_83 = arith.constant 20 : index
    %c0_84 = arith.constant 0 : index
    %352 = vector.load %arg6[%c20_83, %c0_84] : memref<24x64xf32, #tpu.memory_space<vmem>>, vector<4x32xf32>
    tpu.vector_store %arg6[%c20_83, %c0_84], %351 {strides = array<i32>} : memref<24x64xf32, #tpu.memory_space<vmem>>, vector<4x32xf32>,
    %353 = vector.extract_strided_slice %350 {offsets = [4, 0], sizes = [4, 32], strides = [1, 1]} : vector<8x32xf32> to vector<4x32xf32>
    %c0_85 = arith.constant 0 : index
    %c32_86 = arith.constant 32 : index
    %354 = vector.load %arg6[%c0_85, %c32_86] : memref<24x64xf32, #tpu.memory_space<vmem>>, vector<4x32xf32>
    tpu.vector_store %arg6[%c0_85, %c32_86], %353 {strides = array<i32>} : memref<24x64xf32, #tpu.memory_space<vmem>>, vector<4x32xf32>,
    %355 = vector.extract_strided_slice %181 {offsets = [0, 0], sizes = [4, 32], strides = [1, 1]} : vector<8x32xf32> to vector<4x32xf32>
    %356 = vector.extract_strided_slice %181 {offsets = [4, 0], sizes = [4, 32], strides = [1, 1]} : vector<8x32xf32> to vector<4x32xf32>
    %357 = tpu.concatenate %355, %356 in 1 : vector<4x32xf32>, vector<4x32xf32> -> vector<4x64xf32>
    %358 = vector.extract_strided_slice %350 {offsets = [0, 0], sizes = [4, 32], strides = [1, 1]} : vector<8x32xf32> to vector<4x32xf32>
    %359 = vector.extract_strided_slice %350 {offsets = [4, 0], sizes = [4, 32], strides = [1, 1]} : vector<8x32xf32> to vector<4x32xf32>
    %360 = tpu.concatenate %358, %359 in 1 : vector<4x32xf32>, vector<4x32xf32> -> vector<4x64xf32>
    %361 = tpu.concatenate %357, %360 in 0 : vector<4x64xf32>, vector<4x64xf32> -> vector<8x64xf32>
    %362 = vector.extract_strided_slice %179 {offsets = [0, 0], sizes = [4, 32], strides = [1, 1]} : vector<8x32xf32> to vector<4x32xf32>
    %363 = vector.extract_strided_slice %179 {offsets = [4, 0], sizes = [4, 32], strides = [1, 1]} : vector<8x32xf32> to vector<4x32xf32>
    %364 = tpu.concatenate %362, %363 in 1 : vector<4x32xf32>, vector<4x32xf32> -> vector<4x64xf32>
    %365 = vector.extract_strided_slice %348 {offsets = [0, 0], sizes = [4, 32], strides = [1, 1]} : vector<8x32xf32> to vector<4x32xf32>
    %366 = vector.extract_strided_slice %348 {offsets = [4, 0], sizes = [4, 32], strides = [1, 1]} : vector<8x32xf32> to vector<4x32xf32>
    %367 = tpu.concatenate %365, %366 in 1 : vector<4x32xf32>, vector<4x32xf32> -> vector<4x64xf32>
    %368 = tpu.concatenate %364, %367 in 0 : vector<4x64xf32>, vector<4x64xf32> -> vector<8x64xf32>
    %c240 = arith.constant 240 : index
    %c0_87 = arith.constant 0 : index
    %369 = vector.load %arg3[%c240, %c0_87] : memref<712x256xf32, #tpu.memory_space<vmem>>, vector<64x32xf32>
    %cst_88 = arith.constant dense<0.000000e+00> : vector<8x32xf32>
    %370 = tpu.matmul %361, %369, %cst_88 {dimension_numbers = #tpu.dot_dimension_numbers<[1], [0], [0], [1], [0, 0, 1, 1], [], []>} : vector<8x64xf32>, vector<64x32xf32>, vector<8x32xf32> -> vector<8x32xf32>
    %c368 = arith.constant 368 : index
    %c0_89 = arith.constant 0 : index
    %371 = vector.load %arg3[%c368, %c0_89] : memref<712x256xf32, #tpu.memory_space<vmem>>, vector<1x32xf32>
    %372 = vector.broadcast %371 : vector<1x32xf32> to vector<8x32xf32>
    %373 = arith.addf %370, %372 : vector<8x32xf32>
    %c304 = arith.constant 304 : index
    %c0_90 = arith.constant 0 : index
    %374 = vector.load %arg3[%c304, %c0_90] : memref<712x256xf32, #tpu.memory_space<vmem>>, vector<64x32xf32>
    %cst_91 = arith.constant dense<0.000000e+00> : vector<8x32xf32>
    %375 = tpu.matmul %368, %374, %cst_91 {dimension_numbers = #tpu.dot_dimension_numbers<[1], [0], [0], [1], [0, 0, 1, 1], [], []>} : vector<8x64xf32>, vector<64x32xf32>, vector<8x32xf32> -> vector<8x32xf32>
    %c376 = arith.constant 376 : index
    %c0_92 = arith.constant 0 : index
    %376 = vector.load %arg3[%c376, %c0_92] : memref<712x256xf32, #tpu.memory_space<vmem>>, vector<1x32xf32>
    %377 = vector.broadcast %376 : vector<1x32xf32> to vector<8x32xf32>
    %378 = arith.addf %375, %377 : vector<8x32xf32>
    %c0_93 = arith.constant 0 : index
    %c0_94 = arith.constant 0 : index
    %379 = vector.load %arg6[%c0_93, %c0_94] : memref<24x64xf32, #tpu.memory_space<vmem>>, vector<24x32xf32>
    %c0_95 = arith.constant 0 : index
    %c32_96 = arith.constant 32 : index
    %380 = vector.load %arg6[%c0_95, %c32_96] : memref<24x64xf32, #tpu.memory_space<vmem>>, vector<24x32xf32>
    %381 = arith.addf %379, %380 : vector<24x32xf32>
    %c384 = arith.constant 384 : index
    %c0_97 = arith.constant 0 : index
    %382 = vector.load %arg3[%c384, %c0_97] : memref<712x256xf32, #tpu.memory_space<vmem>>, vector<32x64xf32>
    %cst_98 = arith.constant dense<0.000000e+00> : vector<24x64xf32>
    %383 = tpu.matmul %381, %382, %cst_98 {dimension_numbers = #tpu.dot_dimension_numbers<[1], [0], [0], [1], [0, 0, 1, 1], [], []>} : vector<24x32xf32>, vector<32x64xf32>, vector<24x64xf32> -> vector<24x64xf32>
    %384 = vector.extract_strided_slice %383 {offsets = [0, 0], sizes = [4, 64], strides = [1, 1]} : vector<24x64xf32> to vector<4x64xf32>
    %c0_99 = arith.constant 0 : index
    %c0_100 = arith.constant 0 : index
    %c0_101 = arith.constant 0 : index
    %385 = vector.load %arg7[%c0_99, %c0_100, %c0_101] : memref<6x4x64xf32, #tpu.memory_space<vmem>>, vector<1x4x64xf32>
    %386 = vector.shape_cast %385 : vector<1x4x64xf32> to vector<4x64xf32>
    %387 = vector.shape_cast %384 : vector<4x64xf32> to vector<1x4x64xf32>
    tpu.vector_store %arg7[%c0_99, %c0_100, %c0_101], %387 {strides = array<i32>} : memref<6x4x64xf32, #tpu.memory_space<vmem>>, vector<1x4x64xf32>,
    %388 = vector.extract_strided_slice %383 {offsets = [4, 0], sizes = [4, 64], strides = [1, 1]} : vector<24x64xf32> to vector<4x64xf32>
    %c1 = arith.constant 1 : index
    %c0_102 = arith.constant 0 : index
    %c0_103 = arith.constant 0 : index
    %389 = vector.load %arg7[%c1, %c0_102, %c0_103] : memref<6x4x64xf32, #tpu.memory_space<vmem>>, vector<1x4x64xf32>
    %390 = vector.shape_cast %389 : vector<1x4x64xf32> to vector<4x64xf32>
    %391 = vector.shape_cast %388 : vector<4x64xf32> to vector<1x4x64xf32>
    tpu.vector_store %arg7[%c1, %c0_102, %c0_103], %391 {strides = array<i32>} : memref<6x4x64xf32, #tpu.memory_space<vmem>>, vector<1x4x64xf32>,
    %392 = vector.extract_strided_slice %383 {offsets = [8, 0], sizes = [4, 64], strides = [1, 1]} : vector<24x64xf32> to vector<4x64xf32>
    %c2 = arith.constant 2 : index
    %c0_104 = arith.constant 0 : index
    %c0_105 = arith.constant 0 : index
    %393 = vector.load %arg7[%c2, %c0_104, %c0_105] : memref<6x4x64xf32, #tpu.memory_space<vmem>>, vector<1x4x64xf32>
    %394 = vector.shape_cast %393 : vector<1x4x64xf32> to vector<4x64xf32>
    %395 = vector.shape_cast %392 : vector<4x64xf32> to vector<1x4x64xf32>
    tpu.vector_store %arg7[%c2, %c0_104, %c0_105], %395 {strides = array<i32>} : memref<6x4x64xf32, #tpu.memory_space<vmem>>, vector<1x4x64xf32>,
    %396 = vector.extract_strided_slice %383 {offsets = [12, 0], sizes = [4, 64], strides = [1, 1]} : vector<24x64xf32> to vector<4x64xf32>
    %c3 = arith.constant 3 : index
    %c0_106 = arith.constant 0 : index
    %c0_107 = arith.constant 0 : index
    %397 = vector.load %arg7[%c3, %c0_106, %c0_107] : memref<6x4x64xf32, #tpu.memory_space<vmem>>, vector<1x4x64xf32>
    %398 = vector.shape_cast %397 : vector<1x4x64xf32> to vector<4x64xf32>
    %399 = vector.shape_cast %396 : vector<4x64xf32> to vector<1x4x64xf32>
    tpu.vector_store %arg7[%c3, %c0_106, %c0_107], %399 {strides = array<i32>} : memref<6x4x64xf32, #tpu.memory_space<vmem>>, vector<1x4x64xf32>,
    %400 = vector.extract_strided_slice %383 {offsets = [16, 0], sizes = [4, 64], strides = [1, 1]} : vector<24x64xf32> to vector<4x64xf32>
    %c4_108 = arith.constant 4 : index
    %c0_109 = arith.constant 0 : index
    %c0_110 = arith.constant 0 : index
    %401 = vector.load %arg7[%c4_108, %c0_109, %c0_110] : memref<6x4x64xf32, #tpu.memory_space<vmem>>, vector<1x4x64xf32>
    %402 = vector.shape_cast %401 : vector<1x4x64xf32> to vector<4x64xf32>
    %403 = vector.shape_cast %400 : vector<4x64xf32> to vector<1x4x64xf32>
    tpu.vector_store %arg7[%c4_108, %c0_109, %c0_110], %403 {strides = array<i32>} : memref<6x4x64xf32, #tpu.memory_space<vmem>>, vector<1x4x64xf32>,
    %404 = vector.extract_strided_slice %383 {offsets = [20, 0], sizes = [4, 64], strides = [1, 1]} : vector<24x64xf32> to vector<4x64xf32>
    %c5 = arith.constant 5 : index
    %c0_111 = arith.constant 0 : index
    %c0_112 = arith.constant 0 : index
    %405 = vector.load %arg7[%c5, %c0_111, %c0_112] : memref<6x4x64xf32, #tpu.memory_space<vmem>>, vector<1x4x64xf32>
    %406 = vector.shape_cast %405 : vector<1x4x64xf32> to vector<4x64xf32>
    %407 = vector.shape_cast %404 : vector<4x64xf32> to vector<1x4x64xf32>
    tpu.vector_store %arg7[%c5, %c0_111, %c0_112], %407 {strides = array<i32>} : memref<6x4x64xf32, #tpu.memory_space<vmem>>, vector<1x4x64xf32>,
    %c0_113 = arith.constant 0 : index
    %c0_114 = arith.constant 0 : index
    %c0_115 = arith.constant 0 : index
    %408 = vector.load %arg7[%c0_113, %c0_114, %c0_115] : memref<6x4x64xf32, #tpu.memory_space<vmem>>, vector<6x4x64xf32>
    %409 = vector.extract_strided_slice %408 {offsets = [0, 0, 0], sizes = [6, 4, 32], strides = [1, 1, 1]} : vector<6x4x64xf32> to vector<6x4x32xf32>
    %410 = vector.extract_strided_slice %408 {offsets = [0, 0, 32], sizes = [6, 4, 32], strides = [1, 1, 1]} : vector<6x4x64xf32> to vector<6x4x32xf32>
    %c0_116 = arith.constant 0 : index
    %c0_117 = arith.constant 0 : index
    %411 = vector.load %arg2[%c0_116, %c0_117] : memref<6x4xf32, #tpu.memory_space<vmem>>, vector<6x4xf32>
    %cst_118 = arith.constant 5.000000e-01 : f32
    %412 = vector.broadcast %cst_118 : f32 to vector<6x4xf32>
    %413 = arith.cmpf ogt, %411, %412 : vector<6x4xf32>
    %c416 = arith.constant 416 : index
    %c0_119 = arith.constant 0 : index
    %414 = vector.load %arg3[%c416, %c0_119] : memref<712x256xf32, #tpu.memory_space<vmem>>, vector<32x32xf32>
    %cst_120 = arith.constant dense<0.000000e+00> : vector<16x32xf32>
    %415 = tpu.matmul %16, %414, %cst_120 {dimension_numbers = #tpu.dot_dimension_numbers<[1], [0], [0], [1], [0, 0, 1, 1], [], []>} : vector<16x32xf32>, vector<32x32xf32>, vector<16x32xf32> -> vector<16x32xf32>
    %416 = vector.extract_strided_slice %415 {offsets = [0, 0], sizes = [4, 32], strides = [1, 1]} : vector<16x32xf32> to vector<4x32xf32>
    %417 = vector.shape_cast %416 : vector<4x32xf32> to vector<1x4x32xf32>
    %418 = vector.broadcast %417 : vector<1x4x32xf32> to vector<6x4x32xf32>
    %419 = arith.mulf %409, %418 : vector<6x4x32xf32>
    %cst_121 = arith.constant dense<0.000000e+00> : vector<6x4xf32>
    %420 = vector.multi_reduction <add>, %419, %cst_121 [2] : vector<6x4x32xf32> to vector<6x4xf32>
    %cst_122 = arith.constant 0.176776692 : f32
    %421 = vector.broadcast %cst_122 : f32 to vector<6x4xf32>
    %422 = arith.mulf %420, %421 : vector<6x4xf32>
    %cst_123 = arith.constant -1.000000e+30 : f32
    %423 = vector.broadcast %cst_123 : f32 to vector<6x4xf32>
    %424 = arith.select %413, %423, %422 : vector<6x4xi1>, vector<6x4xf32>
    %cst_124 = arith.constant dense<0xFF800000> : vector<6xf32>
    %425 = vector.multi_reduction <maximumf>, %424, %cst_124 [1] : vector<6x4xf32> to vector<6xf32>
    %426 = vector.shape_cast %425 : vector<6xf32> to vector<6x1xf32>
    %427 = vector.broadcast %426 : vector<6x1xf32> to vector<6x4xf32>
    %428 = arith.subf %424, %427 : vector<6x4xf32>
    %429 = math.exp %428 : vector<6x4xf32>
    %cst_125 = arith.constant dense<0.000000e+00> : vector<6xf32>
    %430 = vector.multi_reduction <add>, %429, %cst_125 [1] : vector<6x4xf32> to vector<6xf32>
    %431 = vector.shape_cast %430 : vector<6xf32> to vector<6x1xf32>
    %432 = tpu.reciprocal %431 {approx = true} : vector<6x1xf32> -> vector<6x1xf32>
    %433 = vector.broadcast %432 : vector<6x1xf32> to vector<6x4xf32>
    %434 = arith.mulf %429, %433 : vector<6x4xf32>
    %435 = vector.shape_cast %434 : vector<6x4xf32> to vector<6x4x1xf32>
    %436 = vector.broadcast %435 : vector<6x4x1xf32> to vector<6x4x32xf32>
    %437 = arith.mulf %436, %410 : vector<6x4x32xf32>
    %cst_126 = arith.constant dense<0.000000e+00> : vector<4x32xf32>
    %438 = vector.multi_reduction <add>, %437, %cst_126 [0] : vector<6x4x32xf32> to vector<4x32xf32>
    %439 = vector.extract_strided_slice %415 {offsets = [4, 0], sizes = [4, 32], strides = [1, 1]} : vector<16x32xf32> to vector<4x32xf32>
    %440 = vector.shape_cast %439 : vector<4x32xf32> to vector<1x4x32xf32>
    %441 = vector.broadcast %440 : vector<1x4x32xf32> to vector<6x4x32xf32>
    %442 = arith.mulf %409, %441 : vector<6x4x32xf32>
    %cst_127 = arith.constant dense<0.000000e+00> : vector<6x4xf32>
    %443 = vector.multi_reduction <add>, %442, %cst_127 [2] : vector<6x4x32xf32> to vector<6x4xf32>
    %cst_128 = arith.constant 0.176776692 : f32
    %444 = vector.broadcast %cst_128 : f32 to vector<6x4xf32>
    %445 = arith.mulf %443, %444 : vector<6x4xf32>
    %cst_129 = arith.constant -1.000000e+30 : f32
    %446 = vector.broadcast %cst_129 : f32 to vector<6x4xf32>
    %447 = arith.select %413, %446, %445 : vector<6x4xi1>, vector<6x4xf32>
    %cst_130 = arith.constant dense<0xFF800000> : vector<6xf32>
    %448 = vector.multi_reduction <maximumf>, %447, %cst_130 [1] : vector<6x4xf32> to vector<6xf32>
    %449 = vector.shape_cast %448 : vector<6xf32> to vector<6x1xf32>
    %450 = vector.broadcast %449 : vector<6x1xf32> to vector<6x4xf32>
    %451 = arith.subf %447, %450 : vector<6x4xf32>
    %452 = math.exp %451 : vector<6x4xf32>
    %cst_131 = arith.constant dense<0.000000e+00> : vector<6xf32>
    %453 = vector.multi_reduction <add>, %452, %cst_131 [1] : vector<6x4xf32> to vector<6xf32>
    %454 = vector.shape_cast %453 : vector<6xf32> to vector<6x1xf32>
    %455 = tpu.reciprocal %454 {approx = true} : vector<6x1xf32> -> vector<6x1xf32>
    %456 = vector.broadcast %455 : vector<6x1xf32> to vector<6x4xf32>
    %457 = arith.mulf %452, %456 : vector<6x4xf32>
    %458 = vector.shape_cast %457 : vector<6x4xf32> to vector<6x4x1xf32>
    %459 = vector.broadcast %458 : vector<6x4x1xf32> to vector<6x4x32xf32>
    %460 = arith.mulf %459, %410 : vector<6x4x32xf32>
    %cst_132 = arith.constant dense<0.000000e+00> : vector<4x32xf32>
    %461 = vector.multi_reduction <add>, %460, %cst_132 [0] : vector<6x4x32xf32> to vector<4x32xf32>
    %462 = vector.extract_strided_slice %415 {offsets = [8, 0], sizes = [4, 32], strides = [1, 1]} : vector<16x32xf32> to vector<4x32xf32>
    %463 = vector.shape_cast %462 : vector<4x32xf32> to vector<1x4x32xf32>
    %464 = vector.broadcast %463 : vector<1x4x32xf32> to vector<6x4x32xf32>
    %465 = arith.mulf %409, %464 : vector<6x4x32xf32>
    %cst_133 = arith.constant dense<0.000000e+00> : vector<6x4xf32>
    %466 = vector.multi_reduction <add>, %465, %cst_133 [2] : vector<6x4x32xf32> to vector<6x4xf32>
    %cst_134 = arith.constant 0.176776692 : f32
    %467 = vector.broadcast %cst_134 : f32 to vector<6x4xf32>
    %468 = arith.mulf %466, %467 : vector<6x4xf32>
    %cst_135 = arith.constant -1.000000e+30 : f32
    %469 = vector.broadcast %cst_135 : f32 to vector<6x4xf32>
    %470 = arith.select %413, %469, %468 : vector<6x4xi1>, vector<6x4xf32>
    %cst_136 = arith.constant dense<0xFF800000> : vector<6xf32>
    %471 = vector.multi_reduction <maximumf>, %470, %cst_136 [1] : vector<6x4xf32> to vector<6xf32>
    %472 = vector.shape_cast %471 : vector<6xf32> to vector<6x1xf32>
    %473 = vector.broadcast %472 : vector<6x1xf32> to vector<6x4xf32>
    %474 = arith.subf %470, %473 : vector<6x4xf32>
    %475 = math.exp %474 : vector<6x4xf32>
    %cst_137 = arith.constant dense<0.000000e+00> : vector<6xf32>
    %476 = vector.multi_reduction <add>, %475, %cst_137 [1] : vector<6x4xf32> to vector<6xf32>
    %477 = vector.shape_cast %476 : vector<6xf32> to vector<6x1xf32>
    %478 = tpu.reciprocal %477 {approx = true} : vector<6x1xf32> -> vector<6x1xf32>
    %479 = vector.broadcast %478 : vector<6x1xf32> to vector<6x4xf32>
    %480 = arith.mulf %475, %479 : vector<6x4xf32>
    %481 = vector.shape_cast %480 : vector<6x4xf32> to vector<6x4x1xf32>
    %482 = vector.broadcast %481 : vector<6x4x1xf32> to vector<6x4x32xf32>
    %483 = arith.mulf %482, %410 : vector<6x4x32xf32>
    %cst_138 = arith.constant dense<0.000000e+00> : vector<4x32xf32>
    %484 = vector.multi_reduction <add>, %483, %cst_138 [0] : vector<6x4x32xf32> to vector<4x32xf32>
    %485 = vector.extract_strided_slice %415 {offsets = [12, 0], sizes = [4, 32], strides = [1, 1]} : vector<16x32xf32> to vector<4x32xf32>
    %486 = vector.shape_cast %485 : vector<4x32xf32> to vector<1x4x32xf32>
    %487 = vector.broadcast %486 : vector<1x4x32xf32> to vector<6x4x32xf32>
    %488 = arith.mulf %409, %487 : vector<6x4x32xf32>
    %cst_139 = arith.constant dense<0.000000e+00> : vector<6x4xf32>
    %489 = vector.multi_reduction <add>, %488, %cst_139 [2] : vector<6x4x32xf32> to vector<6x4xf32>
    %cst_140 = arith.constant 0.176776692 : f32
    %490 = vector.broadcast %cst_140 : f32 to vector<6x4xf32>
    %491 = arith.mulf %489, %490 : vector<6x4xf32>
    %cst_141 = arith.constant -1.000000e+30 : f32
    %492 = vector.broadcast %cst_141 : f32 to vector<6x4xf32>
    %493 = arith.select %413, %492, %491 : vector<6x4xi1>, vector<6x4xf32>
    %cst_142 = arith.constant dense<0xFF800000> : vector<6xf32>
    %494 = vector.multi_reduction <maximumf>, %493, %cst_142 [1] : vector<6x4xf32> to vector<6xf32>
    %495 = vector.shape_cast %494 : vector<6xf32> to vector<6x1xf32>
    %496 = vector.broadcast %495 : vector<6x1xf32> to vector<6x4xf32>
    %497 = arith.subf %493, %496 : vector<6x4xf32>
    %498 = math.exp %497 : vector<6x4xf32>
    %cst_143 = arith.constant dense<0.000000e+00> : vector<6xf32>
    %499 = vector.multi_reduction <add>, %498, %cst_143 [1] : vector<6x4xf32> to vector<6xf32>
    %500 = vector.shape_cast %499 : vector<6xf32> to vector<6x1xf32>
    %501 = tpu.reciprocal %500 {approx = true} : vector<6x1xf32> -> vector<6x1xf32>
    %502 = vector.broadcast %501 : vector<6x1xf32> to vector<6x4xf32>
    %503 = arith.mulf %498, %502 : vector<6x4xf32>
    %504 = vector.shape_cast %503 : vector<6x4xf32> to vector<6x4x1xf32>
    %505 = vector.broadcast %504 : vector<6x4x1xf32> to vector<6x4x32xf32>
    %506 = arith.mulf %505, %410 : vector<6x4x32xf32>
    %cst_144 = arith.constant dense<0.000000e+00> : vector<4x32xf32>
    %507 = vector.multi_reduction <add>, %506, %cst_144 [0] : vector<6x4x32xf32> to vector<4x32xf32>
    %508 = tpu.concatenate %438, %461, %484, %507 in 0 : vector<4x32xf32>, vector<4x32xf32>, vector<4x32xf32>, vector<4x32xf32> -> vector<16x32xf32>
    %c496 = arith.constant 496 : index
    %c0_145 = arith.constant 0 : index
    %509 = vector.load %arg3[%c496, %c0_145] : memref<712x256xf32, #tpu.memory_space<vmem>>, vector<32x128xf32>
    %cst_146 = arith.constant dense<0.000000e+00> : vector<16x128xf32>
    %510 = tpu.matmul %16, %509, %cst_146 {dimension_numbers = #tpu.dot_dimension_numbers<[1], [0], [0], [1], [0, 0, 1, 1], [], []>} : vector<16x32xf32>, vector<32x128xf32>, vector<16x128xf32> -> vector<16x128xf32>
    %c528 = arith.constant 528 : index
    %c0_147 = arith.constant 0 : index
    %511 = vector.load %arg3[%c528, %c0_147] : memref<712x256xf32, #tpu.memory_space<vmem>>, vector<32x128xf32>
    %cst_148 = arith.constant dense<0.000000e+00> : vector<16x128xf32>
    %512 = tpu.matmul %508, %511, %cst_148 {dimension_numbers = #tpu.dot_dimension_numbers<[1], [0], [0], [1], [0, 0, 1, 1], [], []>} : vector<16x32xf32>, vector<32x128xf32>, vector<16x128xf32> -> vector<16x128xf32>
    %513 = arith.addf %510, %512 : vector<16x128xf32>
    %c560 = arith.constant 560 : index
    %c0_149 = arith.constant 0 : index
    %514 = vector.load %arg3[%c560, %c0_149] : memref<712x256xf32, #tpu.memory_space<vmem>>, vector<32x128xf32>
    %c592 = arith.constant 592 : index
    %c0_150 = arith.constant 0 : index
    %515 = vector.load %arg3[%c592, %c0_150] : memref<712x256xf32, #tpu.memory_space<vmem>>, vector<1x128xf32>
    %c600 = arith.constant 600 : index
    %c0_151 = arith.constant 0 : index
    %516 = vector.load %arg3[%c600, %c0_151] : memref<712x256xf32, #tpu.memory_space<vmem>>, vector<64x128xf32>
    %c664 = arith.constant 664 : index
    %c0_152 = arith.constant 0 : index
    %517 = vector.load %arg3[%c664, %c0_152] : memref<712x256xf32, #tpu.memory_space<vmem>>, vector<1x128xf32>
    %518 = vector.extract_strided_slice %373 {offsets = [0, 0], sizes = [4, 32], strides = [1, 1]} : vector<8x32xf32> to vector<4x32xf32>
    %519 = vector.extract_strided_slice %373 {offsets = [4, 0], sizes = [4, 32], strides = [1, 1]} : vector<8x32xf32> to vector<4x32xf32>
    %520 = vector.extract_strided_slice %378 {offsets = [0, 0], sizes = [4, 32], strides = [1, 1]} : vector<8x32xf32> to vector<4x32xf32>
    %521 = vector.extract_strided_slice %378 {offsets = [4, 0], sizes = [4, 32], strides = [1, 1]} : vector<8x32xf32> to vector<4x32xf32>
    %522 = vector.extract_strided_slice %513 {offsets = [0, 0], sizes = [4, 128], strides = [1, 1]} : vector<16x128xf32> to vector<4x128xf32>
    %523 = vector.broadcast %515 : vector<1x128xf32> to vector<4x128xf32>
    %524 = arith.addf %522, %523 : vector<4x128xf32>
    %cst_153 = arith.constant dense<0.000000e+00> : vector<4x128xf32>
    %525 = tpu.matmul %518, %514, %cst_153 {dimension_numbers = #tpu.dot_dimension_numbers<[1], [0], [0], [1], [0, 0, 1, 1], [], []>} : vector<4x32xf32>, vector<32x128xf32>, vector<4x128xf32> -> vector<4x128xf32>
    %526 = arith.addf %524, %525 : vector<4x128xf32>
    %527 = arith.negf %526 : vector<4x128xf32>
    %528 = math.exp %527 : vector<4x128xf32>
    %cst_154 = arith.constant 1.000000e+00 : f32
    %529 = vector.broadcast %cst_154 : f32 to vector<4x128xf32>
    %530 = arith.addf %529, %528 : vector<4x128xf32>
    %531 = arith.divf %529, %530 : vector<4x128xf32>
    %532 = math.tanh %526 : vector<4x128xf32>
    %533 = vector.extract_strided_slice %531 {offsets = [0, 0], sizes = [4, 32], strides = [1, 1]} : vector<4x128xf32> to vector<4x32xf32>
    %534 = vector.extract_strided_slice %531 {offsets = [0, 32], sizes = [4, 32], strides = [1, 1]} : vector<4x128xf32> to vector<4x32xf32>
    %535 = vector.extract_strided_slice %532 {offsets = [0, 64], sizes = [4, 32], strides = [1, 1]} : vector<4x128xf32> to vector<4x32xf32>
    %536 = vector.extract_strided_slice %531 {offsets = [0, 96], sizes = [4, 32], strides = [1, 1]} : vector<4x128xf32> to vector<4x32xf32>
    %537 = arith.mulf %534, %520 : vector<4x32xf32>
    %538 = arith.mulf %533, %535 : vector<4x32xf32>
    %539 = arith.addf %537, %538 : vector<4x32xf32>
    %540 = math.tanh %539 : vector<4x32xf32>
    %541 = arith.mulf %536, %540 : vector<4x32xf32>
    %542 = tpu.concatenate %541, %519 in 1 : vector<4x32xf32>, vector<4x32xf32> -> vector<4x64xf32>
    %cst_155 = arith.constant dense<0.000000e+00> : vector<4x128xf32>
    %543 = tpu.matmul %542, %516, %cst_155 {dimension_numbers = #tpu.dot_dimension_numbers<[1], [0], [0], [1], [0, 0, 1, 1], [], []>} : vector<4x64xf32>, vector<64x128xf32>, vector<4x128xf32> -> vector<4x128xf32>
    %544 = vector.broadcast %517 : vector<1x128xf32> to vector<4x128xf32>
    %545 = arith.addf %543, %544 : vector<4x128xf32>
    %546 = arith.negf %545 : vector<4x128xf32>
    %547 = math.exp %546 : vector<4x128xf32>
    %cst_156 = arith.constant 1.000000e+00 : f32
    %548 = vector.broadcast %cst_156 : f32 to vector<4x128xf32>
    %549 = arith.addf %548, %547 : vector<4x128xf32>
    %550 = arith.divf %548, %549 : vector<4x128xf32>
    %551 = math.tanh %545 : vector<4x128xf32>
    %552 = vector.extract_strided_slice %550 {offsets = [0, 0], sizes = [4, 32], strides = [1, 1]} : vector<4x128xf32> to vector<4x32xf32>
    %553 = vector.extract_strided_slice %550 {offsets = [0, 32], sizes = [4, 32], strides = [1, 1]} : vector<4x128xf32> to vector<4x32xf32>
    %554 = vector.extract_strided_slice %551 {offsets = [0, 64], sizes = [4, 32], strides = [1, 1]} : vector<4x128xf32> to vector<4x32xf32>
    %555 = vector.extract_strided_slice %550 {offsets = [0, 96], sizes = [4, 32], strides = [1, 1]} : vector<4x128xf32> to vector<4x32xf32>
    %556 = arith.mulf %553, %521 : vector<4x32xf32>
    %557 = arith.mulf %552, %554 : vector<4x32xf32>
    %558 = arith.addf %556, %557 : vector<4x32xf32>
    %559 = math.tanh %558 : vector<4x32xf32>
    %560 = arith.mulf %555, %559 : vector<4x32xf32>
    %561 = vector.extract_strided_slice %513 {offsets = [4, 0], sizes = [4, 128], strides = [1, 1]} : vector<16x128xf32> to vector<4x128xf32>
    %562 = vector.broadcast %515 : vector<1x128xf32> to vector<4x128xf32>
    %563 = arith.addf %561, %562 : vector<4x128xf32>
    %cst_157 = arith.constant dense<0.000000e+00> : vector<4x128xf32>
    %564 = tpu.matmul %541, %514, %cst_157 {dimension_numbers = #tpu.dot_dimension_numbers<[1], [0], [0], [1], [0, 0, 1, 1], [], []>} : vector<4x32xf32>, vector<32x128xf32>, vector<4x128xf32> -> vector<4x128xf32>
    %565 = arith.addf %563, %564 : vector<4x128xf32>
    %566 = arith.negf %565 : vector<4x128xf32>
    %567 = math.exp %566 : vector<4x128xf32>
    %cst_158 = arith.constant 1.000000e+00 : f32
    %568 = vector.broadcast %cst_158 : f32 to vector<4x128xf32>
    %569 = arith.addf %568, %567 : vector<4x128xf32>
    %570 = arith.divf %568, %569 : vector<4x128xf32>
    %571 = math.tanh %565 : vector<4x128xf32>
    %572 = vector.extract_strided_slice %570 {offsets = [0, 0], sizes = [4, 32], strides = [1, 1]} : vector<4x128xf32> to vector<4x32xf32>
    %573 = vector.extract_strided_slice %570 {offsets = [0, 32], sizes = [4, 32], strides = [1, 1]} : vector<4x128xf32> to vector<4x32xf32>
    %574 = vector.extract_strided_slice %571 {offsets = [0, 64], sizes = [4, 32], strides = [1, 1]} : vector<4x128xf32> to vector<4x32xf32>
    %575 = vector.extract_strided_slice %570 {offsets = [0, 96], sizes = [4, 32], strides = [1, 1]} : vector<4x128xf32> to vector<4x32xf32>
    %576 = arith.mulf %573, %539 : vector<4x32xf32>
    %577 = arith.mulf %572, %574 : vector<4x32xf32>
    %578 = arith.addf %576, %577 : vector<4x32xf32>
    %579 = math.tanh %578 : vector<4x32xf32>
    %580 = arith.mulf %575, %579 : vector<4x32xf32>
    %581 = tpu.concatenate %580, %560 in 1 : vector<4x32xf32>, vector<4x32xf32> -> vector<4x64xf32>
    %cst_159 = arith.constant dense<0.000000e+00> : vector<4x128xf32>
    %582 = tpu.matmul %581, %516, %cst_159 {dimension_numbers = #tpu.dot_dimension_numbers<[1], [0], [0], [1], [0, 0, 1, 1], [], []>} : vector<4x64xf32>, vector<64x128xf32>, vector<4x128xf32> -> vector<4x128xf32>
    %583 = vector.broadcast %517 : vector<1x128xf32> to vector<4x128xf32>
    %584 = arith.addf %582, %583 : vector<4x128xf32>
    %585 = arith.negf %584 : vector<4x128xf32>
    %586 = math.exp %585 : vector<4x128xf32>
    %cst_160 = arith.constant 1.000000e+00 : f32
    %587 = vector.broadcast %cst_160 : f32 to vector<4x128xf32>
    %588 = arith.addf %587, %586 : vector<4x128xf32>
    %589 = arith.divf %587, %588 : vector<4x128xf32>
    %590 = math.tanh %584 : vector<4x128xf32>
    %591 = vector.extract_strided_slice %589 {offsets = [0, 0], sizes = [4, 32], strides = [1, 1]} : vector<4x128xf32> to vector<4x32xf32>
    %592 = vector.extract_strided_slice %589 {offsets = [0, 32], sizes = [4, 32], strides = [1, 1]} : vector<4x128xf32> to vector<4x32xf32>
    %593 = vector.extract_strided_slice %590 {offsets = [0, 64], sizes = [4, 32], strides = [1, 1]} : vector<4x128xf32> to vector<4x32xf32>
    %594 = vector.extract_strided_slice %589 {offsets = [0, 96], sizes = [4, 32], strides = [1, 1]} : vector<4x128xf32> to vector<4x32xf32>
    %595 = arith.mulf %592, %558 : vector<4x32xf32>
    %596 = arith.mulf %591, %593 : vector<4x32xf32>
    %597 = arith.addf %595, %596 : vector<4x32xf32>
    %598 = math.tanh %597 : vector<4x32xf32>
    %599 = arith.mulf %594, %598 : vector<4x32xf32>
    %600 = vector.extract_strided_slice %513 {offsets = [8, 0], sizes = [4, 128], strides = [1, 1]} : vector<16x128xf32> to vector<4x128xf32>
    %601 = vector.broadcast %515 : vector<1x128xf32> to vector<4x128xf32>
    %602 = arith.addf %600, %601 : vector<4x128xf32>
    %cst_161 = arith.constant dense<0.000000e+00> : vector<4x128xf32>
    %603 = tpu.matmul %580, %514, %cst_161 {dimension_numbers = #tpu.dot_dimension_numbers<[1], [0], [0], [1], [0, 0, 1, 1], [], []>} : vector<4x32xf32>, vector<32x128xf32>, vector<4x128xf32> -> vector<4x128xf32>
    %604 = arith.addf %602, %603 : vector<4x128xf32>
    %605 = arith.negf %604 : vector<4x128xf32>
    %606 = math.exp %605 : vector<4x128xf32>
    %cst_162 = arith.constant 1.000000e+00 : f32
    %607 = vector.broadcast %cst_162 : f32 to vector<4x128xf32>
    %608 = arith.addf %607, %606 : vector<4x128xf32>
    %609 = arith.divf %607, %608 : vector<4x128xf32>
    %610 = math.tanh %604 : vector<4x128xf32>
    %611 = vector.extract_strided_slice %609 {offsets = [0, 0], sizes = [4, 32], strides = [1, 1]} : vector<4x128xf32> to vector<4x32xf32>
    %612 = vector.extract_strided_slice %609 {offsets = [0, 32], sizes = [4, 32], strides = [1, 1]} : vector<4x128xf32> to vector<4x32xf32>
    %613 = vector.extract_strided_slice %610 {offsets = [0, 64], sizes = [4, 32], strides = [1, 1]} : vector<4x128xf32> to vector<4x32xf32>
    %614 = vector.extract_strided_slice %609 {offsets = [0, 96], sizes = [4, 32], strides = [1, 1]} : vector<4x128xf32> to vector<4x32xf32>
    %615 = arith.mulf %612, %578 : vector<4x32xf32>
    %616 = arith.mulf %611, %613 : vector<4x32xf32>
    %617 = arith.addf %615, %616 : vector<4x32xf32>
    %618 = math.tanh %617 : vector<4x32xf32>
    %619 = arith.mulf %614, %618 : vector<4x32xf32>
    %620 = tpu.concatenate %619, %599 in 1 : vector<4x32xf32>, vector<4x32xf32> -> vector<4x64xf32>
    %cst_163 = arith.constant dense<0.000000e+00> : vector<4x128xf32>
    %621 = tpu.matmul %620, %516, %cst_163 {dimension_numbers = #tpu.dot_dimension_numbers<[1], [0], [0], [1], [0, 0, 1, 1], [], []>} : vector<4x64xf32>, vector<64x128xf32>, vector<4x128xf32> -> vector<4x128xf32>
    %622 = vector.broadcast %517 : vector<1x128xf32> to vector<4x128xf32>
    %623 = arith.addf %621, %622 : vector<4x128xf32>
    %624 = arith.negf %623 : vector<4x128xf32>
    %625 = math.exp %624 : vector<4x128xf32>
    %cst_164 = arith.constant 1.000000e+00 : f32
    %626 = vector.broadcast %cst_164 : f32 to vector<4x128xf32>
    %627 = arith.addf %626, %625 : vector<4x128xf32>
    %628 = arith.divf %626, %627 : vector<4x128xf32>
    %629 = math.tanh %623 : vector<4x128xf32>
    %630 = vector.extract_strided_slice %628 {offsets = [0, 0], sizes = [4, 32], strides = [1, 1]} : vector<4x128xf32> to vector<4x32xf32>
    %631 = vector.extract_strided_slice %628 {offsets = [0, 32], sizes = [4, 32], strides = [1, 1]} : vector<4x128xf32> to vector<4x32xf32>
    %632 = vector.extract_strided_slice %629 {offsets = [0, 64], sizes = [4, 32], strides = [1, 1]} : vector<4x128xf32> to vector<4x32xf32>
    %633 = vector.extract_strided_slice %628 {offsets = [0, 96], sizes = [4, 32], strides = [1, 1]} : vector<4x128xf32> to vector<4x32xf32>
    %634 = arith.mulf %631, %597 : vector<4x32xf32>
    %635 = arith.mulf %630, %632 : vector<4x32xf32>
    %636 = arith.addf %634, %635 : vector<4x32xf32>
    %637 = math.tanh %636 : vector<4x32xf32>
    %638 = arith.mulf %633, %637 : vector<4x32xf32>
    %639 = vector.extract_strided_slice %513 {offsets = [12, 0], sizes = [4, 128], strides = [1, 1]} : vector<16x128xf32> to vector<4x128xf32>
    %640 = vector.broadcast %515 : vector<1x128xf32> to vector<4x128xf32>
    %641 = arith.addf %639, %640 : vector<4x128xf32>
    %cst_165 = arith.constant dense<0.000000e+00> : vector<4x128xf32>
    %642 = tpu.matmul %619, %514, %cst_165 {dimension_numbers = #tpu.dot_dimension_numbers<[1], [0], [0], [1], [0, 0, 1, 1], [], []>} : vector<4x32xf32>, vector<32x128xf32>, vector<4x128xf32> -> vector<4x128xf32>
    %643 = arith.addf %641, %642 : vector<4x128xf32>
    %644 = arith.negf %643 : vector<4x128xf32>
    %645 = math.exp %644 : vector<4x128xf32>
    %cst_166 = arith.constant 1.000000e+00 : f32
    %646 = vector.broadcast %cst_166 : f32 to vector<4x128xf32>
    %647 = arith.addf %646, %645 : vector<4x128xf32>
    %648 = arith.divf %646, %647 : vector<4x128xf32>
    %649 = math.tanh %643 : vector<4x128xf32>
    %650 = vector.extract_strided_slice %648 {offsets = [0, 0], sizes = [4, 32], strides = [1, 1]} : vector<4x128xf32> to vector<4x32xf32>
    %651 = vector.extract_strided_slice %648 {offsets = [0, 32], sizes = [4, 32], strides = [1, 1]} : vector<4x128xf32> to vector<4x32xf32>
    %652 = vector.extract_strided_slice %649 {offsets = [0, 64], sizes = [4, 32], strides = [1, 1]} : vector<4x128xf32> to vector<4x32xf32>
    %653 = vector.extract_strided_slice %648 {offsets = [0, 96], sizes = [4, 32], strides = [1, 1]} : vector<4x128xf32> to vector<4x32xf32>
    %654 = arith.mulf %651, %617 : vector<4x32xf32>
    %655 = arith.mulf %650, %652 : vector<4x32xf32>
    %656 = arith.addf %654, %655 : vector<4x32xf32>
    %657 = math.tanh %656 : vector<4x32xf32>
    %658 = arith.mulf %653, %657 : vector<4x32xf32>
    %659 = tpu.concatenate %658, %638 in 1 : vector<4x32xf32>, vector<4x32xf32> -> vector<4x64xf32>
    %cst_167 = arith.constant dense<0.000000e+00> : vector<4x128xf32>
    %660 = tpu.matmul %659, %516, %cst_167 {dimension_numbers = #tpu.dot_dimension_numbers<[1], [0], [0], [1], [0, 0, 1, 1], [], []>} : vector<4x64xf32>, vector<64x128xf32>, vector<4x128xf32> -> vector<4x128xf32>
    %661 = vector.broadcast %517 : vector<1x128xf32> to vector<4x128xf32>
    %662 = arith.addf %660, %661 : vector<4x128xf32>
    %663 = arith.negf %662 : vector<4x128xf32>
    %664 = math.exp %663 : vector<4x128xf32>
    %cst_168 = arith.constant 1.000000e+00 : f32
    %665 = vector.broadcast %cst_168 : f32 to vector<4x128xf32>
    %666 = arith.addf %665, %664 : vector<4x128xf32>
    %667 = arith.divf %665, %666 : vector<4x128xf32>
    %668 = math.tanh %662 : vector<4x128xf32>
    %669 = vector.extract_strided_slice %667 {offsets = [0, 0], sizes = [4, 32], strides = [1, 1]} : vector<4x128xf32> to vector<4x32xf32>
    %670 = vector.extract_strided_slice %667 {offsets = [0, 32], sizes = [4, 32], strides = [1, 1]} : vector<4x128xf32> to vector<4x32xf32>
    %671 = vector.extract_strided_slice %668 {offsets = [0, 64], sizes = [4, 32], strides = [1, 1]} : vector<4x128xf32> to vector<4x32xf32>
    %672 = vector.extract_strided_slice %667 {offsets = [0, 96], sizes = [4, 32], strides = [1, 1]} : vector<4x128xf32> to vector<4x32xf32>
    %673 = arith.mulf %670, %636 : vector<4x32xf32>
    %674 = arith.mulf %669, %671 : vector<4x32xf32>
    %675 = arith.addf %673, %674 : vector<4x32xf32>
    %676 = math.tanh %675 : vector<4x32xf32>
    %677 = arith.mulf %672, %676 : vector<4x32xf32>
    %678 = tpu.concatenate %560, %599, %638, %677 in 0 : vector<4x32xf32>, vector<4x32xf32>, vector<4x32xf32>, vector<4x32xf32> -> vector<16x32xf32>
    %c672 = arith.constant 672 : index
    %c0_169 = arith.constant 0 : index
    %679 = vector.load %arg3[%c672, %c0_169] : memref<712x256xf32, #tpu.memory_space<vmem>>, vector<32x16xf32>
    %cst_170 = arith.constant dense<0.000000e+00> : vector<16x16xf32>
    %680 = tpu.matmul %678, %679, %cst_170 {dimension_numbers = #tpu.dot_dimension_numbers<[1], [0], [0], [1], [0, 0, 1, 1], [], []>} : vector<16x32xf32>, vector<32x16xf32>, vector<16x16xf32> -> vector<16x16xf32>
    %c704 = arith.constant 704 : index
    %c0_171 = arith.constant 0 : index
    %681 = vector.load %arg3[%c704, %c0_171] : memref<712x256xf32, #tpu.memory_space<vmem>>, vector<1x16xf32>
    %682 = vector.broadcast %681 : vector<1x16xf32> to vector<16x16xf32>
    %683 = arith.addf %680, %682 : vector<16x16xf32>
    %cst_172 = arith.constant dense<0xFF800000> : vector<16xf32>
    %684 = vector.multi_reduction <maximumf>, %683, %cst_172 [1] : vector<16x16xf32> to vector<16xf32>
    %685 = vector.shape_cast %684 : vector<16xf32> to vector<16x1xf32>
    %686 = vector.broadcast %685 : vector<16x1xf32> to vector<16x16xf32>
    %687 = arith.subf %683, %686 : vector<16x16xf32>
    %688 = math.exp %687 : vector<16x16xf32>
    %cst_173 = arith.constant dense<0.000000e+00> : vector<16xf32>
    %689 = vector.multi_reduction <add>, %688, %cst_173 [1] : vector<16x16xf32> to vector<16xf32>
    %690 = vector.shape_cast %689 : vector<16xf32> to vector<16x1xf32>
    %691 = math.log %690 : vector<16x1xf32>
    %692 = arith.addf %691, %685 : vector<16x1xf32>
    %693 = vector.broadcast %692 : vector<16x1xf32> to vector<16x16xf32>
    %694 = arith.subf %683, %693 : vector<16x16xf32>
    %c0_174 = arith.constant 0 : index
    %c0_175 = arith.constant 0 : index
    %695 = vector.load %arg4[%c0_174, %c0_175] : memref<16x16xf32, #tpu.memory_space<vmem>>, vector<16x16xf32>
    tpu.vector_store %arg4[%c0_174, %c0_175], %694 {strides = array<i32>} : memref<16x16xf32, #tpu.memory_space<vmem>>, vector<16x16xf32>,
    return
  }
  func.func @transform_0(%arg0: i32) -> (i32, i32) {
    %c0_i32 = arith.constant 0 : i32
    %c0_i32_0 = arith.constant 0 : i32
    %c0_i32_1 = arith.constant 0 : i32
    return %c0_i32, %c0_i32_0 : i32, i32
  }
  func.func @transform_1(%arg0: i32) -> (i32, i32) {
    %c0_i32 = arith.constant 0 : i32
    %c0_i32_0 = arith.constant 0 : i32
    %c0_i32_1 = arith.constant 0 : i32
    return %c0_i32, %c0_i32_0 : i32, i32
  }
  func.func @transform_2(%arg0: i32) -> (i32, i32) {
    %c0_i32 = arith.constant 0 : i32
    %c0_i32_0 = arith.constant 0 : i32
    %c0_i32_1 = arith.constant 0 : i32
    return %c0_i32, %c0_i32_0 : i32, i32
  }
  func.func @transform_3(%arg0: i32) -> (i32, i32) {
    %c0_i32 = arith.constant 0 : i32
    %c0_i32_0 = arith.constant 0 : i32
    %c0_i32_1 = arith.constant 0 : i32
    return %c0_i32, %c0_i32_0 : i32, i32
  }
}

</mosaic_0001>

<bundles_post_ra>
// kernel: forward.1
= control target key start
LH: loop header
LB: loop body
LE: loop exit
PB: predicated region body
PF: predicated region fallthrough
CT: control target
= control target key end

     0   :  { %8 = vsyncpa [#allocation6], 0  ;;  %s6206_s0 = inlined_call_operand.vmem [shape: s32[40,1], index: 0, kind: input, shape index: {}]   ;;  %s6207_s1 = inlined_call_operand.vmem [shape: f32[6,4], index: 1, kind: input, shape index: {}]   ;;  %s6208_s2 = inlined_call_operand.hbm [shape: f32[712,256], index: 2, kind: input, shape index: {}]   ;;  %s6209_s3 = inlined_call_operand.hbm [shape: f32[16,16], index: 3, kind: output, shape index: {}]  }
   0x1   :  { %9 = vsyncpa [#allocation7], 0  ;;  %s5315_s12 = smov [#allocation5]   ;;  %s5267_s16 = scalar_lea.hbm %s6208_s2, 22784 }
   0x2   :  { %s19_s13 = sshll.u32 %s5315_s12, 4  ;;  %p5268_p0 = scmp.ne.s32.totalorder %s6208_s2, %s5267_s16  ;;  %s20_s13 = int_to_ptr.vmem [resolvable:$true] %s19_s13 }
   0x3   :  { %p5271_p1 = scmp.lt.u32.totalorder %s5267_s16, %s6208_s2 }
   0x5   :  { %p5273_p2 = pnand %p5271_p1, %p5268_p0 }
   0x7   :  { %5276 = shalt.err (!%p5273_p2)
}
   0x8   :  { %s5277_s21 = scalar_lea.vmem %s20_s13, 22784  ;;  %p5282_p4 = scmp.lt.s32.totalorder %s20_s13, %s20_s13 }
   0x9   :  { %p5278_p3 = scmp.ne.s32.totalorder %s20_s13, %s5277_s21  ;;  %p5283_p5 = scmp.lt.s32.totalorder %s5277_s21, %s5277_s21 }
   0xb   :  { %p5284_p6 = por %p5283_p5, %p5282_p4 }
   0xd   :  { %p5285_p7 = pnand %p5284_p6, %p5278_p3 }
   0xf   :  { %5288 = shalt.err (!%p5285_p7)
}
  0x10   :  { %s5316_s22 = smov 256   ;;  %s5317_s23 = smov 16  }
  0x11   :  { %25 = dma.hbm_to_vmem [thread:$0]  %s6208_s2, 22784, %s20_s13, [#allocation6], %s5316_s22, %s5316_s22, %s5317_s23  }
  0x12   :  { %5311 = dma.done.wait [#allocation6], 22784  }
  0x13   :  { %5312 = vsyncadd [#allocation6], 4294944512  ;;  %v5318_v0 = vmov 0   ;;  %v5319_v1 = vmov 0.0|0.0   ;;  %v29_v2 = vld [vmem:[%s6206_s0] sm:$0xff]  ;;  %v31_v3 = vld [vmem:[%s6206_s0 + $0x10] sm:$0xff]  ;;  %v34_v18 = vlaneseq }
  0x14   :  { %5080 = vset.pattern.permute.xlu0 %v5318_v0  ;;  %5081 = vset.pattern.permute.xlu1 %v5318_v0  ;;  %v54_v4 = vld [vmem:[#allocation5 + $0x380] sm:$0xff]  ;;  %v32_v6 = vld [vmem:[%s6206_s0 + $0x18] sm:$0xff]  ;;  %vm5320_vm0 = vmmov 0   ;;  %v5321_v8 = vmov 0.0   ;;  %v33_v13 = vld [vmem:[%s6206_s0 + $0x20] sm:$0xff]  ;;  %vm67_vm1 = vcmask 1043456  }
  0x15   :  { %4756 = vmatprep.subr.bf16.mxu0 %v5319_v1  ;;  %37 = vperm.xlu0 %5080, %v29_v2   ;;  %v30_v5 = vld [vmem:[%s6206_s0 + $0x8] sm:$0xff]  ;;  %v55_v7 = vld [vmem:[#allocation5 + $0x390] sm:$0xff]  ;;  %v249_v15 = vld [vmem:[#allocation5 + $0x8] sm:$0xff]  ;;  %v5382_v19 = vand.u32 127, %v34_v18  ;;  %vm57_vm2 = vcmask 162816   ;;  %vm165_vm4 = vcmask 130048  }
  0x16   :  { %43 = vperm.xlu1 %5081, %v31_v3   ;;  %4293 = vmatprep.mubr.msk.f32.mxu0 %vm5320_vm0, %v5321_v8  ;;  %v4757_v9 = vpack.c.bf16 %v55_v7, %v54_v4  ;;  %v163_v10 = vld [vmem:[#allocation5 + $0x3b0] sm:$0xff]  ;;  %v164_v11 = vld [vmem:[#allocation5 + $0x3c0] sm:$0xff]  ;;  %v251_v16 = vld [vmem:[#allocation5 + $0x18] sm:$0xff]  ;;  %vm360_vm9 = vcmask 523264   ;;  %vm256_vm10 = vcmask 261120   ;;  %s5322_s0 = smov 64  }
  0x17   :  { %v4759_v12 = vpack.c.bf16 %v164_v11, %v163_v10  ;;  %v56_v14 = vld [vmem:[#allocation5 + $0x3a0] sm:$0xf]  ;;  %v4763_v17 = vpack.c.bf16 %v251_v16, %v249_v15  ;;  %v350_v21 = vld [vmem:[#allocation5 + $0xd0] sm:$0xff]  ;;  %v253_v35 = vld [vmem:[#allocation5 + $0x28] sm:$0xff]  ;;  %s5323_s8 = smov 32   ;;  %vm469_vm11 = vcmask 523524  }
  0x18   :  { %4758 = vmatpush3.bf16.msra.mxu0 %v4757_v9  ;;  %v349_v20 = vld [vmem:[#allocation5 + $0xc0] sm:$0xff]  ;;  %v352_v26 = vld [vmem:[#allocation5 + $0xf0] sm:$0xff]  ;;  %v255_v36 = vld [vmem:[#allocation5 + $0x38] sm:$0xff]  ;;  %vm464_vm12 = vcmask 257024   ;;  %s5324_s9 = smov 96   ;;  %vm2150_vm13 = vcmask 519168  }
  0x19   :  { %40 = vperm.xlu0 %5080, %v30_v5   ;;  %4291 = vmatprep.subr.mxu0 %v5321_v8  ;;  %v5384_v24 = vpack.c.bf16 %v350_v21, %v349_v20  ;;  %v351_v25 = vld [vmem:[#allocation5 + $0xe0] sm:$0xff]  ;;  %v250_v32 = vld [vmem:[#allocation5 + $0x10] sm:$0xff]  ;;  %v4767_v40 = vpack.c.bf16 %v255_v36, %v253_v35  ;;  %vm2153_vm14 = vcmask 523268   ;;  %vm2316_vm15 = vcmask 1041409  }
  0x1a   :  { %152 = vperm.xlu1 %5081, %v32_v6   ;;  %4760 = vmatprep.subr.bf16.mxu1 %v4759_v12  ;;  %v5392_v30 = vpack.c.bf16 %v352_v26, %v351_v25  ;;  %v248_v31 = vld [vmem:[#allocation5] sm:$0xff]  ;;  %v254_v42 = vld [vmem:[#allocation5 + $0x30] sm:$0xff] }
  0x1b   :  { %4762 = vmatpush3.bf16.msra.mxu1 %v4759_v12  ;;  %v4765_v39 = vpack.c.bf16 %v250_v32, %v248_v31  ;;  %v252_v41 = vld [vmem:[#allocation5 + $0x20] sm:$0xff]  ;;  %v354_v46 = vld [vmem:[#allocation5 + $0x110] sm:$0xff] }
  0x1c   :  { %4292 = vmatpush3.msk.msra.mxu0 %vm67_vm1, %v56_v14  ;;  %4764 = vmatprep.subr.bf16.mxu1 %v4763_v17  ;;  %v4769_v44 = vpack.c.bf16 %v254_v42, %v252_v41  ;;  %v353_v45 = vld [vmem:[#allocation5 + $0x100] sm:$0xff]  ;;  %v356_v49 = vld [vmem:[#allocation5 + $0x130] sm:$0xff] }
  0x1d   :  { %155 = vperm.xlu0 %5080, %v33_v13   ;;  %4771 = vmatprep.subr.bf16.mxu0 %v5319_v1  ;;  %v5415_v47 = vpack.c.bf16 %v354_v46, %v353_v45  ;;  %v355_v48 = vld [vmem:[#allocation5 + $0x120] sm:$0xff]  ;;  %v5422_v51 = vld [vmem:[#allocation5 + $0x3d0] sm:$0xff] }
  0x1e   :  { %v5419_v50 = vpack.c.bf16 %v356_v49, %v355_v48  ;;  %v5425_v52 = vmul.f32 0.0, %v5422_v51  ;;  %v5468_v16 = vld [vmem:[#allocation5 + $0x1c0] sm:$0xff] }
  0x94   :  { %v38_v22 = vpop.permute.xlu0 %37 }
  0x95   :  { %v44_v23 = vpop.permute.xlu1 %43  ;;  %vm45_vm3 = vcmp.eq.s32.totalorder %v38_v22, %v5382_v19 }
  0x96   :  { %v3994_v27 = vsel %vm45_vm3, 1.0, %v5321_v8  ;;  %vm47_vm5 = vcmp.eq.s32.totalorder %v44_v23, %v5382_v19  ;;  %vm2320_vm3 = vcmask 1043459  }
  0x97   :  { %4294 = vmatmul.mubr.msk.f32.vlgmr.msra.gmra.mrb[0].mxu0 %vm57_vm2, %v3994_v27  ;;  %v3996_v37 = vsel %vm47_vm5, 1.0, %v5321_v8  ;;  %vm2322_vm5 = vcmask 1044484  }
  0x98   :  { %v41_v28 = vpop.permute.xlu0 %40  ;;  %4296 = vmatprep.mubr.msk.f32.mxu0 %vm5320_vm0, %v5321_v8  ;;  %4773 = vmatpush3.bf16.msra.mxu0 %v5384_v24 }
  0x99   :  { %v153_v29 = vpop.permute.xlu1 %152  ;;  %vm46_vm6 = vcmp.eq.s32.totalorder %v41_v28, %v5382_v19  ;;  %4774 = vmatprep.subr.bf16.mxu0 %v5319_v1 }
  0x9a   :  { %vm157_vm7 = vcmp.eq.s32.totalorder %v153_v29, %v5382_v19  ;;  %v3995_v33 = vsel %vm46_vm6, 1.0, %v5321_v8  ;;  %vm2324_vm6 = vcmask 1045509  }
  0x9b   :  { %v4001_v34 = vsel %vm157_vm7, 1.0, %v5321_v8  ;;  %4297 = vmatmul.mubr.msk.f32.gmra.mrb[2].mxu0 %vm57_vm2, %v3995_v33 }
  0x9c   :  { %4306 = vmatprep.mubr.msk.f32.mxu1 %vm165_vm4, %v4001_v34  ;;  %v156_v38 = vpop.permute.xlu0 %155  ;;  %4299 = vmatprep.mubr.msk.f32.mxu0 %vm5320_vm0, %v5321_v8 }
  0x9d   :  { %4776 = vmatpush3.bf16.msra.mxu0 %v5392_v30  ;;  %vm158_vm8 = vcmp.eq.s32.totalorder %v156_v38, %v5382_v19 }
  0x9e   :  { %4777 = vmatprep.subr.bf16.mxu0 %v5319_v1  ;;  %v4002_v43 = vsel %vm158_vm8, 1.0, %v5321_v8  ;;  %vm2328_vm8 = vcmask 29696  }
  0x9f   :  { %4300 = vmatmul.mubr.msk.f32.gmra.mrb[4].mxu0 %vm57_vm2, %v3996_v37  ;;  %4307 = vmatmul.mubr.msk.f32.vlgmr.msra.gmra.mrb[0].mxu1 %vm165_vm4, %v4002_v43  ;;  %vm2318_vm2 = vcmask 1042434  }
  0xa0   :  { %4766 = vmatpush1.bf16.msra.mxu1 %v4765_v39  ;;  %330 = vmatprep.mubr.f32.mxu1 %v5321_v8 }
  0xa1   :  { %4768 = vmatprep.subr.bf16.mxu1 %v4767_v40  ;;  %4325 = vmatprep.mubr.msk.f32.mxu0 %vm5320_vm0, %v5321_v8 }
  0xa2   :  { %4779 = vmatpush3.bf16.msra.mxu0 %v5415_v47 }
  0xa3   :  { %4780 = vmatprep.subr.bf16.mxu0 %v5319_v1 }
  0xa4   :  { %4770 = vmatpush1.bf16.msra.mxu1 %v4769_v44 }
  0xa5   :  { %4783 = vmatprep.subr.bf16.mxu1 %v5319_v1 }
  0xa6   :  { %4782 = vmatpush3.bf16.msra.mxu0 %v5419_v50 }
  0xa7   :  { %4795 = vmatprep.subr.bf16.mxu0 %v5319_v1 }
  0xa9   :  { %4326 = vmatmul.mubr.msk.f32.vlgmr.msra.gmra.mrb[6].mxu0 %vm360_vm9, %v5425_v52 }
  0xaa   :  { %4797 = vmatpush3.bf16.msra.mxu0 %v5384_v24  ;;  %4363 = vmatprep.mubr.msk.f32.mxu0 %vm5320_vm0, %v5321_v8 }
  0xab   :  { %4798 = vmatprep.subr.bf16.mxu0 %v5319_v1 }
  0xae   :  { %4800 = vmatpush3.bf16.msra.mxu0 %v5392_v30 }
  0xaf   :  { %4801 = vmatprep.subr.bf16.mxu0 %v5319_v1 }
  0xb2   :  { %4803 = vmatpush3.bf16.msra.mxu0 %v5415_v47 }
  0xb3   :  { %4804 = vmatprep.subr.bf16.mxu0 %v5319_v1 }
  0xb6   :  { %4806 = vmatpush3.bf16.msra.mxu0 %v5419_v50 }
  0xb7   :  { %4819 = vmatprep.subr.bf16.mxu0 %v5319_v1 }
 0x16a   :  { %v137_v53 = vpop.f32.mrb[0].mxu0 }
 0x16b   :  { %v4295_v54 = vpop.f32.mrb[1].mxu0  ;;  %4005 = vmatmul.mubr.msk.f32.vlgmr.msra.gmra.mrb[2].mxu1 %vm256_vm10, %v137_v53 }
 0x16c   :  { %336 = vmatprep.mubr.f32.mxu1 %v5321_v8  ;;  %4785 = vmatpush3.bf16.msra.mxu1 %v5384_v24 }
 0x16d   :  { %4786 = vmatprep.subr.bf16.mxu1 %v5319_v1 }
 0x16e   :  { %v142_v55 = vpop.f32.mrb[2].mxu0 }
 0x16f   :  { %v4298_v56 = vpop.f32.mrb[3].mxu0  ;;  %4006 = vmatmul.mubr.msk.f32.gmra.mrb[4].mxu1 %vm256_vm10, %v142_v55 }
 0x170   :  { %342 = vmatprep.mubr.f32.mxu1 %v5321_v8  ;;  %4788 = vmatpush3.bf16.msra.mxu1 %v5392_v30 }
 0x171   :  { %4789 = vmatprep.subr.bf16.mxu1 %v5319_v1 }
 0x172   :  { %v147_v57 = vpop.f32.mrb[4].mxu0  ;;  %v5448_v58 = vpop.f32.mrb[0].mxu1 }
 0x173   :  { %v4301_v59 = vpop.f32.mrb[5].mxu0  ;;  %v5450_v60 = vpop.f32.mrb[1].mxu1  ;;  %4007 = vmatmul.mubr.msk.f32.gmra.mrb[6].mxu1 %vm256_vm10, %v147_v57 }
 0x174   :  { %4791 = vmatpush3.bf16.msra.mxu1 %v5415_v47  ;;  %4344 = vmatprep.mubr.msk.f32.mxu1 %vm5320_vm0, %v5321_v8 }
 0x175   :  { %4792 = vmatprep.subr.bf16.mxu1 %v5319_v1 }
 0x178   :  { %4794 = vmatpush3.bf16.msra.mxu1 %v5419_v50 }
 0x179   :  { %4807 = vmatprep.subr.bf16.mxu1 %v5319_v1 }
 0x17c   :  { %v430_v61 = vpop.f32.mrb[6].mxu0 }
 0x17d   :  { %v4327_v62 = vpop.f32.mrb[7].mxu0 }
 0x23e   :  { %v332_v63 = vpop.f32.mrb[2].mxu1 }
 0x23f   :  { %v334_v0 = vpop.f32.mrb[3].mxu1  ;;  %v472_v14 = vrot.slane %v332_v63, 4 }
 0x240   :  { %v931_v10 = vrot.slane %v334_v0, 4 }
 0x242   :  { %v338_v2 = vpop.f32.mrb[4].mxu1 }
 0x243   :  { %v700_v3 = vrot.slane %v338_v2, 4  ;;  %v340_v4 = vpop.f32.mrb[5].mxu1 }
 0x244   :  { %v703_v5 = vrot.slane %v340_v4, 4  ;;  %v5460_v6 = vsel %vm67_vm1, %v338_v2, %v340_v4 }
 0x246   :  { %v344_v7 = vpop.f32.mrb[6].mxu1  ;;  %v5463_v9 = vsel %vm67_vm1, %v700_v3, %v703_v5 }
 0x247   :  { %v928_v11 = vrot.slane %v344_v7, 4  ;;  %v346_v12 = vpop.f32.mrb[7].mxu1  ;;  %v5466_v13 = vsel %vm67_vm1, %v344_v7, %v334_v0 }
 0x248   :  { %v475_v15 = vrot.slane %v346_v12, 4  ;;  %v358_v17 = vsel %vm67_vm1, %v332_v63, %v346_v12 }
 0x249   :  { %v434_v20 = vadd.f32 %v430_v61, %v358_v17  ;;  %v5472_v21 = vsel %vm67_vm1, %v928_v11, %v931_v10 }
 0x24a   :  { %v477_v22 = vsel %vm67_vm1, %v472_v14, %v475_v15 }
 0x24b   :  { %v435_v23 = vadd.f32 %v434_v20, %v5468_v16 }
 0x24d   :  { %5082 = vtanh.f32 %v435_v23  ;;  %v4009_v26 = vmul.f32 -1.442695, %v435_v23 }
 0x24f   :  { %5084 = vpow2.f32 %v4009_v26 }
 0x257   :  { %v5083_v25 = vpop.eup %5082 }
 0x258   :  { %445 = vrot.lane.b32.xlu1 %v5083_v25, %s5322_s0 }
 0x259   :  { %v5085_v27 = vpop.eup %5084 }
 0x25a   :  { %v439_v28 = vadd.f32 1.0, %v5085_v27 }
 0x25c   :  { %5086 = vrcp.f32 %v439_v28 }
 0x266   :  { %v5087_v29 = vpop.eup %5086 }
 0x267   :  { %v443_v33 = vmul.f32 0.0, %v5087_v29 }
 0x2ca   :  { %v446_v31 = vpop.permute.xlu1 %445 }
 0x2cb   :  { %v448_v32 = vmul.f32 %v5087_v29, %v446_v31 }
 0x2cd   :  { %450 = vrot.lane.b32.xlu0 %v448_v32, %s5323_s8 }
 0x33f   :  { %v451_v34 = vpop.permute.xlu0 %450 }
 0x340   :  { %v453_v35 = vadd.f32 %v451_v34, %v443_v33 }
 0x342   :  { %5088 = vtanh.f32 %v453_v35 }
 0x34c   :  { %v5089_v36 = vpop.eup %5088 }
 0x34d   :  { %456 = vrot.lane.b32.xlu1 %v5089_v36, %s5322_s0 }
 0x3bf   :  { %v457_v37 = vpop.permute.xlu1 %456 }
 0x3c0   :  { %v459_v38 = vmul.f32 %v5087_v29, %v457_v37 }
 0x3c2   :  { %466 = vrot.lane.b32.xlu1 %v459_v38, %s5322_s0  ;;  %461 = vrot.lane.b32.xlu0 %v459_v38, %s5323_s8 }
 0x434   :  { %v467_v39 = vpop.permute.xlu1 %466  ;;  %v462_v40 = vpop.permute.xlu0 %461 }
 0x435   :  { %470 = vst.msk [vmem:[#allocation2 + $0x10] sm:$0xf0] %vm469_vm11, %v467_v39  ;;  %v478_v41 = vsel %vm256_vm10, %v462_v40, %v467_v39 }
 0x436   :  { %465 = vst.msk [vmem:[#allocation2] sm:$0xf] %vm464_vm12, %v462_v40  ;;  %v479_v42 = vmul.f32 %v478_v41, %v5422_v51 }
 0x438   :  { %4345 = vmatmul.mubr.msk.f32.vlgmr.msra.gmra.mrb[8].mxu1 %vm360_vm9, %v479_v42 }
 0x439   :  { %4809 = vmatpush3.bf16.msra.mxu1 %v5384_v24  ;;  %4382 = vmatprep.mubr.msk.f32.mxu1 %vm5320_vm0, %v5321_v8 }
 0x43a   :  { %4810 = vmatprep.subr.bf16.mxu1 %v5319_v1 }
 0x43d   :  { %4812 = vmatpush3.bf16.msra.mxu1 %v5392_v30 }
 0x43e   :  { %4813 = vmatprep.subr.bf16.mxu1 %v5319_v1 }
 0x441   :  { %4815 = vmatpush3.bf16.msra.mxu1 %v5415_v47 }
 0x442   :  { %4816 = vmatprep.subr.bf16.mxu1 %v5319_v1 }
 0x445   :  { %4818 = vmatpush3.bf16.msra.mxu1 %v5419_v50 }
 0x446   :  { %4831 = vmatprep.subr.bf16.mxu1 %v5319_v1 }
 0x50b   :  { %v549_v43 = vpop.f32.mrb[8].mxu1 }
 0x50c   :  { %v553_v44 = vadd.f32 %v549_v43, %v477_v22  ;;  %v4346_v45 = vpop.f32.mrb[9].mxu1 }
 0x50e   :  { %v554_v46 = vadd.f32 %v553_v44, %v5468_v16 }
 0x510   :  { %5090 = vtanh.f32 %v554_v46  ;;  %v4011_v49 = vmul.f32 -1.442695, %v554_v46 }
 0x512   :  { %5092 = vpow2.f32 %v4011_v49 }
 0x51a   :  { %v5091_v48 = vpop.eup %5090 }
 0x51b   :  { %564 = vrot.lane.b32.xlu0 %v5091_v48, %s5322_s0 }
 0x51c   :  { %v5093_v53 = vpop.eup %5092 }
 0x51d   :  { %v558_v54 = vadd.f32 1.0, %v5093_v53 }
 0x51f   :  { %5094 = vrcp.f32 %v558_v54 }
 0x529   :  { %v5095_v55 = vpop.eup %5094 }
 0x52a   :  { %v562_v59 = vmul.f32 %v5095_v55, %v453_v35 }
 0x58d   :  { %v565_v56 = vpop.permute.xlu0 %564 }
 0x58e   :  { %v567_v57 = vmul.f32 %v5095_v55, %v565_v56 }
 0x590   :  { %569 = vrot.lane.b32.xlu1 %v567_v57, %s5323_s8 }
 0x602   :  { %v570_v61 = vpop.permute.xlu1 %569 }
 0x603   :  { %v572_v62 = vadd.f32 %v570_v61, %v562_v59 }
 0x605   :  { %5096 = vtanh.f32 %v572_v62 }
 0x60f   :  { %v5097_v63 = vpop.eup %5096 }
 0x610   :  { %575 = vrot.lane.b32.xlu0 %v5097_v63, %s5322_s0 }
 0x682   :  { %v576_v0 = vpop.permute.xlu0 %575 }
 0x683   :  { %v578_v2 = vmul.f32 %v5095_v55, %v576_v0 }
 0x685   :  { %584 = vrot.lane.b32.xlu0 %v578_v2, %s5322_s0  ;;  %580 = vrot.lane.b32.xlu1 %v578_v2, %s5323_s8 }
 0x6f7   :  { %v585_v3 = vpop.permute.xlu0 %584  ;;  %v581_v4 = vpop.permute.xlu1 %580 }
 0x6f8   :  { %587 = vst.msk [vmem:[#allocation2 + $0xc] sm:$0xf0] %vm469_vm11, %v585_v3  ;;  %v589_v5 = vsel %vm256_vm10, %v581_v4, %v585_v3 }
 0x6f9   :  { %583 = vst.msk [vmem:[#allocation2 + $0x4] sm:$0xf] %vm464_vm12, %v581_v4  ;;  %v590_v7 = vmul.f32 %v589_v5, %v5422_v51 }
 0x6fb   :  { %4364 = vmatmul.mubr.msk.f32.vlgmr.msra.gmra.mrb[8].mxu0 %vm360_vm9, %v590_v7 }
 0x6fc   :  { %4821 = vmatpush3.bf16.msra.mxu0 %v5384_v24  ;;  %4401 = vmatprep.mubr.msk.f32.mxu0 %vm5320_vm0, %v5321_v8 }
 0x6fd   :  { %4822 = vmatprep.subr.bf16.mxu0 %v5319_v1 }
 0x700   :  { %4824 = vmatpush3.bf16.msra.mxu0 %v5392_v30 }
 0x701   :  { %4825 = vmatprep.subr.bf16.mxu0 %v5319_v1 }
 0x704   :  { %4827 = vmatpush3.bf16.msra.mxu0 %v5415_v47 }
 0x705   :  { %4828 = vmatprep.subr.bf16.mxu0 %v5319_v1 }
 0x708   :  { %4830 = vmatpush3.bf16.msra.mxu0 %v5419_v50 }
 0x7ce   :  { %v660_v10 = vpop.f32.mrb[8].mxu0 }
 0x7cf   :  { %v664_v11 = vadd.f32 %v660_v10, %v5460_v6  ;;  %v4365_v12 = vpop.f32.mrb[9].mxu0 }
 0x7d1   :  { %v665_v14 = vadd.f32 %v664_v11, %v5468_v16 }
 0x7d3   :  { %5098 = vtanh.f32 %v665_v14  ;;  %v4013_v17 = vmul.f32 -1.442695, %v665_v14 }
 0x7d5   :  { %5100 = vpow2.f32 %v4013_v17 }
 0x7dd   :  { %v5099_v15 = vpop.eup %5098 }
 0x7de   :  { %675 = vrot.lane.b32.xlu1 %v5099_v15, %s5322_s0 }
 0x7df   :  { %v5101_v20 = vpop.eup %5100 }
 0x7e0   :  { %v669_v22 = vadd.f32 1.0, %v5101_v20 }
 0x7e2   :  { %5102 = vrcp.f32 %v669_v22 }
 0x7ec   :  { %v5103_v23 = vpop.eup %5102 }
 0x7ed   :  { %v673_v27 = vmul.f32 %v5103_v23, %v572_v62 }
 0x850   :  { %v676_v25 = vpop.permute.xlu1 %675 }
 0x851   :  { %v678_v26 = vmul.f32 %v5103_v23, %v676_v25 }
 0x853   :  { %680 = vrot.lane.b32.xlu0 %v678_v26, %s5323_s8 }
 0x8c5   :  { %v681_v28 = vpop.permute.xlu0 %680 }
 0x8c6   :  { %v683_v6 = vadd.f32 %v681_v28, %v673_v27 }
 0x8c8   :  { %5104 = vtanh.f32 %v683_v6 }
 0x8d2   :  { %v5105_v29 = vpop.eup %5104 }
 0x8d3   :  { %686 = vrot.lane.b32.xlu1 %v5105_v29, %s5322_s0 }
 0x945   :  { %v687_v31 = vpop.permute.xlu1 %686 }
 0x946   :  { %v689_v32 = vmul.f32 %v5103_v23, %v687_v31 }
 0x948   :  { %695 = vrot.lane.b32.xlu1 %v689_v32, %s5322_s0  ;;  %691 = vrot.lane.b32.xlu0 %v689_v32, %s5323_s8 }
 0x9ba   :  { %v696_v33 = vpop.permute.xlu1 %695  ;;  %v692_v34 = vpop.permute.xlu0 %691 }
 0x9bb   :  { %698 = vst.msk [vmem:[#allocation2 + $0x8] sm:$0xf0] %vm469_vm11, %v696_v33  ;;  %v706_v35 = vsel %vm256_vm10, %v692_v34, %v696_v33 }
 0x9bc   :  { %694 = vst.msk [vmem:[#allocation2 + $0x8] sm:$0xf] %vm464_vm12, %v692_v34  ;;  %v707_v36 = vmul.f32 %v706_v35, %v5422_v51 }
 0x9be   :  { %4383 = vmatmul.mubr.msk.f32.vlgmr.msra.gmra.mrb[10].mxu1 %vm360_vm9, %v707_v36 }
 0x9bf   :  { %4833 = vmatpush3.bf16.msra.mxu1 %v5384_v24  ;;  %4420 = vmatprep.mubr.msk.f32.mxu1 %vm5320_vm0, %v5321_v8 }
 0x9c0   :  { %4834 = vmatprep.subr.bf16.mxu1 %v5319_v1 }
 0x9c3   :  { %4836 = vmatpush3.bf16.msra.mxu1 %v5392_v30 }
 0x9c4   :  { %4837 = vmatprep.subr.bf16.mxu1 %v5319_v1 }
 0x9c7   :  { %4839 = vmatpush3.bf16.msra.mxu1 %v5415_v47 }
 0x9c8   :  { %4840 = vmatprep.subr.bf16.mxu1 %v5319_v1 }
 0x9cb   :  { %4842 = vmatpush3.bf16.msra.mxu1 %v5419_v50 }
 0x9cc   :  { %4859 = vmatprep.subr.bf16.mxu1 %v5319_v1 }
 0xa91   :  { %v777_v37 = vpop.f32.mrb[10].mxu1 }
 0xa92   :  { %v781_v24 = vadd.f32 %v777_v37, %v5463_v9  ;;  %v4384_v38 = vpop.f32.mrb[11].mxu1 }
 0xa93   :  { %v1047_v38 = vld [vmem:[#allocation5 + $0x40] sm:$0xff] }
 0xa94   :  { %v782_v39 = vadd.f32 %v781_v24, %v5468_v16  ;;  %v1050_v24 = vld [vmem:[#allocation5 + $0x58] sm:$0xff] }
 0xa96   :  { %5106 = vtanh.f32 %v782_v39  ;;  %v4015_v30 = vmul.f32 -1.442695, %v782_v39 }
 0xa98   :  { %5108 = vpow2.f32 %v4015_v30  ;;  %v1052_v30 = vld [vmem:[#allocation5 + $0x68] sm:$0xff] }
 0xaa0   :  { %v5107_v40 = vpop.eup %5106 }
 0xaa1   :  { %792 = vrot.lane.b32.xlu0 %v5107_v40, %s5322_s0  ;;  %v1049_v40 = vld [vmem:[#allocation5 + $0x50] sm:$0xff] }
 0xaa2   :  { %v5109_v41 = vpop.eup %5108 }
 0xaa3   :  { %v786_v47 = vadd.f32 1.0, %v5109_v41  ;;  %v1054_v41 = vld [vmem:[#allocation5 + $0x78] sm:$0xff] }
 0xaa5   :  { %5110 = vrcp.f32 %v786_v47  ;;  %v4845_v47 = vpack.c.bf16 %v1049_v40, %v1047_v38 }
 0xaaf   :  { %v5111_v42 = vpop.eup %5110 }
 0xab0   :  { %v790_v44 = vmul.f32 %v5111_v42, %v683_v6 }
 0xb13   :  { %v793_v43 = vpop.permute.xlu0 %792 }
 0xb14   :  { %v795_v50 = vmul.f32 %v5111_v42, %v793_v43  ;;  %v1051_v43 = vld [vmem:[#allocation5 + $0x60] sm:$0xff] }
 0xb16   :  { %797 = vrot.lane.b32.xlu1 %v795_v50, %s5323_s8  ;;  %v1053_v50 = vld [vmem:[#allocation5 + $0x70] sm:$0xff] }
 0xb88   :  { %v798_v45 = vpop.permute.xlu1 %797 }
 0xb89   :  { %v800_v9 = vadd.f32 %v798_v45, %v790_v44  ;;  %v4849_v44 = vpack.c.bf16 %v1053_v50, %v1051_v43 }
 0xb8b   :  { %5112 = vtanh.f32 %v800_v9 }
 0xb95   :  { %v5113_v46 = vpop.eup %5112 }
 0xb96   :  { %803 = vrot.lane.b32.xlu0 %v5113_v46, %s5322_s0  ;;  %v1058_v46 = vld [vmem:[#allocation5 + $0x98] sm:$0xff] }
 0xc08   :  { %v804_v48 = vpop.permute.xlu0 %803 }
 0xc09   :  { %v806_v49 = vmul.f32 %v5111_v42, %v804_v48  ;;  %v4847_v42 = vpack.c.bf16 %v1054_v41, %v1052_v30  ;;  %v5637_v30 = vld [vmem:[#allocation5 + $0x1d0] sm:$0xff] }
 0xc0b   :  { %812 = vrot.lane.b32.xlu0 %v806_v49, %s5322_s0  ;;  %808 = vrot.lane.b32.xlu1 %v806_v49, %s5323_s8  ;;  %v1055_v49 = vld [vmem:[#allocation5 + $0x80] sm:$0xff] }
 0xc7d   :  { %v813_v53 = vpop.permute.xlu0 %812  ;;  %v809_v54 = vpop.permute.xlu1 %808 }
 0xc7e   :  { %815 = vst.msk [vmem:[#allocation2 + $0x4] sm:$0xf0] %vm469_vm11, %v813_v53  ;;  %v817_v55 = vsel %vm256_vm10, %v809_v54, %v813_v53  ;;  %v1057_v53 = vld [vmem:[#allocation5 + $0x90] sm:$0xff] }
 0xc7f   :  { %811 = vst.msk [vmem:[#allocation2 + $0xc] sm:$0xf] %vm464_vm12, %v809_v54  ;;  %v818_v56 = vmul.f32 %v817_v55, %v5422_v51  ;;  %v4853_v54 = vpack.c.bf16 %v1057_v53, %v1055_v49  ;;  %v1155_v55 = vld [vmem:[#allocation5 + $0x140] sm:$0xff] }
 0xc81   :  { %4402 = vmatmul.mubr.msk.f32.vlgmr.msra.gmra.mrb[10].mxu0 %vm360_vm9, %v818_v56  ;;  %v1156_v56 = vld [vmem:[#allocation5 + $0x150] sm:$0xff] }
 0xc82   :  { %1136 = vmatprep.mubr.f32.mxu0 %v5321_v8 }
 0xd54   :  { %v888_v57 = vpop.f32.mrb[10].mxu0 }
 0xd55   :  { %v892_v59 = vadd.f32 %v888_v57, %v5466_v13  ;;  %v4403_v61 = vpop.f32.mrb[11].mxu0  ;;  %v5573_v57 = vpack.c.bf16 %v1156_v56, %v1155_v55 }
 0xd56   :  { %v1062_v61 = vld [vmem:[#allocation5 + $0xb8] sm:$0xff] }
 0xd57   :  { %v893_v62 = vadd.f32 %v892_v59, %v5468_v16  ;;  %v1060_v59 = vld [vmem:[#allocation5 + $0xa8] sm:$0xff] }
 0xd59   :  { %5114 = vtanh.f32 %v893_v62  ;;  %v4017_v0 = vmul.f32 -1.442695, %v893_v62  ;;  %v1059_v62 = vld [vmem:[#allocation5 + $0xa0] sm:$0xff] }
 0xd5b   :  { %5116 = vpow2.f32 %v4017_v0  ;;  %v1061_v0 = vld [vmem:[#allocation5 + $0xb0] sm:$0xff] }
 0xd63   :  { %v5115_v63 = vpop.eup %5114 }
 0xd64   :  { %903 = vrot.lane.b32.xlu1 %v5115_v63, %s5322_s0  ;;  %v4855_v63 = vpack.c.bf16 %v1062_v61, %v1060_v59 }
 0xd65   :  { %v5117_v2 = vpop.eup %5116 }
 0xd66   :  { %v897_v3 = vadd.f32 1.0, %v5117_v2  ;;  %v1157_v2 = vld [vmem:[#allocation5 + $0x160] sm:$0xff] }
 0xd68   :  { %5118 = vrcp.f32 %v897_v3  ;;  %v1158_v3 = vld [vmem:[#allocation5 + $0x170] sm:$0xff] }
 0xd72   :  { %v5119_v4 = vpop.eup %5118 }
 0xd73   :  { %v901_v10 = vmul.f32 %v5119_v4, %v800_v9  ;;  %v1056_v9 = vld [vmem:[#allocation5 + $0x88] sm:$0xff] }
 0xd74   :  { %v4851_v48 = vpack.c.bf16 %v1058_v46, %v1056_v9 }
 0xdd6   :  { %v904_v5 = vpop.permute.xlu1 %903 }
 0xdd7   :  { %v906_v7 = vmul.f32 %v5119_v4, %v904_v5  ;;  %v5576_v5 = vpack.c.bf16 %v1158_v3, %v1157_v2 }
 0xdd9   :  { %908 = vrot.lane.b32.xlu0 %v906_v7, %s5323_s8  ;;  %v1159_v7 = vld [vmem:[#allocation5 + $0x180] sm:$0xff] }
 0xe4b   :  { %v909_v11 = vpop.permute.xlu0 %908 }
 0xe4c   :  { %v911_v13 = vadd.f32 %v909_v11, %v901_v10  ;;  %v1160_v10 = vld [vmem:[#allocation5 + $0x190] sm:$0xff] }
 0xe4d   :  { %v5582_v11 = vpack.c.bf16 %v1160_v10, %v1159_v7 }
 0xe4e   :  { %5120 = vtanh.f32 %v911_v13 }
 0xe58   :  { %v5121_v12 = vpop.eup %5120 }
 0xe59   :  { %914 = vrot.lane.b32.xlu1 %v5121_v12, %s5322_s0 }
 0xecb   :  { %v915_v14 = vpop.permute.xlu1 %914 }
 0xecc   :  { %v917_v15 = vmul.f32 %v5119_v4, %v915_v14  ;;  %v4857_v4 = vpack.c.bf16 %v1061_v0, %v1059_v62  ;;  %v1161_v14 = vld [vmem:[#allocation5 + $0x1a0] sm:$0xff] }
 0xece   :  { %923 = vrot.lane.b32.xlu1 %v917_v15, %s5322_s0  ;;  %919 = vrot.lane.b32.xlu0 %v917_v15, %s5323_s8  ;;  %v1162_v15 = vld [vmem:[#allocation5 + $0x1b0] sm:$0xff] }
 0xf40   :  { %v924_v17 = vpop.permute.xlu1 %923  ;;  %v920_v20 = vpop.permute.xlu0 %919 }
 0xf41   :  { %926 = vst.msk [vmem:[#allocation2] sm:$0xf0] %vm469_vm11, %v924_v17  ;;  %v934_v22 = vsel %vm256_vm10, %v920_v20, %v924_v17  ;;  %v5588_v17 = vpack.c.bf16 %v1162_v15, %v1161_v14 }
 0xf42   :  { %922 = vst.msk [vmem:[#allocation2 + $0x10] sm:$0xf] %vm464_vm12, %v920_v20  ;;  %v935_v23 = vmul.f32 %v934_v22, %v5422_v51 }
 0xf44   :  { %4421 = vmatmul.mubr.msk.f32.vlgmr.msra.gmra.mrb[12].mxu1 %vm360_vm9, %v935_v23  ;;  %v1045_v23 = vld [vmem:[#allocation2 + $0x8] sm:$0xff] }
 0xf45   :  { %4439 = vmatprep.mubr.msk.f32.mxu1 %vm5320_vm0, %v5321_v8  ;;  %4861 = vmatpush3.bf16.msra.mxu1 %v5573_v57 }
 0xf46   :  { %4862 = vmatprep.subr.bf16.mxu1 %v5319_v1 }
 0xf49   :  { %4864 = vmatpush3.bf16.msra.mxu1 %v5576_v5 }
 0xf4a   :  { %4865 = vmatprep.subr.bf16.mxu1 %v5319_v1 }
 0xf4d   :  { %4867 = vmatpush3.bf16.msra.mxu1 %v5582_v11 }
 0xf4e   :  { %4868 = vmatprep.subr.bf16.mxu1 %v5319_v1 }
 0xf51   :  { %4870 = vmatpush3.bf16.msra.mxu1 %v5588_v17 }
 0xf52   :  { %4883 = vmatprep.subr.bf16.mxu1 %v5319_v1 }
 0xf54   :  { %4440 = vmatmul.mubr.msk.f32.vlgmr.msra.gmra.mrb[14].mxu1 %vm360_vm9, %v5425_v52 }
 0xf55   :  { %4885 = vmatpush3.bf16.msra.mxu1 %v5573_v57  ;;  %4477 = vmatprep.mubr.msk.f32.mxu1 %vm5320_vm0, %v5321_v8 }
 0xf56   :  { %4886 = vmatprep.subr.bf16.mxu1 %v5319_v1 }
 0xf59   :  { %4888 = vmatpush3.bf16.msra.mxu1 %v5576_v5 }
 0xf5a   :  { %4889 = vmatprep.subr.bf16.mxu1 %v5319_v1 }
 0xf5d   :  { %4891 = vmatpush3.bf16.msra.mxu1 %v5582_v11 }
 0xf5e   :  { %4892 = vmatprep.subr.bf16.mxu1 %v5319_v1 }
 0xf61   :  { %4894 = vmatpush3.bf16.msra.mxu1 %v5588_v17 }
 0xf62   :  { %4907 = vmatprep.subr.bf16.mxu1 %v5319_v1 }
0x1017   :  { %v1005_v25 = vpop.f32.mrb[12].mxu1 }
0x1018   :  { %v1009_v26 = vadd.f32 %v1005_v25, %v5472_v21  ;;  %v4422_v27 = vpop.f32.mrb[13].mxu1 }
0x101a   :  { %v1010_v28 = vadd.f32 %v1009_v26, %v5468_v16  ;;  %v1048_v16 = vld [vmem:[#allocation5 + $0x48] sm:$0xff] }
0x101b   :  { %v4843_v39 = vpack.c.bf16 %v1050_v24, %v1048_v16 }
0x101c   :  { %5122 = vtanh.f32 %v1010_v28  ;;  %v4019_v29 = vmul.f32 -1.442695, %v1010_v28 }
0x101d   :  { %4844 = vmatprep.subr.bf16.mxu0 %v4843_v39 }
0x101e   :  { %5124 = vpow2.f32 %v4019_v29  ;;  %4846 = vmatpush1.bf16.msra.mxu0 %v4845_v47 }
0x101f   :  { %4848 = vmatprep.subr.bf16.mxu0 %v4847_v42 }
0x1022   :  { %4850 = vmatpush1.bf16.msra.mxu0 %v4849_v44 }
0x1023   :  { %4852 = vmatprep.subr.bf16.mxu0 %v4851_v48 }
0x1026   :  { %v5123_v6 = vpop.eup %5122  ;;  %4854 = vmatpush1.bf16.msra.mxu0 %v4853_v54 }
0x1027   :  { %1020 = vrot.lane.b32.xlu0 %v5123_v6, %s5322_s0  ;;  %4856 = vmatprep.subr.bf16.mxu0 %v4855_v63  ;;  %v1231_v26 = vpop.f32.mrb[14].mxu1 }
0x1028   :  { %v5125_v31 = vpop.eup %5124  ;;  %v4441_v27 = vpop.f32.mrb[15].mxu1 }
0x1029   :  { %v1014_v32 = vadd.f32 1.0, %v5125_v31 }
0x102a   :  { %4858 = vmatpush1.bf16.msra.mxu0 %v4857_v4 }
0x102b   :  { %5126 = vrcp.f32 %v1014_v32  ;;  %4871 = vmatprep.subr.bf16.mxu0 %v5319_v1 }
0x1035   :  { %v5127_v33 = vpop.eup %5126 }
0x1036   :  { %v1018_v36 = vmul.f32 %v5127_v33, %v911_v13 }
0x1099   :  { %v1021_v34 = vpop.permute.xlu0 %1020 }
0x109a   :  { %v1023_v35 = vmul.f32 %v5127_v33, %v1021_v34 }
0x109c   :  { %1025 = vrot.lane.b32.xlu1 %v1023_v35, %s5323_s8 }
0x110e   :  { %v1026_v37 = vpop.permute.xlu1 %1025 }
0x110f   :  { %v5569_v21 = vadd.f32 %v1026_v37, %v1018_v36 }
0x1111   :  { %5128 = vtanh.f32 %v5569_v21 }
0x111b   :  { %v5129_v45 = vpop.eup %5128 }
0x111c   :  { %1031 = vrot.lane.b32.xlu0 %v5129_v45, %s5322_s0 }
0x118e   :  { %v1032_v13 = vpop.permute.xlu0 %1031 }
0x118f   :  { %v5585_v12 = vmul.f32 %v5127_v33, %v1032_v13 }
0x1191   :  { %1036 = vrot.lane.b32.xlu0 %v5585_v12, %s5323_s8  ;;  %1040 = vrot.lane.b32.xlu1 %v5585_v12, %s5322_s0 }
0x1203   :  { %v5608_v52 = vpop.permute.xlu0 %1036  ;;  %v1041_v20 = vpop.permute.xlu1 %1040 }
0x1204   :  { %1039 = vst.msk [vmem:[#allocation2 + $0x14] sm:$0xf] %vm464_vm12, %v5608_v52 }
0x1205   :  { %1043 = vst.msk [vmem:[#allocation2 - $0x4] sm:$0xf0] %vm469_vm11, %v1041_v20 }
0x120b   :  { %v1046_v25 = vld [vmem:[#allocation2 + $0x10] sm:$0xff] }
0x120c   :  { %v1044_v22 = vld [vmem:[#allocation2] sm:$0xff] }
0x120d   :  { %4020 = vmatmul.mubr.msk.f32.vlgmr.msra.gmra.mrb[12].mxu0 %vm360_vm9, %v1044_v22 }
0x120e   :  { %1142 = vmatprep.mubr.f32.mxu0 %v5321_v8  ;;  %4873 = vmatpush3.bf16.msra.mxu0 %v5573_v57 }
0x120f   :  { %4874 = vmatprep.subr.bf16.mxu0 %v5319_v1 }
0x1211   :  { %4021 = vmatmul.mubr.msk.f32.gmra.mrb[14].mxu0 %vm360_vm9, %v1045_v23 }
0x1212   :  { %1148 = vmatprep.mubr.f32.mxu0 %v5321_v8  ;;  %4876 = vmatpush3.bf16.msra.mxu0 %v5576_v5 }
0x1213   :  { %4877 = vmatprep.subr.bf16.mxu0 %v5319_v1 }
0x1215   :  { %4022 = vmatmul.mubr.msk.f32.gmra.mrb[16].mxu0 %vm360_vm9, %v1046_v25 }
0x1216   :  { %4879 = vmatpush3.bf16.msra.mxu0 %v5582_v11  ;;  %4458 = vmatprep.mubr.msk.f32.mxu0 %vm5320_vm0, %v5321_v8 }
0x1217   :  { %4880 = vmatprep.subr.bf16.mxu0 %v5319_v1 }
0x121a   :  { %4882 = vmatpush3.bf16.msra.mxu0 %v5588_v17 }
0x121b   :  { %4895 = vmatprep.subr.bf16.mxu0 %v5319_v1 }
0x12e0   :  { %v1138_v28 = vpop.f32.mrb[12].mxu0 }
0x12e1   :  { %v1140_v6 = vpop.f32.mrb[13].mxu0  ;;  %v1271_v39 = vrot.slane %v1138_v28, 4 }
0x12e2   :  { %v1730_v37 = vrot.slane %v1140_v6, 4 }
0x12e4   :  { %v1144_v29 = vpop.f32.mrb[14].mxu0 }
0x12e5   :  { %v1499_v31 = vrot.slane %v1144_v29, 4  ;;  %v1146_v32 = vpop.f32.mrb[15].mxu0 }
0x12e6   :  { %v1502_v33 = vrot.slane %v1146_v32, 4  ;;  %v5629_v34 = vsel %vm67_vm1, %v1144_v29, %v1146_v32 }
0x12e8   :  { %v1150_v35 = vpop.f32.mrb[16].mxu0  ;;  %v5632_v36 = vsel %vm67_vm1, %v1499_v31, %v1502_v33 }
0x12e9   :  { %v1727_v16 = vrot.slane %v1150_v35, 4  ;;  %v1152_v24 = vpop.f32.mrb[17].mxu0  ;;  %v5635_v38 = vsel %vm67_vm1, %v1150_v35, %v1140_v6 }
0x12ea   :  { %v1274_v40 = vrot.slane %v1152_v24, 4  ;;  %v1164_v41 = vsel %vm67_vm1, %v1138_v28, %v1152_v24 }
0x12eb   :  { %v1235_v47 = vadd.f32 %v1231_v26, %v1164_v41  ;;  %v5641_v42 = vsel %vm67_vm1, %v1727_v16, %v1730_v37 }
0x12ec   :  { %v1276_v43 = vsel %vm67_vm1, %v1271_v39, %v1274_v40 }
0x12ed   :  { %v1236_v50 = vadd.f32 %v1235_v47, %v5637_v30 }
0x12ef   :  { %5130 = vtanh.f32 %v1236_v50  ;;  %v4024_v45 = vmul.f32 -1.442695, %v1236_v50 }
0x12f1   :  { %5132 = vpow2.f32 %v4024_v45 }
0x12f9   :  { %v5131_v44 = vpop.eup %5130 }
0x12fa   :  { %1246 = vrot.lane.b32.xlu1 %v5131_v44, %s5322_s0 }
0x12fb   :  { %v5133_v9 = vpop.eup %5132 }
0x12fc   :  { %v1240_v46 = vadd.f32 1.0, %v5133_v9 }
0x12fe   :  { %5134 = vrcp.f32 %v1240_v46 }
0x1308   :  { %v5135_v48 = vpop.eup %5134 }
0x1309   :  { %v1244_v54 = vmul.f32 0.0, %v5135_v48 }
0x136c   :  { %v1247_v49 = vpop.permute.xlu1 %1246 }
0x136d   :  { %v1249_v53 = vmul.f32 %v5135_v48, %v1247_v49 }
0x136f   :  { %1251 = vrot.lane.b32.xlu0 %v1249_v53, %s5323_s8 }
0x13e1   :  { %v1252_v55 = vpop.permute.xlu0 %1251 }
0x13e2   :  { %v1254_v56 = vadd.f32 %v1252_v55, %v1244_v54 }
0x13e4   :  { %5136 = vtanh.f32 %v1254_v56 }
0x13ee   :  { %v5137_v59 = vpop.eup %5136 }
0x13ef   :  { %1257 = vrot.lane.b32.xlu1 %v5137_v59, %s5322_s0 }
0x1461   :  { %v1258_v61 = vpop.permute.xlu1 %1257 }
0x1462   :  { %v1260_v62 = vmul.f32 %v5135_v48, %v1258_v61 }
0x1464   :  { %1266 = vrot.lane.b32.xlu1 %v1260_v62, %s5322_s0  ;;  %1262 = vrot.lane.b32.xlu0 %v1260_v62, %s5323_s8 }
0x14d6   :  { %v1267_v63 = vpop.permute.xlu1 %1266  ;;  %v1263_v0 = vpop.permute.xlu0 %1262 }
0x14d7   :  { %1269 = vst.msk [vmem:[#allocation3 + $0x10] sm:$0xf0] %vm469_vm11, %v1267_v63  ;;  %v1277_v2 = vsel %vm256_vm10, %v1263_v0, %v1267_v63 }
0x14d8   :  { %1265 = vst.msk [vmem:[#allocation3] sm:$0xf] %vm464_vm12, %v1263_v0  ;;  %v1278_v3 = vmul.f32 %v1277_v2, %v5422_v51 }
0x14da   :  { %4459 = vmatmul.mubr.msk.f32.vlgmr.msra.gmra.mrb[18].mxu0 %vm360_vm9, %v1278_v3 }
0x14db   :  { %4897 = vmatpush3.bf16.msra.mxu0 %v5573_v57  ;;  %4496 = vmatprep.mubr.msk.f32.mxu0 %vm5320_vm0, %v5321_v8 }
0x14dc   :  { %4898 = vmatprep.subr.bf16.mxu0 %v5319_v1 }
0x14df   :  { %4900 = vmatpush3.bf16.msra.mxu0 %v5576_v5 }
0x14e0   :  { %4901 = vmatprep.subr.bf16.mxu0 %v5319_v1 }
0x14e3   :  { %4903 = vmatpush3.bf16.msra.mxu0 %v5582_v11 }
0x14e4   :  { %4904 = vmatprep.subr.bf16.mxu0 %v5319_v1 }
0x14e7   :  { %4906 = vmatpush3.bf16.msra.mxu0 %v5588_v17 }
0x14e8   :  { %4919 = vmatprep.subr.bf16.mxu0 %v5319_v1 }
0x15ad   :  { %v1348_v4 = vpop.f32.mrb[18].mxu0 }
0x15ae   :  { %v1352_v7 = vadd.f32 %v1348_v4, %v1276_v43  ;;  %v4460_v10 = vpop.f32.mrb[19].mxu0 }
0x15b0   :  { %v1353_v13 = vadd.f32 %v1352_v7, %v5637_v30 }
0x15b2   :  { %5138 = vtanh.f32 %v1353_v13  ;;  %v4026_v15 = vmul.f32 -1.442695, %v1353_v13 }
0x15b4   :  { %5140 = vpow2.f32 %v4026_v15 }
0x15bc   :  { %v5139_v14 = vpop.eup %5138 }
0x15bd   :  { %1363 = vrot.lane.b32.xlu0 %v5139_v14, %s5322_s0 }
0x15be   :  { %v5141_v20 = vpop.eup %5140 }
0x15bf   :  { %v1357_v22 = vadd.f32 1.0, %v5141_v20 }
0x15c1   :  { %5142 = vrcp.f32 %v1357_v22 }
0x15cb   :  { %v5143_v23 = vpop.eup %5142 }
0x15cc   :  { %v1361_v27 = vmul.f32 %v5143_v23, %v1254_v56 }
0x162f   :  { %v1364_v25 = vpop.permute.xlu0 %1363 }
0x1630   :  { %v1366_v26 = vmul.f32 %v5143_v23, %v1364_v25 }
0x1632   :  { %1368 = vrot.lane.b32.xlu1 %v1366_v26, %s5323_s8  ;;  %v5266_v26 = vld [vmem:[#allocation5 + $0x3d0] sm:$0xff] }
0x16a4   :  { %v1369_v28 = vpop.permute.xlu1 %1368 }
0x16a5   :  { %v1371_v6 = vadd.f32 %v1369_v28, %v1361_v27 }
0x16a7   :  { %5144 = vtanh.f32 %v1371_v6 }
0x16b1   :  { %v5145_v29 = vpop.eup %5144 }
0x16b2   :  { %1374 = vrot.lane.b32.xlu0 %v5145_v29, %s5322_s0 }
0x1724   :  { %v1375_v31 = vpop.permute.xlu0 %1374 }
0x1725   :  { %v1377_v32 = vmul.f32 %v5143_v23, %v1375_v31 }
0x1727   :  { %1383 = vrot.lane.b32.xlu0 %v1377_v32, %s5322_s0  ;;  %1379 = vrot.lane.b32.xlu1 %v1377_v32, %s5323_s8 }
0x1799   :  { %v1384_v33 = vpop.permute.xlu0 %1383  ;;  %v1380_v35 = vpop.permute.xlu1 %1379 }
0x179a   :  { %1386 = vst.msk [vmem:[#allocation3 + $0xc] sm:$0xf0] %vm469_vm11, %v1384_v33  ;;  %v1388_v37 = vsel %vm256_vm10, %v1380_v35, %v1384_v33 }
0x179b   :  { %1382 = vst.msk [vmem:[#allocation3 + $0x4] sm:$0xf] %vm464_vm12, %v1380_v35  ;;  %v1389_v16 = vmul.f32 %v1388_v37, %v5422_v51 }
0x179d   :  { %4478 = vmatmul.mubr.msk.f32.vlgmr.msra.gmra.mrb[16].mxu1 %vm360_vm9, %v1389_v16 }
0x179e   :  { %4909 = vmatpush3.bf16.msra.mxu1 %v5573_v57  ;;  %4515 = vmatprep.mubr.msk.f32.mxu1 %vm5320_vm0, %v5321_v8 }
0x179f   :  { %4910 = vmatprep.subr.bf16.mxu1 %v5319_v1 }
0x17a2   :  { %4912 = vmatpush3.bf16.msra.mxu1 %v5576_v5 }
0x17a3   :  { %4913 = vmatprep.subr.bf16.mxu1 %v5319_v1 }
0x17a6   :  { %4915 = vmatpush3.bf16.msra.mxu1 %v5582_v11 }
0x17a7   :  { %4916 = vmatprep.subr.bf16.mxu1 %v5319_v1 }
0x17aa   :  { %4918 = vmatpush3.bf16.msra.mxu1 %v5588_v17 }
0x17ab   :  { %4931 = vmatprep.subr.bf16.mxu1 %v5319_v1 }
0x1870   :  { %v1459_v24 = vpop.f32.mrb[16].mxu1 }
0x1871   :  { %v1463_v39 = vadd.f32 %v1459_v24, %v5629_v34  ;;  %v4479_v40 = vpop.f32.mrb[17].mxu1 }
0x1873   :  { %v1464_v41 = vadd.f32 %v1463_v39, %v5637_v30 }
0x1875   :  { %5146 = vtanh.f32 %v1464_v41  ;;  %v4028_v43 = vmul.f32 -1.442695, %v1464_v41 }
0x1877   :  { %5148 = vpow2.f32 %v4028_v43 }
0x187f   :  { %v5147_v47 = vpop.eup %5146 }
0x1880   :  { %1474 = vrot.lane.b32.xlu1 %v5147_v47, %s5322_s0 }
0x1881   :  { %v5149_v50 = vpop.eup %5148 }
0x1882   :  { %v1468_v44 = vadd.f32 1.0, %v5149_v50 }
0x1884   :  { %5150 = vrcp.f32 %v1468_v44 }
0x188e   :  { %v5151_v45 = vpop.eup %5150 }
0x188f   :  { %v1472_v48 = vmul.f32 %v5151_v45, %v1371_v6 }
0x18f2   :  { %v1475_v9 = vpop.permute.xlu1 %1474 }
0x18f3   :  { %v1477_v46 = vmul.f32 %v5151_v45, %v1475_v9 }
0x18f5   :  { %1479 = vrot.lane.b32.xlu0 %v1477_v46, %s5323_s8 }
0x1967   :  { %v1480_v49 = vpop.permute.xlu0 %1479 }
0x1968   :  { %v1482_v34 = vadd.f32 %v1480_v49, %v1472_v48 }
0x196a   :  { %5152 = vtanh.f32 %v1482_v34 }
0x1974   :  { %v5153_v53 = vpop.eup %5152 }
0x1975   :  { %1485 = vrot.lane.b32.xlu1 %v5153_v53, %s5322_s0 }
0x19e7   :  { %v1486_v54 = vpop.permute.xlu1 %1485 }
0x19e8   :  { %v1488_v55 = vmul.f32 %v5151_v45, %v1486_v54 }
0x19ea   :  { %1494 = vrot.lane.b32.xlu1 %v1488_v55, %s5322_s0  ;;  %1490 = vrot.lane.b32.xlu0 %v1488_v55, %s5323_s8 }
0x1a5c   :  { %v1495_v56 = vpop.permute.xlu1 %1494  ;;  %v1491_v59 = vpop.permute.xlu0 %1490 }
0x1a5d   :  { %1497 = vst.msk [vmem:[#allocation3 + $0x8] sm:$0xf0] %vm469_vm11, %v1495_v56  ;;  %v1505_v61 = vsel %vm256_vm10, %v1491_v59, %v1495_v56 }
0x1a5e   :  { %1493 = vst.msk [vmem:[#allocation3 + $0x8] sm:$0xf] %vm464_vm12, %v1491_v59  ;;  %v1506_v62 = vmul.f32 %v1505_v61, %v5422_v51 }
0x1a60   :  { %4497 = vmatmul.mubr.msk.f32.vlgmr.msra.gmra.mrb[20].mxu0 %vm360_vm9, %v1506_v62 }
0x1a61   :  { %4921 = vmatpush3.bf16.msra.mxu0 %v5573_v57  ;;  %4534 = vmatprep.mubr.msk.f32.mxu0 %vm5320_vm0, %v5321_v8 }
0x1a62   :  { %4922 = vmatprep.subr.bf16.mxu0 %v5319_v1 }
0x1a65   :  { %4924 = vmatpush3.bf16.msra.mxu0 %v5576_v5 }
0x1a66   :  { %4925 = vmatprep.subr.bf16.mxu0 %v5319_v1 }
0x1a69   :  { %4927 = vmatpush3.bf16.msra.mxu0 %v5582_v11 }
0x1a6a   :  { %4928 = vmatprep.subr.bf16.mxu0 %v5319_v1 }
0x1a6d   :  { %4930 = vmatpush3.bf16.msra.mxu0 %v5588_v17 }
0x1a6e   :  { %4943 = vmatprep.subr.bf16.mxu0 %v5319_v1 }
0x1b33   :  { %v1576_v51 = vpop.f32.mrb[20].mxu0 }
0x1b34   :  { %v1580_v57 = vadd.f32 %v1576_v51, %v5632_v36  ;;  %v4498_v63 = vpop.f32.mrb[21].mxu0 }
0x1b36   :  { %v1581_v0 = vadd.f32 %v1580_v57, %v5637_v30 }
0x1b38   :  { %5154 = vtanh.f32 %v1581_v0  ;;  %v4030_v5 = vmul.f32 -1.442695, %v1581_v0  ;;  %v1875_v0 = vld [vmem:[#allocation5 + $0x1e0] sm:$0xff] }
0x1b3a   :  { %5156 = vpow2.f32 %v4030_v5  ;;  %v1877_v5 = vld [vmem:[#allocation5 + $0x200] sm:$0xff] }
0x1b42   :  { %v5155_v2 = vpop.eup %5154 }
0x1b43   :  { %1591 = vrot.lane.b32.xlu0 %v5155_v2, %s5322_s0  ;;  %v1876_v2 = vld [vmem:[#allocation5 + $0x1f0] sm:$0xff] }
0x1b44   :  { %v5157_v3 = vpop.eup %5156 }
0x1b45   :  { %v1585_v11 = vadd.f32 1.0, %v5157_v3  ;;  %v4932_v3 = vpack.c.bf16 %v1876_v2, %v1875_v0  ;;  %v1861_v0 = vrot.slane %v5569_v21, 4 }
0x1b47   :  { %5158 = vrcp.f32 %v1585_v11  ;;  %v1878_v11 = vld [vmem:[#allocation5 + $0x210] sm:$0xff] }
0x1b51   :  { %v5159_v4 = vpop.eup %5158 }
0x1b52   :  { %v1589_v10 = vmul.f32 %v5159_v4, %v1482_v34 }
0x1bb5   :  { %v1592_v7 = vpop.permute.xlu0 %1591 }
0x1bb6   :  { %v1594_v17 = vmul.f32 %v5159_v4, %v1592_v7  ;;  %v1879_v7 = vld [vmem:[#allocation5 + $0x220] sm:$0xff] }
0x1bb8   :  { %1596 = vrot.lane.b32.xlu1 %v1594_v17, %s5323_s8  ;;  %v1880_v17 = vld [vmem:[#allocation5 + $0x230] sm:$0xff] }
0x1c2a   :  { %v1597_v13 = vpop.permute.xlu1 %1596 }
0x1c2b   :  { %v1599_v36 = vadd.f32 %v1597_v13, %v1589_v10  ;;  %v4938_v10 = vpack.c.bf16 %v1880_v17, %v1879_v7  ;;  %v1881_v13 = vld [vmem:[#allocation5 + $0x240] sm:$0xff] }
0x1c2c   :  { %v2993_v17 = vld [vmem:[#allocation5 + $0x460] sm:$0xff] }
0x1c2d   :  { %5160 = vtanh.f32 %v1599_v36 }
0x1c37   :  { %v5161_v14 = vpop.eup %5160 }
0x1c38   :  { %1602 = vrot.lane.b32.xlu0 %v5161_v14, %s5322_s0 }
0x1caa   :  { %v1603_v15 = vpop.permute.xlu0 %1602 }
0x1cab   :  { %v1605_v20 = vmul.f32 %v5159_v4, %v1603_v15  ;;  %v4935_v4 = vpack.c.bf16 %v1878_v11, %v1877_v5 }
0x1cad   :  { %1611 = vrot.lane.b32.xlu0 %v1605_v20, %s5322_s0  ;;  %1607 = vrot.lane.b32.xlu1 %v1605_v20, %s5323_s8 }
0x1d1f   :  { %v1612_v22 = vpop.permute.xlu0 %1611  ;;  %v1608_v23 = vpop.permute.xlu1 %1607 }
0x1d20   :  { %1614 = vst.msk [vmem:[#allocation3 + $0x4] sm:$0xf0] %vm469_vm11, %v1612_v22  ;;  %v1616_v25 = vsel %vm256_vm10, %v1608_v23, %v1612_v22  ;;  %v1843_v22 = vrot.slane %v5585_v12, 4 }
0x1d21   :  { %1610 = vst.msk [vmem:[#allocation3 + $0xc] sm:$0xf] %vm464_vm12, %v1608_v23  ;;  %v1617_v27 = vmul.f32 %v5266_v26, %v1616_v25  ;;  %v1957_v25 = vld [vmem:[#allocation5 + $0x260] sm:$0xff] }
0x1d23   :  { %4516 = vmatmul.mubr.msk.f32.vlgmr.msra.gmra.mrb[18].mxu1 %vm360_vm9, %v1617_v27  ;;  %v1959_v27 = vld [vmem:[#allocation5 + $0x280] sm:$0xff] }
0x1d24   :  { %4553 = vmatprep.mubr.msk.f32.mxu1 %vm5320_vm0, %v5321_v8  ;;  %4933 = vmatpush3.bf16.msra.mxu1 %v4932_v3 }
0x1d25   :  { %4934 = vmatprep.subr.bf16.mxu1 %v5319_v1 }
0x1d28   :  { %4936 = vmatpush3.bf16.msra.mxu1 %v4935_v4 }
0x1d29   :  { %4937 = vmatprep.subr.bf16.mxu1 %v5319_v1 }
0x1d2c   :  { %4939 = vmatpush3.bf16.msra.mxu1 %v4938_v10  ;;  %v2994_v10 = vld [vmem:[#allocation5 + $0x470] sm:$0xff] }
0x1d2d   :  { %4940 = vmatprep.subr.bf16.mxu1 %v5319_v1 }
0x1df6   :  { %v1687_v28 = vpop.f32.mrb[18].mxu1 }
0x1df7   :  { %v1691_v6 = vadd.f32 %v1687_v28, %v5635_v38  ;;  %v4517_v29 = vpop.f32.mrb[19].mxu1 }
0x1df9   :  { %v1692_v31 = vadd.f32 %v1691_v6, %v5637_v30  ;;  %v1960_v6 = vld [vmem:[#allocation5 + $0x290] sm:$0xff] }
0x1dfa   :  { %v4947_v29 = vpack.c.bf16 %v1960_v6, %v1959_v27 }
0x1dfb   :  { %5162 = vtanh.f32 %v1692_v31  ;;  %v4032_v33 = vmul.f32 -1.442695, %v1692_v31  ;;  %v1961_v31 = vld [vmem:[#allocation5 + $0x2a0] sm:$0xff] }
0x1dfd   :  { %5164 = vpow2.f32 %v4032_v33  ;;  %v2040_v33 = vld [vmem:[#allocation3 + $0x8] sm:$0xff] }
0x1e05   :  { %v5163_v32 = vpop.eup %5162 }
0x1e06   :  { %1702 = vrot.lane.b32.xlu1 %v5163_v32, %s5322_s0  ;;  %v1962_v32 = vld [vmem:[#allocation5 + $0x2b0] sm:$0xff] }
0x1e07   :  { %v5165_v35 = vpop.eup %5164  ;;  %v4950_v12 = vpack.c.bf16 %v1962_v32, %v1961_v31 }
0x1e08   :  { %v1696_v37 = vadd.f32 1.0, %v5165_v35  ;;  %v1963_v35 = vld [vmem:[#allocation5 + $0x2c0] sm:$0xff] }
0x1e0a   :  { %5166 = vrcp.f32 %v1696_v37  ;;  %v1964_v37 = vld [vmem:[#allocation5 + $0x2d0] sm:$0xff] }
0x1e14   :  { %v5167_v16 = vpop.eup %5166 }
0x1e15   :  { %v1700_v40 = vmul.f32 %v5167_v16, %v1599_v36  ;;  %v1882_v36 = vld [vmem:[#allocation5 + $0x250] sm:$0xff] }
0x1e16   :  { %v4941_v14 = vpack.c.bf16 %v1882_v36, %v1881_v13  ;;  %v5786_v13 = vpack.c.bf16 %v2994_v10, %v2993_v17  ;;  %v2995_v36 = vld [vmem:[#allocation5 + $0x480] sm:$0xff] }
0x1e18   :  { %4942 = vmatpush3.bf16.msra.mxu1 %v4941_v14  ;;  %v2996_v14 = vld [vmem:[#allocation5 + $0x490] sm:$0xff] }
0x1e19   :  { %4955 = vmatprep.subr.bf16.mxu1 %v5319_v1 }
0x1e78   :  { %v1703_v24 = vpop.permute.xlu1 %1702 }
0x1e79   :  { %v1705_v39 = vmul.f32 %v5167_v16, %v1703_v24  ;;  %v2171_v24 = vld [vmem:[#allocation5 + $0x340] sm:$0xff] }
0x1e7b   :  { %1707 = vrot.lane.b32.xlu0 %v1705_v39, %s5323_s8  ;;  %v2172_v39 = vld [vmem:[#allocation5 + $0x350] sm:$0xff] }
0x1eed   :  { %v1708_v41 = vpop.permute.xlu0 %1707 }
0x1eee   :  { %v1710_v38 = vadd.f32 %v1708_v41, %v1700_v40  ;;  %v4961_v40 = vpack.c.bf16 %v2172_v39, %v2171_v24 }
0x1ef0   :  { %5168 = vtanh.f32 %v1710_v38 }
0x1efa   :  { %v5169_v47 = vpop.eup %5168 }
0x1efb   :  { %1713 = vrot.lane.b32.xlu1 %v5169_v47, %s5322_s0  ;;  %v2057_v47 = vld [vmem:[#allocation5 + $0x300] sm:$0xff] }
0x1f6d   :  { %v1714_v43 = vpop.permute.xlu1 %1713 }
0x1f6e   :  { %v1716_v50 = vmul.f32 %v5167_v16, %v1714_v43  ;;  %v4953_v16 = vpack.c.bf16 %v1964_v37, %v1963_v35  ;;  %v2058_v43 = vld [vmem:[#allocation5 + $0x310] sm:$0xff] }
0x1f70   :  { %1722 = vrot.lane.b32.xlu1 %v1716_v50, %s5322_s0  ;;  %1718 = vrot.lane.b32.xlu0 %v1716_v50, %s5323_s8 }
0x1fe2   :  { %v1723_v44 = vpop.permute.xlu1 %1722  ;;  %v1719_v45 = vpop.permute.xlu0 %1718 }
0x1fe3   :  { %1725 = vst.msk [vmem:[#allocation3] sm:$0xf0] %vm469_vm11, %v1723_v44  ;;  %v1733_v9 = vsel %vm256_vm10, %v1719_v45, %v1723_v44 }
0x1fe4   :  { %1721 = vst.msk [vmem:[#allocation3 + $0x10] sm:$0xf] %vm464_vm12, %v1719_v45  ;;  %v1734_v46 = vmul.f32 %v5266_v26, %v1733_v9  ;;  %v1958_v26 = vld [vmem:[#allocation5 + $0x270] sm:$0xff] }
0x1fe5   :  { %v4944_v28 = vpack.c.bf16 %v1958_v26, %v1957_v25 }
0x1fe6   :  { %4535 = vmatmul.mubr.msk.f32.vlgmr.msra.gmra.mrb[22].mxu0 %vm360_vm9, %v1734_v46  ;;  %v4956_v46 = vpack.c.bf16 %v2058_v43, %v2057_v47 }
0x1fe7   :  { %4572 = vmatprep.mubr.msk.f32.mxu0 %vm5320_vm0, %v5321_v8  ;;  %4945 = vmatpush3.bf16.msra.mxu0 %v4944_v28 }
0x1fe8   :  { %4946 = vmatprep.subr.bf16.mxu0 %v5319_v1 }
0x1feb   :  { %4948 = vmatpush3.bf16.msra.mxu0 %v4947_v29 }
0x1fec   :  { %4949 = vmatprep.subr.bf16.mxu0 %v5319_v1 }
0x1fef   :  { %4951 = vmatpush3.bf16.msra.mxu0 %v4950_v12 }
0x1ff0   :  { %4952 = vmatprep.subr.bf16.mxu0 %v5319_v1 }
0x1ff3   :  { %4954 = vmatpush3.bf16.msra.mxu0 %v4953_v16 }
0x1ff4   :  { %4962 = vmatprep.subr.bf16.mxu0 %v4961_v40 }
0x20b9   :  { %v1804_v48 = vpop.f32.mrb[22].mxu0 }
0x20ba   :  { %v1808_v49 = vadd.f32 %v1804_v48, %v5641_v42  ;;  %v4536_v34 = vpop.f32.mrb[23].mxu0 }
0x20bb   :  { %v2060_v34 = vld [vmem:[#allocation5 + $0x330] sm:$0xff] }
0x20bc   :  { %v1809_v53 = vadd.f32 %v1808_v49, %v5637_v30  ;;  %v2059_v49 = vld [vmem:[#allocation5 + $0x320] sm:$0xff] }
0x20be   :  { %5170 = vtanh.f32 %v1809_v53  ;;  %v4034_v55 = vmul.f32 -1.442695, %v1809_v53 }
0x20c0   :  { %5172 = vpow2.f32 %v4034_v55  ;;  %v4959_v55 = vpack.c.bf16 %v2060_v34, %v2059_v49 }
0x20c8   :  { %v5171_v54 = vpop.eup %5170 }
0x20c9   :  { %1819 = vrot.lane.b32.xlu0 %v5171_v54, %s5322_s0 }
0x20ca   :  { %v5173_v56 = vpop.eup %5172 }
0x20cb   :  { %v1813_v59 = vadd.f32 1.0, %v5173_v56 }
0x20cd   :  { %5174 = vrcp.f32 %v1813_v59 }
0x20d7   :  { %v5175_v61 = vpop.eup %5174 }
0x20d8   :  { %v1817_v57 = vmul.f32 %v5175_v61, %v1710_v38 }
0x213b   :  { %v1820_v62 = vpop.permute.xlu0 %1819 }
0x213c   :  { %v1822_v51 = vmul.f32 %v5175_v61, %v1820_v62 }
0x213e   :  { %1824 = vrot.lane.b32.xlu1 %v1822_v51, %s5323_s8 }
0x21b0   :  { %v1825_v63 = vpop.permute.xlu1 %1824 }
0x21b1   :  { %v5738_v42 = vadd.f32 %v1825_v63, %v1817_v57  ;;  %v2173_v63 = vld [vmem:[#allocation5 + $0x360] sm:$0xff] }
0x21b3   :  { %5176 = vtanh.f32 %v5738_v42  ;;  %v1868_v59 = vrot.slane %v5738_v42, 4 }
0x21bd   :  { %v5177_v30 = vpop.eup %5176 }
0x21be   :  { %1830 = vrot.lane.b32.xlu0 %v5177_v30, %s5322_s0  ;;  %v2174_v30 = vld [vmem:[#allocation5 + $0x370] sm:$0xff] }
0x2230   :  { %v1831_v15 = vpop.permute.xlu0 %1830 }
0x2231   :  { %v1833_v20 = vmul.f32 %v5175_v61, %v1831_v15  ;;  %v5792_v15 = vpack.c.bf16 %v2996_v14, %v2995_v36 }
0x2233   :  { %1835 = vrot.lane.b32.xlu0 %v1833_v20, %s5323_s8  ;;  %1839 = vrot.lane.b32.xlu1 %v1833_v20, %s5322_s0  ;;  %v1848_v23 = vrot.slane %v1833_v20, 4  ;;  %v1883_v20 = vld [vmem:[#allocation5 + $0x2e0] ss:$0 sm:$0xff] }
0x2237   :  { %1844 = vrot.lane.b32.xlu0 %v1843_v22, %s5322_s0  ;;  %1849 = vrot.lane.b32.xlu1 %v1848_v23, %s5322_s0 }
0x223b   :  { %1865 = vrot.lane.b32.xlu0 %v5738_v42, %s5324_s9  ;;  %v4965_v42 = vpack.c.bf16 %v2174_v30, %v2173_v63 }
0x223f   :  { %2047 = vrot.lane.b32.xlu0 %v2040_v33, %s5324_s9 }
0x22a5   :  { %v1836_v41 = vpop.permute.xlu0 %1835  ;;  %v1840_v38 = vpop.permute.xlu1 %1839 }
0x22a6   :  { %1838 = vst.msk [vmem:[#allocation3 + $0x14] sm:$0xf] %vm464_vm12, %v1836_v41 }
0x22a7   :  { %1842 = vst.msk [vmem:[#allocation3 - $0x4] sm:$0xf0] %vm469_vm11, %v1840_v38  ;;  %vm2388_vm11 = vcmask 519424  }
0x22a9   :  { %v1845_v50 = vpop.permute.xlu0 %1844  ;;  %v1850_v44 = vpop.permute.xlu1 %1849 }
0x22aa   :  { %v1852_v45 = vsel %vm256_vm10, %v1836_v41, %v1850_v44  ;;  %v1847_v48 = vsel %vm256_vm10, %v5608_v52, %v1845_v50 }
0x22ab   :  { %v1854_v9 = vrot.slane %v1852_v45, 4 }
0x22ad   :  { %v1856_v53 = vsel %vm67_vm1, %v1847_v48, %v1854_v9  ;;  %v2041_v52 = vld [vmem:[#allocation3 + $0x10] sm:$0xff]  ;;  %v1866_v56 = vpop.permute.xlu0 %1865 }
0x22ae   :  { %v2039_v54 = vld [vmem:[#allocation3] sm:$0xff]  ;;  %4554 = vmatmul.mubr.msk.f32.vlgmr.msra.gmra.mrb[20].mxu1 %vm360_vm9, %v1856_v53  ;;  %v1870_v62 = vsel %vm256_vm10, %v1866_v56, %v1868_v59 }
0x22af   :  { %2045 = vrot.lane.b32.xlu1 %v2039_v54, %s5324_s9  ;;  %4957 = vmatpush3.bf16.msra.mxu1 %v4956_v46  ;;  %v1872_v2 = vrot.slane %v1870_v62, 4 }
0x22b0   :  { %4583 = vmatprep.mubr.msk.f32.mxu1 %vm5320_vm0, %v5321_v8  ;;  %4958 = vmatprep.subr.bf16.mxu1 %v5319_v1 }
0x22b1   :  { %v2048_v57 = vpop.permute.xlu0 %2047 }
0x22b2   :  { %v2055_v3 = vadd.f32 %v2048_v57, %v2040_v33 }
0x22b3   :  { %1858 = vrot.lane.b32.xlu1 %v5569_v21, %s5324_s9  ;;  %4960 = vmatpush3.bf16.msra.mxu1 %v4959_v55 }
0x22b7   :  { %2049 = vrot.lane.b32.xlu1 %v2041_v52, %s5324_s9 }
0x2321   :  { %v2046_v61 = vpop.permute.xlu1 %2045 }
0x2322   :  { %v2054_v51 = vadd.f32 %v2046_v61, %v2039_v54 }
0x2324   :  { %4584 = vmatmul.mubr.msk.f32.vlgmr.msra.gmra.mrb[22].mxu1 %vm256_vm10, %v2054_v51 }
0x2325   :  { %v1859_v5 = vpop.permute.xlu1 %1858  ;;  %4586 = vmatprep.mubr.msk.f32.mxu1 %vm5320_vm0, %v5321_v8 }
0x2326   :  { %v1863_v11 = vsel %vm256_vm10, %v1859_v5, %v1861_v0 }
0x2327   :  { %v1874_v4 = vsel %vm67_vm1, %v1863_v11, %v1872_v2 }
0x2328   :  { %4573 = vmatmul.mubr.msk.f32.vlgmr.msra.gmra.mrb[24].mxu0 %vm360_vm9, %v1874_v4  ;;  %4587 = vmatmul.mubr.msk.f32.gmra.mrb[24].mxu1 %vm256_vm10, %v2055_v3 }
0x2329   :  { %4964 = vmatpush3.bf16.msra.mxu0 %v4961_v40  ;;  %4600 = vmatprep.mubr.msk.f32.mxu0 %vm256_vm10, %v5450_v60  ;;  %v2050_v21 = vpop.permute.xlu1 %2049 }
0x232a   :  { %v2056_v7 = vadd.f32 %v2050_v21, %v2041_v52  ;;  %4589 = vmatprep.mubr.msk.f32.mxu1 %vm5320_vm0, %v5321_v8  ;;  %4966 = vmatprep.subr.bf16.mxu0 %v4965_v42 }
0x232c   :  { %4590 = vmatmul.mubr.msk.f32.gmra.mrb[26].mxu1 %vm256_vm10, %v2056_v7 }
0x232d   :  { %4968 = vmatpush3.bf16.msra.mxu0 %v4965_v42 }
0x232e   :  { %4985 = vmatprep.subr.bf16.mxu0 %v5319_v1 }
0x2330   :  { %4601 = vmatmul.mubr.msk.f32.vlgmr.msra.gmra.mrb[26].mxu0 %vm256_vm10, %v5448_v58 }
0x2331   :  { %4987 = vmatpush3.bf16.msra.mxu0 %v5786_v13  ;;  %4633 = vmatprep.mubr.msk.f32.mxu0 %vm5320_vm0, %v5321_v8 }
0x2332   :  { %4988 = vmatprep.subr.bf16.mxu0 %v5319_v1 }
0x2335   :  { %4990 = vmatpush3.bf16.msra.mxu0 %v5792_v15 }
0x2336   :  { %4991 = vmatprep.subr.bf16.mxu0 %v5319_v1 }
0x2381   :  { %v1953_v22 = vpop.f32.mrb[20].mxu1 }
0x2382   :  { %v5799_v23 = vadd.f32 %v1953_v22, %v1883_v20  ;;  %v4555_v25 = vpop.f32.mrb[21].mxu1 }
0x2384   :  { %4634 = vmatmul.mubr.msk.f32.vlgmr.msra.gmra.mrb[28].mxu0 %vm256_vm10, %v5799_v23 }
0x2385   :  { %4652 = vmatprep.mubr.msk.f32.mxu0 %vm5320_vm0, %v5321_v8 }
0x23f7   :  { %v2136_v26 = vpop.f32.mrb[22].mxu1 }
0x23f8   :  { %2151 = vst.msk [vmem:[#allocation4] sm:$0xf] %vm2150_vm13, %v2136_v26  ;;  %v4585_v27 = vpop.f32.mrb[23].mxu1 }
0x23f9   :  { %2154 = vst.msk [vmem:[#allocation4] sm:$0xf0] %vm2153_vm14, %v2136_v26 }
0x23fb   :  { %v5805_v28 = vpop.f32.mrb[24].mxu0  ;;  %v2141_v6 = vpop.f32.mrb[24].mxu1 }
0x23fc   :  { %2156 = vst.msk [vmem:[#allocation4 + $0x8] sm:$0xf] %vm2150_vm13, %v2141_v6  ;;  %v4574_v29 = vpop.f32.mrb[25].mxu0  ;;  %v4588_v31 = vpop.f32.mrb[25].mxu1 }
0x23fd   :  { %2158 = vst.msk [vmem:[#allocation4 + $0x8] sm:$0xf0] %vm2153_vm14, %v2141_v6 }
0x23ff   :  { %v2146_v32 = vpop.f32.mrb[26].mxu1  ;;  %v5817_v39 = vld [vmem:[#allocation4] sm:$0xf] }
0x2400   :  { %2160 = vst.msk [vmem:[#allocation4 + $0x10] sm:$0xf] %vm2150_vm13, %v2146_v32  ;;  %v4591_v12 = vpop.f32.mrb[27].mxu1  ;;  %v5815_v24 = vld [vmem:[#allocation4 + $0x4] sm:$0xf] }
0x2401   :  { %2162 = vst.msk [vmem:[#allocation4 + $0x10] sm:$0xf0] %vm2153_vm14, %v2146_v32 }
0x2403   :  { %v5807_v33 = vpop.f32.mrb[26].mxu0  ;;  %v5839_v54 = vld [vmem:[#allocation4 + $0x8] sm:$0xf] }
0x2404   :  { %v5809_v35 = vpop.f32.mrb[27].mxu0  ;;  %v5812_v37 = vrot.slane %v5807_v33, 4  ;;  %v2541_v34 = vmul.f32 %v5807_v33, %v5815_v24  ;;  %v2540_v53 = vmul.f32 %v5807_v33, %v5817_v39  ;;  %v5846_v61 = vld [vmem:[#allocation4 + $0xc] sm:$0xf]  ;;  %v2542_v2 = vmul.f32 %v5807_v33, %v5839_v54 }
0x2405   :  { %v2401_v16 = vrot.slane %v5809_v35, 4  ;;  %v2257_v9 = vmul.f32 %v5809_v35, %v5815_v24  ;;  %v2256_v46 = vmul.f32 %v5809_v35, %v5817_v39  ;;  %v2259_v57 = vmul.f32 %v5809_v35, %v5846_v61 }
0x2406   :  { %v2681_v43 = vmul.f32 %v5812_v37, %v5815_v24  ;;  %v2680_v50 = vmul.f32 %v5812_v37, %v5817_v39  ;;  %v2549_v55 = vsel %vm464_vm12, %v2541_v34, 0.0  ;;  %v2546_v52 = vsel %vm464_vm12, %v2540_v53, 0.0 }
0x2407   :  { %v2404_v40 = vmul.f32 %v2401_v16, %v5815_v24  ;;  %v2403_v41 = vmul.f32 %v2401_v16, %v5817_v39  ;;  %v2265_v48 = vsel %vm464_vm12, %v2257_v9, 0.0  ;;  %v2262_v49 = vsel %vm464_vm12, %v2256_v46, 0.0  ;;  %v5859_v3 = vld [vmem:[#allocation4 + $0x10] sm:$0xf] }
0x2408   :  { %v2689_v44 = vsel %vm464_vm12, %v2681_v43, 0.0  ;;  %v2686_v45 = vsel %vm464_vm12, %v2680_v50, 0.0  ;;  %v2682_v56 = vmul.f32 %v5812_v37, %v5839_v54  ;;  %v2405_v59 = vmul.f32 %v2401_v16, %v5839_v54  ;;  %v5872_v14 = vld [vmem:[#allocation4 + $0x14] sm:$0xf] }
0x2409   :  { %v2412_v38 = vsel %vm464_vm12, %v2404_v40, 0.0  ;;  %v2409_v47 = vsel %vm464_vm12, %v2403_v41, 0.0  ;;  %v2406_v63 = vmul.f32 %v2401_v16, %v5846_v61  ;;  %v2271_v30 = vsel %vm464_vm12, %v2259_v57, 0.0 }
0x240a   :  { %2413 = vadd.xlane.f32.xlu1 %v2412_v38  ;;  %2410 = vadd.xlane.f32.xlu0 %v2409_v47  ;;  %v2692_v62 = vsel %vm464_vm12, %v2682_v56, 0.0  ;;  %v2415_v51 = vsel %vm464_vm12, %v2405_v59, 0.0  ;;  %v2258_v5 = vmul.f32 %v5809_v35, %v5839_v54  ;;  %v2552_v11 = vsel %vm464_vm12, %v2542_v2, 0.0 }
0x240b   :  { %v2418_v0 = vsel %vm464_vm12, %v2406_v63, 0.0  ;;  %v2683_v4 = vmul.f32 %v5812_v37, %v5846_v61  ;;  %v2407_v21 = vmul.f32 %v2401_v16, %v5859_v3  ;;  %v2543_v10 = vmul.f32 %v5807_v33, %v5846_v61 }
0x240c   :  { %v2268_v42 = vsel %vm464_vm12, %v2258_v5, 0.0  ;;  %v2260_v36 = vmul.f32 %v5809_v35, %v5859_v3  ;;  %v2408_v25 = vmul.f32 %v2401_v16, %v5872_v14  ;;  %v2685_v26 = vmul.f32 %v5812_v37, %v5872_v14 }
0x240d   :  { %v2695_v7 = vsel %vm464_vm12, %v2683_v4, 0.0  ;;  %v2421_v17 = vsel %vm464_vm12, %v2407_v21, 0.0  ;;  %v2555_v20 = vsel %vm464_vm12, %v2543_v10, 0.0  ;;  %v2684_v29 = vmul.f32 %v5812_v37, %v5859_v3 }
0x240e   :  { %2690 = vadd.xlane.f32.xlu1 %v2689_v44  ;;  %2687 = vadd.xlane.f32.xlu0 %v2686_v45  ;;  %v2274_v22 = vsel %vm464_vm12, %v2260_v36, 0.0  ;;  %v2424_v27 = vsel %vm464_vm12, %v2408_v25, 0.0  ;;  %v2701_v6 = vsel %vm464_vm12, %v2685_v26, 0.0  ;;  %v2544_v31 = vmul.f32 %v5807_v33, %v5859_v3 }
0x240f   :  { %v2698_v32 = vsel %vm464_vm12, %v2684_v29, 0.0  ;;  %v2261_v16 = vmul.f32 %v5809_v35, %v5872_v14  ;;  %v2545_v41 = vmul.f32 %v5807_v33, %v5872_v14  ;;  %v5896_v56 = vshrl.u32 %v34_v18, 7 }
0x2410   :  { %v2558_v12 = vsel %vm464_vm12, %v2544_v31, 0.0 }
0x2411   :  { %v2277_v40 = vsel %vm464_vm12, %v2261_v16, 0.0  ;;  %v2561_v37 = vsel %vm464_vm12, %v2545_v41, 0.0 }
0x2412   :  { %2266 = vadd.xlane.f32.xlu1 %v2265_v48  ;;  %2263 = vadd.xlane.f32.xlu0 %v2262_v49 }
0x2416   :  { %2550 = vadd.xlane.f32.xlu1 %v2549_v55  ;;  %2547 = vadd.xlane.f32.xlu0 %v2546_v52 }
0x241a   :  { %2693 = vadd.xlane.f32.xlu1 %v2692_v62  ;;  %2416 = vadd.xlane.f32.xlu0 %v2415_v51  ;;  %v5900_v51 = vsub.s32 %v5382_v19, %v5896_v56 }
0x241e   :  { %2272 = vadd.xlane.f32.xlu1 %v2271_v30  ;;  %2419 = vadd.xlane.f32.xlu0 %v2418_v0 }
0x2422   :  { %2553 = vadd.xlane.f32.xlu1 %v2552_v11  ;;  %2269 = vadd.xlane.f32.xlu0 %v2268_v42 }
0x2426   :  { %2696 = vadd.xlane.f32.xlu0 %v2695_v7  ;;  %2422 = vadd.xlane.f32.xlu1 %v2421_v17 }
0x242a   :  { %2556 = vadd.xlane.f32.xlu0 %v2555_v20  ;;  %2275 = vadd.xlane.f32.xlu1 %v2274_v22  ;;  %v5910_v22 = vld [vmem:[%s6207_s1] sm:$0x3f]  ;;  %s5325_s1 = smov [#allocation8]  }
0x242b   :  { %vm2170_vm7 = vcmp.gt.f32.partialorder %v5910_v22, 0.5  ;;  %s3982_s12 = sshll.u32 %s5325_s1, 4  ;;  %s3983_s12 = int_to_ptr.vmem [resolvable:$true] %s3982_s12 }
0x242c   :  { %s5289_s13 = scalar_lea.vmem %s3983_s12, 256  ;;  %p5294_p9 = scmp.lt.s32.totalorder %s3983_s12, %s3983_s12 }
0x242d   :  { %p5290_p8 = scmp.ne.s32.totalorder %s3983_s12, %s5289_s13  ;;  %p5295_p10 = scmp.lt.s32.totalorder %s5289_s13, %s5289_s13 }
0x242e   :  { %2425 = vadd.xlane.f32.xlu0 %v2424_v27  ;;  %2702 = vadd.xlane.f32.xlu1 %v2701_v6 }
0x242f   :  { %p5296_p11 = por %p5295_p10, %p5294_p9 }
0x2431   :  { %p5297_p12 = pnand %p5296_p11, %p5290_p8 }
0x2432   :  { %2699 = vadd.xlane.f32.xlu0 %v2698_v32  ;;  %2559 = vadd.xlane.f32.xlu1 %v2558_v12 }
0x2436   :  { %2278 = vadd.xlane.f32.xlu0 %v2277_v40 }
0x243a   :  { %2562 = vadd.xlane.f32.xlu0 %v2561_v37 }
0x2457   :  { %v5893_v38 = vpop.f32.mrb[28].mxu0 }
0x2458   :  { %v4635_v47 = vpop.f32.mrb[29].mxu0 }
0x2497   :  { %v2411_v43 = vpop.xlane.xlu0 %2410  ;;  %v2414_v50 = vpop.xlane.xlu1 %2413 }
0x2498   :  { %v2427_v57 = vmul.f32 0.17677669, %v2411_v43  ;;  %v2428_v63 = vmul.f32 0.17677669, %v2414_v50 }
0x249a   :  { %v2442_v18 = vrot.slane %v2427_v57, %v5900_v51  ;;  %v2446_v17 = vrot.slane %v2428_v63, %v5900_v51 }
0x249b   :  { %v2688_v44 = vpop.xlane.xlu0 %2687  ;;  %v2691_v45 = vpop.xlane.xlu1 %2690 }
0x249c   :  { %v2704_v30 = vmul.f32 0.17677669, %v2688_v44  ;;  %v2705_v0 = vmul.f32 0.17677669, %v2691_v45  ;;  %v2463_v16 = vsel %vm2316_vm15, %v2446_v17, %v2442_v18 }
0x249e   :  { %v2719_v19 = vrot.slane %v2704_v30, %v5900_v51  ;;  %v2723_v10 = vrot.slane %v2705_v0, %v5900_v51 }
0x249f   :  { %v2264_v9 = vpop.xlane.xlu0 %2263  ;;  %v2267_v35 = vpop.xlane.xlu1 %2266 }
0x24a0   :  { %v2280_v5 = vmul.f32 0.17677669, %v2264_v9  ;;  %v2281_v11 = vmul.f32 0.17677669, %v2267_v35  ;;  %v2740_v41 = vsel %vm2316_vm15, %v2723_v10, %v2719_v19 }
0x24a2   :  { %v2295_v25 = vrot.slane %v2280_v5, %v5900_v51  ;;  %v2299_v26 = vrot.slane %v2281_v11, %v5900_v51 }
0x24a3   :  { %v2548_v46 = vpop.xlane.xlu0 %2547  ;;  %v2551_v48 = vpop.xlane.xlu1 %2550 }
0x24a4   :  { %v2564_v37 = vmul.f32 0.17677669, %v2548_v46  ;;  %v2317_v50 = vsel %vm2316_vm15, %v2299_v26, %v2295_v25  ;;  %v2565_v46 = vmul.f32 0.17677669, %v2551_v48 }
0x24a6   :  { %v2579_v30 = vrot.slane %v2564_v37, %v5900_v51 }
0x24a7   :  { %v2417_v49 = vpop.xlane.xlu0 %2416  ;;  %v2694_v34 = vpop.xlane.xlu1 %2693 }
0x24a8   :  { %v2429_v2 = vmul.f32 0.17677669, %v2417_v49  ;;  %v2706_v20 = vmul.f32 0.17677669, %v2694_v34 }
0x24aa   :  { %v2450_v36 = vrot.slane %v2429_v2, %v5900_v51  ;;  %v2727_v43 = vrot.slane %v2706_v20, %v5900_v51 }
0x24ab   :  { %v2420_v53 = vpop.xlane.xlu0 %2419  ;;  %v2273_v55 = vpop.xlane.xlu1 %2272 }
0x24ac   :  { %v2430_v42 = vmul.f32 0.17677669, %v2420_v53  ;;  %v2464_v47 = vsel %vm2318_vm2, %v2450_v36, %v2463_v16  ;;  %v2741_v0 = vsel %vm2318_vm2, %v2727_v43, %v2740_v41 }
0x24ae   :  { %v2454_v27 = vrot.slane %v2430_v42, %v5900_v51 }
0x24af   :  { %v2270_v33 = vpop.xlane.xlu0 %2269  ;;  %v2554_v52 = vpop.xlane.xlu1 %2553 }
0x24b0   :  { %v2282_v6 = vmul.f32 0.17677669, %v2270_v33  ;;  %v2465_v9 = vsel %vm2320_vm3, %v2454_v27, %v2464_v47  ;;  %v2566_v2 = vmul.f32 0.17677669, %v2554_v52  ;;  %v2583_v52 = vrot.slane %v2565_v46, %v5900_v51 }
0x24b2   :  { %v2303_v44 = vrot.slane %v2282_v6, %v5900_v51  ;;  %v2587_v20 = vrot.slane %v2566_v2, %v5900_v51 }
0x24b3   :  { %v2697_v59 = vpop.xlane.xlu0 %2696  ;;  %v2423_v62 = vpop.xlane.xlu1 %2422 }
0x24b4   :  { %v2431_v4 = vmul.f32 0.17677669, %v2423_v62  ;;  %v2707_v29 = vmul.f32 0.17677669, %v2697_v59  ;;  %v2283_v59 = vmul.f32 0.17677669, %v2273_v55  ;;  %v2319_v11 = vsel %vm2318_vm2, %v2303_v44, %v2317_v50 }
0x24b6   :  { %v2458_v31 = vrot.slane %v2431_v4, %v5900_v51  ;;  %v2731_v35 = vrot.slane %v2707_v29, %v5900_v51  ;;  %v2307_v10 = vrot.slane %v2283_v59, %v5900_v51 }
0x24b7   :  { %v2557_v21 = vpop.xlane.xlu0 %2556  ;;  %v2276_v7 = vpop.xlane.xlu1 %2275 }
0x24b8   :  { %v2284_v49 = vmul.f32 0.17677669, %v2276_v7  ;;  %v2466_v33 = vsel %vm2322_vm5, %v2458_v31, %v2465_v9  ;;  %v2567_v42 = vmul.f32 0.17677669, %v2557_v21  ;;  %v2742_v55 = vsel %vm2320_vm3, %v2731_v35, %v2741_v0 }
0x24b9   :  { %v2321_v29 = vsel %vm2320_vm3, %v2307_v10, %v2319_v11  ;;  %v2349_v10 = vsub.s32 1, %v5896_v56 }
0x24ba   :  { %v2311_v7 = vrot.slane %v2284_v49, %v5900_v51  ;;  %v2591_v26 = vrot.slane %v2567_v42, %v5900_v51 }
0x24bb   :  { %v2426_v32 = vpop.xlane.xlu0 %2425  ;;  %v2703_v12 = vpop.xlane.xlu1 %2702 }
0x24bc   :  { %v2432_v40 = vmul.f32 0.17677669, %v2426_v32  ;;  %v2709_v34 = vmul.f32 0.17677669, %v2703_v12  ;;  %v2323_v16 = vsel %vm2322_vm5, %v2311_v7, %v2321_v29 }
0x24be   :  { %v2462_v45 = vrot.slane %v2432_v40, %v5900_v51  ;;  %v2739_v18 = vrot.slane %v2709_v34, %v5900_v51  ;;  %v2600_v40 = vsel %vm2316_vm15, %v2583_v52, %v2579_v30 }
0x24bf   :  { %v2700_v53 = vpop.xlane.xlu0 %2699  ;;  %v2560_v57 = vpop.xlane.xlu1 %2559  ;;  %v2601_v47 = vsel %vm2318_vm2, %v2587_v20, %v2600_v40  ;;  %v2356_v40 = vsub.s32 2, %v5896_v56 }
0x24c0   :  { %v2708_v62 = vmul.f32 0.17677669, %v2700_v53  ;;  %v2467_v63 = vsel %vm2324_vm6, %v2462_v45, %v2466_v33  ;;  %v2568_v17 = vmul.f32 0.17677669, %v2560_v57  ;;  %v2602_v50 = vsel %vm2320_vm3, %v2591_v26, %v2601_v47 }
0x24c1   :  { %v2469_v5 = vsel %vm2170_vm7, -1e+30, %v2467_v63 }
0x24c2   :  { %v2735_v4 = vrot.slane %v2708_v62, %v5900_v51  ;;  %v2470_v48 = vsel %vm2328_vm8, %v2469_v5, -inf  ;;  %v2595_v31 = vrot.slane %v2568_v17, %v5900_v51 }
0x24c3   :  { %v2279_v19 = vpop.xlane.xlu0 %2278  ;;  %2471 = vmax.xlane.f32.xlu1 %v2470_v48 }
0x24c4   :  { %v2285_v36 = vmul.f32 0.17677669, %v2279_v19  ;;  %v2743_v21 = vsel %vm2322_vm5, %v2735_v4, %v2742_v55  ;;  %v2603_v9 = vsel %vm2322_vm5, %v2595_v31, %v2602_v50 }
0x24c5   :  { %v2744_v25 = vsel %vm2324_vm6, %v2739_v18, %v2743_v21 }
0x24c6   :  { %v2315_v27 = vrot.slane %v2285_v36, %v5900_v51  ;;  %v2746_v6 = vsel %vm2170_vm7, -1e+30, %v2744_v25  ;;  %v2342_v36 = vsub.s32 0, %v5896_v56 }
0x24c7   :  { %v2563_v32 = vpop.xlane.xlu0 %2562  ;;  %v2747_v12 = vsel %vm2328_vm8, %v2746_v6, -inf }
0x24c8   :  { %v2569_v41 = vmul.f32 0.17677669, %v2563_v32  ;;  %2748 = vmax.xlane.f32.xlu0 %v2747_v12  ;;  %v2325_v37 = vsel %vm2324_vm6, %v2315_v27, %v2323_v16 }
0x24c9   :  { %v2327_v43 = vsel %vm2170_vm7, -1e+30, %v2325_v37 }
0x24ca   :  { %v2599_v44 = vrot.slane %v2569_v41, %v5900_v51  ;;  %v2329_v45 = vsel %vm2328_vm8, %v2327_v43, -inf }
0x24cb   :  { %2330 = vmax.xlane.f32.xlu1 %v2329_v45 }
0x24cc   :  { %v2604_v35 = vsel %vm2324_vm6, %v2599_v44, %v2603_v9 }
0x24cd   :  { %v2606_v49 = vsel %vm2170_vm7, -1e+30, %v2604_v35 }
0x24ce   :  { %v2607_v34 = vsel %vm2328_vm8, %v2606_v49, -inf }
0x24cf   :  { %2608 = vmax.xlane.f32.xlu0 %v2607_v34 }
0x2550   :  { %v2472_v53 = vpop.xlane.xlu1 %2471 }
0x2551   :  { %v2473_v33 = vsub.f32 %v2469_v5, %v2472_v53 }
0x2553   :  { %v2474_v46 = vmul.f32 1.442695, %v2473_v33 }
0x2555   :  { %5178 = vpow2.f32 %v2474_v46  ;;  %v2749_v59 = vpop.xlane.xlu0 %2748 }
0x2556   :  { %v2750_v62 = vsub.f32 %v2746_v6, %v2749_v59  ;;  %v2370_v59 = vsub.s32 4, %v5896_v56 }
0x2558   :  { %v2751_v51 = vmul.f32 1.442695, %v2750_v62  ;;  %v2331_v57 = vpop.xlane.xlu1 %2330 }
0x2559   :  { %v2332_v63 = vsub.f32 %v2327_v43, %v2331_v57 }
0x255a   :  { %5180 = vpow2.f32 %v2751_v51 }
0x255b   :  { %v2333_v30 = vmul.f32 1.442695, %v2332_v63 }
0x255c   :  { %v2609_v0 = vpop.xlane.xlu0 %2608 }
0x255d   :  { %5182 = vpow2.f32 %v2333_v30  ;;  %v2610_v2 = vsub.f32 %v2606_v49, %v2609_v0  ;;  %v2363_v49 = vsub.s32 3, %v5896_v56  ;;  %v2377_v30 = vsub.s32 5, %v5896_v56 }
0x255f   :  { %v5179_v11 = vpop.eup %5178  ;;  %v2611_v22 = vmul.f32 1.442695, %v2610_v2 }
0x2560   :  { %v2476_v42 = vsel %vm2328_vm8, %v5179_v11, 0.0 }
0x2561   :  { %5184 = vpow2.f32 %v2611_v22  ;;  %2477 = vadd.xlane.f32.xlu1 %v2476_v42  ;;  %v2829_v42 = vld [vmem:[#allocation5 + $0x420] sm:$0xff] }
0x2564   :  { %v5181_v4 = vpop.eup %5180 }
0x2565   :  { %v2753_v5 = vsel %vm2328_vm8, %v5181_v4, 0.0 }
0x2566   :  { %2754 = vadd.xlane.f32.xlu0 %v2753_v5  ;;  %v2831_v5 = vld [vmem:[#allocation5 + $0x440] sm:$0xff] }
0x2567   :  { %v5183_v48 = vpop.eup %5182 }
0x2568   :  { %v2335_v55 = vsel %vm2328_vm8, %v5183_v48, 0.0 }
0x2569   :  { %2336 = vadd.xlane.f32.xlu1 %v2335_v55 }
0x256b   :  { %v5185_v7 = vpop.eup %5184 }
0x256c   :  { %v2613_v18 = vsel %vm2328_vm8, %v5185_v7, 0.0 }
0x256d   :  { %2614 = vadd.xlane.f32.xlu0 %v2613_v18 }
0x25ee   :  { %v2478_v17 = vpop.xlane.xlu1 %2477 }
0x25ef   :  { %5186 = vrcp.f32 %v2478_v17 }
0x25f3   :  { %v2755_v19 = vpop.xlane.xlu0 %2754 }
0x25f4   :  { %5188 = vrcp.f32 %v2755_v19 }
0x25f6   :  { %v2337_v52 = vpop.xlane.xlu1 %2336 }
0x25f7   :  { %5190 = vrcp.f32 %v2337_v52 }
0x25f9   :  { %v5187_v21 = vpop.eup %5186 }
0x25fa   :  { %v2480_v20 = vmul.f32 %v5187_v21, %v5179_v11  ;;  %v2615_v25 = vpop.xlane.xlu0 %2614 }
0x25fb   :  { %5192 = vrcp.f32 %v2615_v25 }
0x25fc   :  { %v2491_v26 = vrot.slane %v2480_v20, %v2349_v10  ;;  %v2484_v27 = vrot.slane %v2480_v20, %v2342_v36  ;;  %v2498_v43 = vrot.slane %v2480_v20, %v2356_v40  ;;  %v2505_v53 = vrot.slane %v2480_v20, %v2363_v49 }
0x25fd   :  { %v2512_v51 = vrot.slane %v2480_v20, %v2370_v59  ;;  %v2519_v2 = vrot.slane %v2480_v20, %v2377_v30 }
0x25fe   :  { %v5189_v6 = vpop.eup %5188  ;;  %2493 = vbcast.lane.b32.xlu0 %v2491_v26, 256  ;;  %2486 = vbcast.lane.b32.xlu1 %v2484_v27, 256 }
0x25ff   :  { %v2757_v29 = vmul.f32 %v5189_v6, %v5181_v4  ;;  %v2830_v4 = vld [vmem:[#allocation5 + $0x430] sm:$0xff] }
0x2600   :  { %v4969_v55 = vpack.c.bf16 %v2830_v4, %v2829_v42 }
0x2601   :  { %v5191_v31 = vpop.eup %5190  ;;  %v2761_v32 = vrot.slane %v2757_v29, %v2342_v36  ;;  %v2768_v37 = vrot.slane %v2757_v29, %v2349_v10  ;;  %v2775_v35 = vrot.slane %v2757_v29, %v2356_v40  ;;  %v2782_v46 = vrot.slane %v2757_v29, %v2363_v49 }
0x2602   :  { %v2339_v12 = vmul.f32 %v5191_v31, %v5183_v48  ;;  %v2789_v63 = vrot.slane %v2757_v29, %v2370_v59  ;;  %v2796_v22 = vrot.slane %v2757_v29, %v2377_v30  ;;  %4970 = vmatprep.subr.bf16.mxu1 %v4969_v55 }
0x2603   :  { %2763 = vbcast.lane.b32.xlu1 %v2761_v32, 256  ;;  %4972 = vmatpush3.bf16.msra.mxu1 %v4969_v55  ;;  %v2826_v55 = vld [vmem:[#allocation5 + $0x3f0] sm:$0xff] }
0x2604   :  { %v2343_v16 = vrot.slane %v2339_v12, %v2342_v36  ;;  %v2350_v50 = vrot.slane %v2339_v12, %v2349_v10  ;;  %v2357_v9 = vrot.slane %v2339_v12, %v2356_v40  ;;  %v2364_v33 = vrot.slane %v2339_v12, %v2363_v49 }
0x2605   :  { %v5193_v41 = vpop.eup %5192  ;;  %v2371_v57 = vrot.slane %v2339_v12, %v2370_v59  ;;  %v2378_v11 = vrot.slane %v2339_v12, %v2377_v30 }
0x2606   :  { %2345 = vbcast.lane.b32.xlu0 %v2343_v16, 256  ;;  %v2617_v47 = vmul.f32 %v5193_v41, %v5185_v7  ;;  %v2832_v7 = vld [vmem:[#allocation5 + $0x450] sm:$0xff] }
0x2607   :  { %2770 = vbcast.lane.b32.xlu1 %v2768_v37, 256  ;;  %v4973_v18 = vpack.c.bf16 %v2832_v7, %v2831_v5 }
0x2608   :  { %v2628_v44 = vrot.slane %v2617_v47, %v2349_v10  ;;  %v2621_v45 = vrot.slane %v2617_v47, %v2342_v36  ;;  %v2635_v34 = vrot.slane %v2617_v47, %v2356_v40  ;;  %v2642_v62 = vrot.slane %v2617_v47, %v2363_v49 }
0x2609   :  { %v2649_v0 = vrot.slane %v2617_v47, %v2370_v59  ;;  %v2656_v48 = vrot.slane %v2617_v47, %v2377_v30  ;;  %4974 = vmatprep.subr.bf16.mxu1 %v4973_v18 }
0x260a   :  { %2500 = vbcast.lane.b32.xlu0 %v2498_v43, 256  ;;  %4976 = vmatpush3.bf16.msra.mxu1 %v4973_v18 }
0x260b   :  { %2352 = vbcast.lane.b32.xlu1 %v2350_v50, 256 }
0x260e   :  { %2630 = vbcast.lane.b32.xlu0 %v2628_v44, 256 }
0x260f   :  { %2623 = vbcast.lane.b32.xlu1 %v2621_v45, 256 }
0x2612   :  { %2359 = vbcast.lane.b32.xlu0 %v2357_v9, 256 }
0x2613   :  { %2777 = vbcast.lane.b32.xlu1 %v2775_v35, 256 }
0x2616   :  { %2637 = vbcast.lane.b32.xlu0 %v2635_v34, 256 }
0x2617   :  { %2507 = vbcast.lane.b32.xlu1 %v2505_v53, 256 }
0x261a   :  { %2366 = vbcast.lane.b32.xlu0 %v2364_v33, 256 }
0x261b   :  { %2784 = vbcast.lane.b32.xlu1 %v2782_v46, 256 }
0x261e   :  { %2644 = vbcast.lane.b32.xlu0 %v2642_v62, 256 }
0x261f   :  { %2514 = vbcast.lane.b32.xlu1 %v2512_v51, 256 }
0x2622   :  { %2373 = vbcast.lane.b32.xlu0 %v2371_v57, 256 }
0x2623   :  { %2791 = vbcast.lane.b32.xlu1 %v2789_v63, 256 }
0x2626   :  { %2651 = vbcast.lane.b32.xlu0 %v2649_v0, 256 }
0x2627   :  { %2521 = vbcast.lane.b32.xlu1 %v2519_v2, 256 }
0x262a   :  { %2380 = vbcast.lane.b32.xlu0 %v2378_v11, 256 }
0x262b   :  { %2798 = vbcast.lane.b32.xlu1 %v2796_v22, 256 }
0x262f   :  { %2658 = vbcast.lane.b32.xlu1 %v2656_v48, 256  ;;  %v2825_v48 = vld [vmem:[#allocation5 + $0x3e0] sm:$0xff] }
0x2670   :  { %v2487_v56 = vpop.permute.xlu1 %2486  ;;  %v2494_v17 = vpop.permute.xlu0 %2493 }
0x2671   :  { %v2524_v31 = vmul.f32 %v2494_v17, %v5815_v24  ;;  %v2523_v32 = vmul.f32 %v2487_v56, %v5817_v39 }
0x2673   :  { %v2530_v37 = vsel %vm2388_vm11, %v2524_v31, 0.0  ;;  %v2529_v47 = vsel %vm2388_vm11, %v2523_v32, 0.0 }
0x2674   :  { %v2531_v49 = vadd.f32 %v2530_v37, %v2529_v47 }
0x2675   :  { %v2764_v19 = vpop.permute.xlu1 %2763 }
0x2676   :  { %v2800_v43 = vmul.f32 %v2764_v19, %v5817_v39 }
0x2678   :  { %v2346_v52 = vpop.permute.xlu0 %2345  ;;  %v2806_v46 = vsel %vm2388_vm11, %v2800_v43, 0.0 }
0x2679   :  { %v2771_v10 = vpop.permute.xlu1 %2770  ;;  %v2382_v50 = vmul.f32 %v2346_v52, %v5817_v39 }
0x267a   :  { %v2801_v40 = vmul.f32 %v2771_v10, %v5815_v24 }
0x267b   :  { %v2389_v59 = vsel %vm2388_vm11, %v2382_v50, 0.0 }
0x267c   :  { %v2501_v36 = vpop.permute.xlu0 %2500  ;;  %v2807_v34 = vsel %vm2388_vm11, %v2801_v40, 0.0 }
0x267d   :  { %v2353_v21 = vpop.permute.xlu1 %2352  ;;  %v2525_v41 = vmul.f32 %v2501_v36, %v5839_v54  ;;  %v2808_v22 = vadd.f32 %v2807_v34, %v2806_v46 }
0x267e   :  { %v2383_v45 = vmul.f32 %v2353_v21, %v5815_v24 }
0x267f   :  { %v2532_v53 = vsel %vm2388_vm11, %v2525_v41, 0.0 }
0x2680   :  { %v2631_v20 = vpop.permute.xlu0 %2630  ;;  %v2390_v63 = vsel %vm2388_vm11, %v2383_v45, 0.0  ;;  %v2533_v42 = vadd.f32 %v2532_v53, %v2531_v49 }
0x2681   :  { %v2624_v25 = vpop.permute.xlu1 %2623  ;;  %v2661_v30 = vmul.f32 %v2631_v20, %v5815_v24  ;;  %v4977_v24 = vpack.c.bf16 %v2826_v55, %v2825_v48  ;;  %v2391_v17 = vadd.f32 %v2390_v63, %v2389_v59 }
0x2682   :  { %v2660_v0 = vmul.f32 %v2624_v25, %v5817_v39 }
0x2683   :  { %v2667_v36 = vsel %vm2388_vm11, %v2661_v30, 0.0  ;;  %4978 = vmatprep.subr.bf16.mxu1 %v4977_v24 }
0x2684   :  { %v2360_v26 = vpop.permute.xlu0 %2359  ;;  %v2666_v21 = vsel %vm2388_vm11, %v2660_v0, 0.0 }
0x2685   :  { %v2778_v27 = vpop.permute.xlu1 %2777  ;;  %v2384_v33 = vmul.f32 %v2360_v26, %v5839_v54  ;;  %v2668_v50 = vadd.f32 %v2667_v36, %v2666_v21 }
0x2686   :  { %v2802_v62 = vmul.f32 %v2778_v27, %v5839_v54 }
0x2687   :  { %v2392_v7 = vsel %vm2388_vm11, %v2384_v33, 0.0 }
0x2688   :  { %v2638_v6 = vpop.permute.xlu0 %2637  ;;  %v2809_v39 = vsel %vm2388_vm11, %v2802_v62, 0.0 }
0x2689   :  { %v2508_v29 = vpop.permute.xlu1 %2507  ;;  %v2662_v18 = vmul.f32 %v2638_v6, %v5839_v54  ;;  %v2393_v54 = vadd.f32 %v2392_v7, %v2391_v17  ;;  %v2810_v31 = vadd.f32 %v2809_v39, %v2808_v22  ;;  %v2827_v7 = vld [vmem:[#allocation5 + $0x400] sm:$0xff] }
0x268a   :  { %v2526_v35 = vmul.f32 %v2508_v29, %v5846_v61 }
0x268b   :  { %v2669_v32 = vsel %vm2388_vm11, %v2662_v18, 0.0  ;;  %v2828_v18 = vld [vmem:[#allocation5 + $0x410] sm:$0xff] }
0x268c   :  { %v2367_v12 = vpop.permute.xlu0 %2366  ;;  %v2534_v4 = vsel %vm2388_vm11, %v2526_v35, 0.0  ;;  %v2670_v53 = vadd.f32 %v2669_v32, %v2668_v50  ;;  %v3000_v32 = vld [vmem:[#allocation5 + $0x4d0] sm:$0xff]  ;;  %v3005_v50 = vld [vmem:[#allocation5 + $0x520] sm:$0xff] }
0x268d   :  { %v2785_v16 = vpop.permute.xlu1 %2784  ;;  %v2385_v2 = vmul.f32 %v2367_v12, %v5846_v61  ;;  %v2535_v20 = vadd.f32 %v2534_v4, %v2533_v42 }
0x268e   :  { %v2803_v5 = vmul.f32 %v2785_v16, %v5846_v61 }
0x268f   :  { %v2394_v25 = vsel %vm2388_vm11, %v2385_v2, 0.0 }
0x2690   :  { %v2645_v44 = vpop.permute.xlu0 %2644  ;;  %v2811_v27 = vsel %vm2388_vm11, %v2803_v5, 0.0  ;;  %v2395_v40 = vadd.f32 %v2394_v25, %v2393_v54  ;;  %v1965_v5 = vld [vmem:[#allocation5 + $0x2f0] ss:$0 sm:$0xff] }
0x2691   :  { %v2515_v9 = vpop.permute.xlu1 %2514  ;;  %v2663_v6 = vmul.f32 %v2645_v44, %v5846_v61  ;;  %v2812_v45 = vadd.f32 %v2811_v27, %v2810_v31  ;;  %v6027_v55 = vadd.f32 %v5805_v28, %v1965_v5  ;;  %v2997_v28 = vld [vmem:[#allocation5 + $0x4a0] ss:$0 sm:$0xff] }
0x2692   :  { %v2527_v51 = vmul.f32 %v2515_v9, %v5859_v3  ;;  %v2999_v31 = vld [vmem:[#allocation5 + $0x4c0] sm:$0xff] }
0x2693   :  { %v2671_v35 = vsel %vm2388_vm11, %v2663_v6, 0.0 }
0x2694   :  { %v2374_v57 = vpop.permute.xlu0 %2373  ;;  %v2536_v19 = vsel %vm2388_vm11, %v2527_v51, 0.0 }
0x2695   :  { %v2792_v11 = vpop.permute.xlu1 %2791  ;;  %v2386_v56 = vmul.f32 %v2374_v57, %v5859_v3  ;;  %v2537_v12 = vadd.f32 %v2536_v19, %v2535_v20  ;;  %v2672_v57 = vadd.f32 %v2671_v35, %v2670_v53 }
0x2696   :  { %v2804_v52 = vmul.f32 %v2792_v11, %v5859_v3 }
0x2697   :  { %v2396_v16 = vsel %vm2388_vm11, %v2386_v56, 0.0  ;;  %v4981_v56 = vpack.c.bf16 %v2828_v18, %v2827_v7 }
0x2698   :  { %v2652_v10 = vpop.permute.xlu0 %2651  ;;  %v2813_v41 = vsel %vm2388_vm11, %v2804_v52, 0.0  ;;  %v2397_v49 = vadd.f32 %v2396_v16, %v2395_v40  ;;  %v3001_v16 = vld [vmem:[#allocation5 + $0x4e0] sm:$0xff] }
0x2699   :  { %v2522_v26 = vpop.permute.xlu1 %2521  ;;  %v2664_v37 = vmul.f32 %v2652_v10, %v5859_v3  ;;  %v2814_v33 = vadd.f32 %v2813_v41, %v2812_v45  ;;  %v6058_v40 = vpack.c.bf16 %v3001_v16, %v3000_v32  ;;  %v3002_v41 = vld [vmem:[#allocation5 + $0x4f0] sm:$0xff] }
0x269a   :  { %v2528_v29 = vmul.f32 %v2522_v26, %v5872_v14 }
0x269b   :  { %v2673_v3 = vsel %vm2388_vm11, %v2664_v37, 0.0  ;;  %v3003_v37 = vld [vmem:[#allocation5 + $0x500] sm:$0xff] }
0x269c   :  { %v2538_v47 = vsel %vm2388_vm11, %v2528_v29, 0.0  ;;  %v2381_v43 = vpop.permute.xlu0 %2380  ;;  %v2674_v11 = vadd.f32 %v2673_v3, %v2672_v57 }
0x269d   :  { %v2539_v9 = vadd.f32 %v2538_v47, %v2537_v12  ;;  %v2387_v61 = vmul.f32 %v2381_v43, %v5872_v14  ;;  %v2799_v44 = vpop.permute.xlu1 %2798  ;;  %v6062_v47 = vpack.c.bf16 %v3003_v37, %v3002_v41  ;;  %v3004_v43 = vld [vmem:[#allocation5 + $0x510] sm:$0xff] }
0x269e   :  { %v2805_v34 = vmul.f32 %v2799_v44, %v5872_v14 }
0x269f   :  { %v2818_v46 = vrot.slane %v2539_v9, 4  ;;  %v2398_v59 = vsel %vm2388_vm11, %v2387_v61, 0.0  ;;  %v6067_v9 = vpack.c.bf16 %v3005_v50, %v3004_v43  ;;  %v3114_v61 = vrot.slane %v5799_v23, 4  ;;  %v6094_v23 = vld [vmem:[#allocation5 + $0x530] ss:$0 sm:$0xff] }
0x26a0   :  { %v2399_v62 = vadd.f32 %v2398_v59, %v2397_v49  ;;  %v2815_v51 = vsel %vm2388_vm11, %v2805_v34, 0.0 }
0x26a1   :  { %v2816_v63 = vadd.f32 %v2815_v51, %v2814_v33  ;;  %v2659_v30 = vpop.permute.xlu1 %2658 }
0x26a2   :  { %v2665_v0 = vmul.f32 %v2659_v30, %v5872_v14  ;;  %v2823_v2 = vsel %vm67_vm1, %v2399_v62, %v2818_v46 }
0x26a3   :  { %2835 = vrot.lane.b32.xlu0 %v2823_v2, %s5324_s9  ;;  %v2821_v42 = vrot.slane %v2816_v63, 4 }
0x26a4   :  { %v2675_v22 = vsel %vm2388_vm11, %v2665_v0, 0.0  ;;  %v3199_v0 = vrot.slane %v6027_v55, 4 }
0x26a5   :  { %v2676_v4 = vadd.f32 %v2675_v22, %v2674_v11 }
0x26a7   :  { %v2824_v48 = vsel %vm67_vm1, %v2676_v4, %v2821_v42 }
0x26a8   :  { %2837 = vrot.lane.b32.xlu1 %v2824_v48, %s5324_s9 }
0x26ac   :  { %3090 = vrot.lane.b32.xlu1 %v6027_v55, %s5323_s8 }
0x2715   :  { %v2836_v14 = vpop.permute.xlu0 %2835 }
0x2716   :  { %4611 = vmatprep.mubr.msk.f32.mxu1 %vm256_vm10, %v2836_v14 }
0x271a   :  { %v2838_v17 = vpop.permute.xlu1 %2837 }
0x271b   :  { %4612 = vmatmul.mubr.msk.f32.vlgmr.msra.gmra.mrb[28].mxu1 %vm256_vm10, %v2838_v17 }
0x271c   :  { %4980 = vmatpush3.bf16.msra.mxu1 %v4977_v24  ;;  %4622 = vmatprep.mubr.msk.f32.mxu1 %vm256_vm10, %v5450_v60 }
0x271d   :  { %4982 = vmatprep.subr.bf16.mxu1 %v4981_v56 }
0x271e   :  { %v3091_v54 = vpop.permute.xlu1 %3090 }
0x2720   :  { %4984 = vmatpush3.bf16.msra.mxu1 %v4981_v56 }
0x2721   :  { %5003 = vmatprep.subr.bf16.mxu1 %v5319_v1 }
0x2723   :  { %4623 = vmatmul.mubr.msk.f32.vlgmr.msra.gmra.mrb[28].mxu1 %vm256_vm10, %v5448_v58 }
0x2724   :  { %5005 = vmatpush3.bf16.msra.mxu1 %v5786_v13  ;;  %4663 = vmatprep.mubr.msk.f32.mxu1 %vm5320_vm0, %v5321_v8 }
0x2725   :  { %5006 = vmatprep.subr.bf16.mxu1 %v5319_v1 }
0x2728   :  { %5008 = vmatpush3.bf16.msra.mxu1 %v5792_v15 }
0x2729   :  { %5009 = vmatprep.subr.bf16.mxu1 %v5319_v1 }
0x27f6   :  { %v4624_v60 = vpop.f32.mrb[28].mxu1 }
0x27f7   :  { %v6044_v24 = vadd.f32 %v4624_v60, %v2997_v28  ;;  %v2984_v39 = vpop.f32.mrb[29].mxu1 }
0x27f8   :  { %v6046_v19 = vadd.f32 %v2997_v28, %v2984_v39 }
0x27fa   :  { %v3081_v58 = vadd.f32 %v5893_v38, %v6046_v19  ;;  %v2998_v38 = vld [vmem:[#allocation5 + $0x4b0] sm:$0xff] }
0x27fb   :  { %v6055_v12 = vpack.c.bf16 %v2999_v31, %v2998_v38 }
0x27fc   :  { %5194 = vtanh.f32 %v3081_v58  ;;  %v4047_v10 = vmul.f32 -1.442695, %v3081_v58 }
0x27fd   :  { %4993 = vmatpush3.bf16.msra.mxu0 %v6055_v12 }
0x27fe   :  { %5196 = vpow2.f32 %v4047_v10  ;;  %4994 = vmatprep.subr.bf16.mxu0 %v5319_v1 }
0x2801   :  { %4996 = vmatpush3.bf16.msra.mxu0 %v6058_v40 }
0x2802   :  { %4997 = vmatprep.subr.bf16.mxu0 %v5319_v1 }
0x2805   :  { %4999 = vmatpush3.bf16.msra.mxu0 %v6062_v47 }
0x2806   :  { %v5195_v52 = vpop.eup %5194  ;;  %5000 = vmatprep.subr.bf16.mxu0 %v5319_v1 }
0x2807   :  { %3095 = vrot.lane.b32.xlu0 %v5195_v52, %s5322_s0 }
0x2808   :  { %v5197_v36 = vpop.eup %5196 }
0x2809   :  { %v3085_v21 = vadd.f32 1.0, %v5197_v36  ;;  %5002 = vmatpush3.bf16.msra.mxu0 %v6067_v9 }
0x280a   :  { %5021 = vmatprep.subr.bf16.mxu0 %v5319_v1 }
0x280b   :  { %5198 = vrcp.f32 %v3085_v21 }
0x2815   :  { %v5199_v20 = vpop.eup %5198 }
0x2816   :  { %v3093_v27 = vmul.f32 %v5199_v20, %v3091_v54 }
0x2879   :  { %v3096_v25 = vpop.permute.xlu0 %3095 }
0x287a   :  { %v3098_v26 = vmul.f32 %v5199_v20, %v3096_v25 }
0x287c   :  { %3100 = vrot.lane.b32.xlu0 %v3098_v26, %s5323_s8 }
0x28ee   :  { %v3101_v6 = vpop.permute.xlu0 %3100 }
0x28ef   :  { %v6052_v29 = vadd.f32 %v3101_v6, %v3093_v27 }
0x28f1   :  { %5200 = vtanh.f32 %v6052_v29  ;;  %v3304_v28 = vrot.slane %v6052_v29, 4 }
0x28fb   :  { %v5201_v45 = vpop.eup %5200 }
0x28fc   :  { %3106 = vrot.lane.b32.xlu1 %v5201_v45, %s5322_s0 }
0x2900   :  { %3115 = vrot.lane.b32.xlu1 %v3114_v61, %s5323_s8 }
0x296e   :  { %v3107_v44 = vpop.permute.xlu1 %3106 }
0x296f   :  { %v3109_v35 = vmul.f32 %v5199_v20, %v3107_v44 }
0x2971   :  { %3111 = vrot.lane.b32.xlu0 %v3109_v35, %s5323_s8 }
0x2972   :  { %v3116_v49 = vpop.permute.xlu1 %3115 }
0x29e3   :  { %v3112_v34 = vpop.permute.xlu0 %3111 }
0x29e4   :  { %v3118_v53 = vsel %vm256_vm10, %v3112_v34, %v3116_v49  ;;  %4664 = vmatmul.mubr.msk.f32.vlgmr.msra.gmra.mrb[30].mxu1 %vm256_vm10, %v3112_v34 }
0x29e5   :  { %4653 = vmatmul.mubr.msk.f32.vlgmr.msra.gmra.mrb[30].mxu0 %vm360_vm9, %v3118_v53  ;;  %5011 = vmatpush3.bf16.msra.mxu1 %v6055_v12 }
0x29e6   :  { %5012 = vmatprep.subr.bf16.mxu1 %v5319_v1  ;;  %5023 = vmatpush3.bf16.msra.mxu0 %v5786_v13 }
0x29e7   :  { %5024 = vmatprep.subr.bf16.mxu0 %v5319_v1  ;;  %4682 = vmatprep.mubr.msk.f32.mxu1 %vm5320_vm0, %v5321_v8 }
0x29e8   :  { %4693 = vmatprep.mubr.msk.f32.mxu0 %vm5320_vm0, %v5321_v8 }
0x29e9   :  { %5014 = vmatpush3.bf16.msra.mxu1 %v6058_v40 }
0x29ea   :  { %5015 = vmatprep.subr.bf16.mxu1 %v5319_v1  ;;  %5026 = vmatpush3.bf16.msra.mxu0 %v5792_v15 }
0x29eb   :  { %5027 = vmatprep.subr.bf16.mxu0 %v5319_v1 }
0x29ed   :  { %5017 = vmatpush3.bf16.msra.mxu1 %v6062_v47 }
0x29ee   :  { %5018 = vmatprep.subr.bf16.mxu1 %v5319_v1 }
0x29f1   :  { %5020 = vmatpush3.bf16.msra.mxu1 %v6067_v9 }
0x29f2   :  { %5039 = vmatprep.subr.bf16.mxu1 %v5319_v1 }
0x2ab7   :  { %v3288_v33 = vpop.f32.mrb[30].mxu1 }
0x2ab8   :  { %v3293_v46 = vrot.slane %v3288_v33, 4  ;;  %v3188_v59 = vpop.f32.mrb[30].mxu0  ;;  %v4665_v3 = vpop.f32.mrb[31].mxu1 }
0x2ab9   :  { %v3189_v62 = vadd.f32 %v3188_v59, %v6094_v23  ;;  %v4654_v51 = vpop.f32.mrb[31].mxu0 }
0x2aba   :  { %v3295_v57 = vadd.f32 %v3293_v46, %v6046_v19 }
0x2abb   :  { %5202 = vtanh.f32 %v3189_v62  ;;  %v4049_v2 = vmul.f32 -1.442695, %v3189_v62 }
0x2abc   :  { %5204 = vtanh.f32 %v3295_v57  ;;  %v4051_v11 = vmul.f32 -1.442695, %v3295_v57 }
0x2abd   :  { %5206 = vpow2.f32 %v4049_v2 }
0x2abe   :  { %5208 = vpow2.f32 %v4051_v11 }
0x2ac5   :  { %v5203_v63 = vpop.eup %5202 }
0x2ac6   :  { %v5205_v30 = vpop.eup %5204  ;;  %3205 = vrot.lane.b32.xlu0 %v5203_v63, %s5322_s0 }
0x2ac7   :  { %3308 = vrot.lane.b32.xlu1 %v5205_v30, %s5322_s0  ;;  %v5207_v22 = vpop.eup %5206 }
0x2ac8   :  { %v5209_v42 = vpop.eup %5208  ;;  %v3195_v4 = vadd.f32 1.0, %v5207_v22 }
0x2ac9   :  { %v3299_v5 = vadd.f32 1.0, %v5209_v42 }
0x2aca   :  { %3200 = vrot.lane.b32.xlu0 %v3199_v0, %s5323_s8  ;;  %5210 = vrcp.f32 %v3195_v4 }
0x2acb   :  { %5212 = vrcp.f32 %v3299_v5 }
0x2ad4   :  { %v5211_v48 = vpop.eup %5210 }
0x2ad5   :  { %v5213_v7 = vpop.eup %5212 }
0x2ad6   :  { %v3306_v19 = vmul.f32 %v5213_v7, %v3304_v28 }
0x2b38   :  { %v3206_v14 = vpop.permute.xlu0 %3205 }
0x2b39   :  { %v3208_v18 = vmul.f32 %v5211_v48, %v3206_v14  ;;  %v3309_v56 = vpop.permute.xlu1 %3308 }
0x2b3a   :  { %v3311_v17 = vmul.f32 %v5213_v7, %v3309_v56 }
0x2b3b   :  { %3210 = vrot.lane.b32.xlu1 %v3208_v18, %s5323_s8 }
0x2b3c   :  { %3313 = vrot.lane.b32.xlu0 %v3311_v17, %s5323_s8  ;;  %v3201_v55 = vpop.permute.xlu0 %3200 }
0x2b3d   :  { %v3203_v60 = vmul.f32 %v5211_v48, %v3201_v55 }
0x2bad   :  { %v3211_v39 = vpop.permute.xlu1 %3210 }
0x2bae   :  { %v6105_v58 = vadd.f32 %v3211_v39, %v3203_v60  ;;  %v3314_v52 = vpop.permute.xlu0 %3313 }
0x2baf   :  { %v6107_v10 = vadd.f32 %v3314_v52, %v3306_v19 }
0x2bb0   :  { %5214 = vtanh.f32 %v6105_v58 }
0x2bb1   :  { %5216 = vtanh.f32 %v6107_v10  ;;  %v3516_v63 = vrot.slane %v6107_v10, 4 }
0x2bba   :  { %v5215_v36 = vpop.eup %5214 }
0x2bbb   :  { %v5217_v21 = vpop.eup %5216  ;;  %3216 = vrot.lane.b32.xlu1 %v5215_v36, %s5322_s0 }
0x2bbc   :  { %3319 = vrot.lane.b32.xlu0 %v5217_v21, %s5322_s0 }
0x2c2d   :  { %v3217_v20 = vpop.permute.xlu1 %3216 }
0x2c2e   :  { %v6113_v25 = vmul.f32 %v5211_v48, %v3217_v20  ;;  %v3320_v26 = vpop.permute.xlu0 %3319 }
0x2c2f   :  { %v3322_v54 = vmul.f32 %v5213_v7, %v3320_v26 }
0x2c30   :  { %v3328_v27 = vrot.slane %v6113_v25, 4 }
0x2c31   :  { %3324 = vrot.lane.b32.xlu1 %v3322_v54, %s5323_s8  ;;  %v3432_v6 = vrot.slane %v3322_v54, 4 }
0x2c32   :  { %3329 = vrot.lane.b32.xlu0 %v3328_v27, %s5322_s0 }
0x2c35   :  { %3433 = vrot.lane.b32.xlu1 %v3432_v6, %s5323_s8 }
0x2ca3   :  { %v3325_v29 = vpop.permute.xlu1 %3324 }
0x2ca4   :  { %v3330_v38 = vpop.permute.xlu0 %3329 }
0x2ca5   :  { %v3332_v31 = vsel %vm256_vm10, %v3325_v29, %v3330_v38 }
0x2ca6   :  { %v3334_v32 = vrot.slane %v3332_v31, 4 }
0x2ca7   :  { %v3434_v16 = vpop.permute.xlu1 %3433 }
0x2ca8   :  { %4683 = vmatmul.mubr.msk.f32.vlgmr.msra.gmra.mrb[32].mxu1 %vm360_vm9, %v3334_v32  ;;  %4694 = vmatmul.mubr.msk.f32.vlgmr.msra.gmra.mrb[32].mxu0 %vm256_vm10, %v3434_v16 }
0x2ca9   :  { %5029 = vmatpush3.bf16.msra.mxu0 %v6055_v12  ;;  %5041 = vmatpush3.bf16.msra.mxu1 %v5786_v13 }
0x2caa   :  { %5030 = vmatprep.subr.bf16.mxu0 %v5319_v1  ;;  %5042 = vmatprep.subr.bf16.mxu1 %v5319_v1 }
0x2cab   :  { %4723 = vmatprep.mubr.msk.f32.mxu1 %vm5320_vm0, %v5321_v8  ;;  %4712 = vmatprep.mubr.msk.f32.mxu0 %vm5320_vm0, %v5321_v8 }
0x2cad   :  { %5032 = vmatpush3.bf16.msra.mxu0 %v6058_v40  ;;  %5044 = vmatpush3.bf16.msra.mxu1 %v5792_v15 }
0x2cae   :  { %5033 = vmatprep.subr.bf16.mxu0 %v5319_v1  ;;  %5045 = vmatprep.subr.bf16.mxu1 %v5319_v1 }
0x2cb1   :  { %5035 = vmatpush3.bf16.msra.mxu0 %v6062_v47 }
0x2cb2   :  { %5036 = vmatprep.subr.bf16.mxu0 %v5319_v1 }
0x2cb5   :  { %5038 = vmatpush3.bf16.msra.mxu0 %v6067_v9 }
0x2d7b   :  { %v3403_v13 = vpop.f32.mrb[32].mxu1  ;;  %v3503_v41 = vpop.f32.mrb[32].mxu0 }
0x2d7c   :  { %v3404_v37 = vadd.f32 %v3403_v13, %v6094_v23  ;;  %v3507_v43 = vadd.f32 %v3503_v41, %v6044_v24  ;;  %v4684_v50 = vpop.f32.mrb[33].mxu1  ;;  %v4695_v45 = vpop.f32.mrb[33].mxu0 }
0x2d7e   :  { %5218 = vtanh.f32 %v3404_v37  ;;  %v4053_v44 = vmul.f32 -1.442695, %v3404_v37  ;;  %v4055_v35 = vmul.f32 -1.442695, %v3507_v43 }
0x2d7f   :  { %5220 = vtanh.f32 %v3507_v43 }
0x2d80   :  { %5222 = vpow2.f32 %v4053_v44 }
0x2d81   :  { %5224 = vpow2.f32 %v4055_v35 }
0x2d88   :  { %v5219_v15 = vpop.eup %5218 }
0x2d89   :  { %v5221_v61 = vpop.eup %5220  ;;  %3416 = vrot.lane.b32.xlu0 %v5219_v15, %s5322_s0 }
0x2d8a   :  { %3520 = vrot.lane.b32.xlu1 %v5221_v61, %s5322_s0  ;;  %v5223_v49 = vpop.eup %5222 }
0x2d8b   :  { %v5225_v34 = vpop.eup %5224  ;;  %v3410_v53 = vadd.f32 1.0, %v5223_v49 }
0x2d8c   :  { %v3511_v33 = vadd.f32 1.0, %v5225_v34 }
0x2d8d   :  { %5226 = vrcp.f32 %v3410_v53 }
0x2d8e   :  { %5228 = vrcp.f32 %v3511_v33 }
0x2d97   :  { %v5227_v46 = vpop.eup %5226 }
0x2d98   :  { %v5229_v3 = vpop.eup %5228  ;;  %v3414_v30 = vmul.f32 %v5227_v46, %v6105_v58 }
0x2d99   :  { %v3518_v2 = vmul.f32 %v5229_v3, %v3516_v63 }
0x2dfb   :  { %v3417_v59 = vpop.permute.xlu0 %3416 }
0x2dfc   :  { %v3419_v62 = vmul.f32 %v5227_v46, %v3417_v59  ;;  %v3521_v51 = vpop.permute.xlu1 %3520 }
0x2dfd   :  { %v3523_v57 = vmul.f32 %v5229_v3, %v3521_v51 }
0x2dfe   :  { %3421 = vrot.lane.b32.xlu0 %v3419_v62, %s5323_s8 }
0x2dff   :  { %3525 = vrot.lane.b32.xlu1 %v3523_v57, %s5323_s8 }
0x2e70   :  { %v3422_v0 = vpop.permute.xlu0 %3421 }
0x2e71   :  { %v3424_v11 = vadd.f32 %v3422_v0, %v3414_v30  ;;  %v3526_v22 = vpop.permute.xlu1 %3525 }
0x2e72   :  { %v3528_v42 = vadd.f32 %v3526_v22, %v3518_v2 }
0x2e73   :  { %5230 = vtanh.f32 %v3424_v11 }
0x2e74   :  { %5232 = vtanh.f32 %v3528_v42  ;;  %v3725_v29 = vrot.slane %v3528_v42, 4 }
0x2e7d   :  { %v5231_v4 = vpop.eup %5230 }
0x2e7e   :  { %v5233_v5 = vpop.eup %5232  ;;  %3427 = vrot.lane.b32.xlu0 %v5231_v4, %s5322_s0 }
0x2e7f   :  { %3531 = vrot.lane.b32.xlu1 %v5233_v5, %s5322_s0  ;;  %v3859_v5 = vld [vmem:[#allocation5 + $0x540] sm:$0xff] }
0x2ef0   :  { %v3428_v48 = vpop.permute.xlu0 %3427 }
0x2ef1   :  { %v6147_v14 = vmul.f32 %v5227_v46, %v3428_v48  ;;  %v3532_v7 = vpop.permute.xlu1 %3531  ;;  %v3860_v48 = vld [vmem:[#allocation5 + $0x550] sm:$0xff] }
0x2ef2   :  { %v3534_v18 = vmul.f32 %v5229_v3, %v3532_v7  ;;  %v3861_v7 = vld [vmem:[#allocation5 + $0x560] sm:$0xff] }
0x2ef3   :  { %3540 = vrot.lane.b32.xlu1 %v6147_v14, %s5322_s0  ;;  %v3852_v2 = vrot.slane %v6147_v14, 4 }
0x2ef4   :  { %3536 = vrot.lane.b32.xlu0 %v3534_v18, %s5323_s8  ;;  %v5057_v18 = vpack.c.bf16 %v3860_v48, %v3859_v5 }
0x2ef6   :  { %5058 = vmatprep.subr.bf16.mxu0 %v5057_v18 }
0x2f65   :  { %v3541_v56 = vpop.permute.xlu1 %3540 }
0x2f66   :  { %v3537_v17 = vpop.permute.xlu0 %3536 }
0x2f67   :  { %v3543_v55 = vsel %vm256_vm10, %v3537_v17, %v3541_v56  ;;  %4724 = vmatmul.mubr.msk.f32.vlgmr.msra.gmra.mrb[34].mxu1 %vm256_vm10, %v3537_v17  ;;  %v3862_v56 = vld [vmem:[#allocation5 + $0x570] sm:$0xff] }
0x2f68   :  { %4713 = vmatmul.mubr.msk.f32.vlgmr.msra.gmra.mrb[34].mxu0 %vm360_vm9, %v3543_v55  ;;  %5047 = vmatpush3.bf16.msra.mxu1 %v6055_v12  ;;  %v5061_v14 = vpack.c.bf16 %v3862_v56, %v3861_v7 }
0x2f69   :  { %5048 = vmatprep.subr.bf16.mxu1 %v5319_v1  ;;  %4742 = vmatprep.mubr.msk.f32.mxu1 %vm5320_vm0, %v5321_v8 }
0x2f6a   :  { %5060 = vmatpush3.bf16.msra.mxu0 %v5057_v18 }
0x2f6b   :  { %5062 = vmatprep.subr.bf16.mxu0 %v5061_v14 }
0x2f6c   :  { %5050 = vmatpush3.bf16.msra.mxu1 %v6058_v40 }
0x2f6d   :  { %5051 = vmatprep.subr.bf16.mxu1 %v5319_v1 }
0x2f6e   :  { %5064 = vmatpush3.bf16.msra.mxu0 %v5061_v14 }
0x2f70   :  { %5053 = vmatpush3.bf16.msra.mxu1 %v6062_v47 }
0x2f71   :  { %5054 = vmatprep.subr.bf16.mxu1 %v5319_v1 }
0x2f74   :  { %5056 = vmatpush3.bf16.msra.mxu1 %v6067_v9 }
0x303a   :  { %v3709_v28 = vpop.f32.mrb[34].mxu1 }
0x303b   :  { %v3714_v60 = vrot.slane %v3709_v28, 4  ;;  %v3613_v39 = vpop.f32.mrb[34].mxu0  ;;  %v4725_v19 = vpop.f32.mrb[35].mxu1 }
0x303c   :  { %v3614_v12 = vadd.f32 %v3613_v39, %v6094_v23  ;;  %v4714_v58 = vpop.f32.mrb[35].mxu0  ;;  %v3863_v19 = vld [vmem:[#allocation5 + $0x580] ss:$0 sm:$0xff] }
0x303d   :  { %v3716_v52 = vadd.f32 %v3714_v60, %v6044_v24 }
0x303e   :  { %5234 = vtanh.f32 %v3614_v12  ;;  %v4057_v1 = vmul.f32 -1.442695, %v3614_v12 }
0x303f   :  { %5236 = vtanh.f32 %v3716_v52  ;;  %v4059_v47 = vmul.f32 -1.442695, %v3716_v52 }
0x3040   :  { %5238 = vpow2.f32 %v4057_v1 }
0x3041   :  { %5240 = vpow2.f32 %v4059_v47 }
0x3048   :  { %v5235_v8 = vpop.eup %5234 }
0x3049   :  { %v5237_v40 = vpop.eup %5236  ;;  %3626 = vrot.lane.b32.xlu0 %v5235_v8, %s5322_s0 }
0x304a   :  { %3729 = vrot.lane.b32.xlu1 %v5237_v40, %s5322_s0  ;;  %v5239_v9 = vpop.eup %5238 }
0x304b   :  { %v5241_v10 = vpop.eup %5240  ;;  %v3620_v36 = vadd.f32 1.0, %v5239_v9 }
0x304c   :  { %v3720_v21 = vadd.f32 1.0, %v5241_v10 }
0x304d   :  { %5242 = vrcp.f32 %v3620_v36 }
0x304e   :  { %5244 = vrcp.f32 %v3720_v21 }
0x3057   :  { %v5243_v20 = vpop.eup %5242 }
0x3058   :  { %v5245_v26 = vpop.eup %5244  ;;  %v3624_v38 = vmul.f32 %v5243_v20, %v3424_v11 }
0x3059   :  { %v3727_v32 = vmul.f32 %v5245_v26, %v3725_v29 }
0x30bb   :  { %v3627_v24 = vpop.permute.xlu0 %3626 }
0x30bc   :  { %v3629_v54 = vmul.f32 %v5243_v20, %v3627_v24  ;;  %v3730_v27 = vpop.permute.xlu1 %3729 }
0x30bd   :  { %v3732_v6 = vmul.f32 %v5245_v26, %v3730_v27 }
0x30be   :  { %3631 = vrot.lane.b32.xlu0 %v3629_v54, %s5323_s8 }
0x30bf   :  { %3734 = vrot.lane.b32.xlu1 %v3732_v6, %s5323_s8 }
0x3130   :  { %v3632_v31 = vpop.permute.xlu0 %3631 }
0x3131   :  { %v3634_v16 = vadd.f32 %v3632_v31, %v3624_v38  ;;  %v3735_v13 = vpop.permute.xlu1 %3734 }
0x3132   :  { %v3737_v41 = vadd.f32 %v3735_v13, %v3727_v32 }
0x3133   :  { %5246 = vtanh.f32 %v3634_v16 }
0x3134   :  { %5248 = vtanh.f32 %v3737_v41 }
0x313d   :  { %v5247_v37 = vpop.eup %5246 }
0x313e   :  { %v5249_v43 = vpop.eup %5248  ;;  %3637 = vrot.lane.b32.xlu0 %v5247_v37, %s5322_s0 }
0x313f   :  { %3740 = vrot.lane.b32.xlu1 %v5249_v43, %s5322_s0 }
0x31b0   :  { %v3638_v50 = vpop.permute.xlu0 %3637 }
0x31b1   :  { %v3640_v45 = vmul.f32 %v5243_v20, %v3638_v50  ;;  %v3741_v15 = vpop.permute.xlu1 %3740 }
0x31b2   :  { %v3743_v61 = vmul.f32 %v5245_v26, %v3741_v15 }
0x31b3   :  { %v3749_v44 = vrot.slane %v3640_v45, 4 }
0x31b4   :  { %3745 = vrot.lane.b32.xlu0 %v3743_v61, %s5323_s8 }
0x31b5   :  { %3750 = vrot.lane.b32.xlu1 %v3749_v44, %s5322_s0 }
0x3226   :  { %v3746_v35 = vpop.permute.xlu0 %3745 }
0x3227   :  { %v3751_v49 = vpop.permute.xlu1 %3750 }
0x3228   :  { %v3753_v34 = vsel %vm256_vm10, %v3746_v35, %v3751_v49 }
0x3229   :  { %v3755_v53 = vrot.slane %v3753_v34, 4 }
0x322b   :  { %4743 = vmatmul.mubr.msk.f32.vlgmr.msra.gmra.mrb[36].mxu1 %vm360_vm9, %v3755_v53 }
0x32fe   :  { %v3824_v33 = vpop.f32.mrb[36].mxu1 }
0x32ff   :  { %v3825_v46 = vadd.f32 %v3824_v33, %v6094_v23  ;;  %v4744_v59 = vpop.f32.mrb[37].mxu1  ;;  %v3857_v23 = vsel %vm67_vm1, %v6113_v25, %v3852_v2 }
0x3301   :  { %5250 = vtanh.f32 %v3825_v46  ;;  %v4061_v62 = vmul.f32 -1.442695, %v3825_v46 }
0x3303   :  { %5252 = vpow2.f32 %v4061_v62 }
0x330b   :  { %v5251_v3 = vpop.eup %5250 }
0x330c   :  { %3837 = vrot.lane.b32.xlu0 %v5251_v3, %s5322_s0 }
0x330d   :  { %v5253_v51 = vpop.eup %5252 }
0x330e   :  { %v3831_v57 = vadd.f32 1.0, %v5253_v51 }
0x3310   :  { %5254 = vrcp.f32 %v3831_v57 }
0x331a   :  { %v5255_v63 = vpop.eup %5254 }
0x331b   :  { %v3835_v11 = vmul.f32 %v5255_v63, %v3634_v16 }
0x337e   :  { %v3838_v30 = vpop.permute.xlu0 %3837 }
0x337f   :  { %v3840_v0 = vmul.f32 %v5255_v63, %v3838_v30 }
0x3381   :  { %3842 = vrot.lane.b32.xlu1 %v3840_v0, %s5323_s8 }
0x3385   :  { %3866 = vrot.lane.b32.xlu1 %v3857_v23, %s5323_s8 }
0x33f3   :  { %v3843_v22 = vpop.permute.xlu1 %3842 }
0x33f4   :  { %v3845_v42 = vadd.f32 %v3843_v22, %v3835_v11 }
0x33f6   :  { %5256 = vtanh.f32 %v3845_v42 }
0x33f7   :  { %v3867_v4 = vpop.permute.xlu1 %3866 }
0x33f8   :  { %4753 = vmatprep.mubr.msk.f32.mxu0 %vm256_vm10, %v3867_v4 }
0x3400   :  { %v5257_v17 = vpop.eup %5256 }
0x3401   :  { %3848 = vrot.lane.b32.xlu0 %v5257_v17, %s5322_s0 }
0x3473   :  { %v3849_v25 = vpop.permute.xlu0 %3848 }
0x3474   :  { %v3851_v55 = vmul.f32 %v5255_v63, %v3849_v25 }
0x3476   :  { %v3855_v28 = vrot.slane %v3851_v55, 4 }
0x3478   :  { %v3858_v60 = vsel %vm67_vm1, %v3640_v45, %v3855_v28 }
0x3479   :  { %3868 = vrot.lane.b32.xlu0 %v3858_v60, %s5323_s8 }
0x34eb   :  { %v3869_v39 = vpop.permute.xlu0 %3868 }
0x34ec   :  { %4754 = vmatmul.mubr.msk.f32.vlgmr.msra.gmra.mrb[36].mxu0 %vm256_vm10, %v3869_v39 }
0x35bf   :  { %v4755_v12 = vpop.f32.mrb[36].mxu0 }
0x35c0   :  { %v3946_v58 = vadd.f32 %v4755_v12, %v3863_v19  ;;  %v3940_v52 = vpop.f32.mrb[37].mxu0 }
0x35c1   :  { %v3941_v8 = vadd.f32 %v3940_v52, %v3863_v19 }
0x35c2   :  { %v3952_v40 = vsel %vm165_vm4, %v3946_v58, -inf }
0x35c3   :  { %3953 = vmax.xlane.f32.xlu0 %v3952_v40  ;;  %v3949_v1 = vsel %vm165_vm4, %v3941_v8, -inf }
0x35c4   :  { %3950 = vmax.xlane.f32.xlu1 %v3949_v1 }
0x3650   :  { %v3954_v47 = vpop.xlane.xlu0 %3953 }
0x3651   :  { %v3956_v9 = vsub.f32 %v3946_v58, %v3954_v47  ;;  %v3951_v10 = vpop.xlane.xlu1 %3950 }
0x3652   :  { %v3955_v36 = vsub.f32 %v3941_v8, %v3951_v10 }
0x3653   :  { %v3959_v21 = vmul.f32 1.442695, %v3956_v9 }
0x3654   :  { %v3957_v20 = vmul.f32 1.442695, %v3955_v36 }
0x3655   :  { %5258 = vpow2.f32 %v3959_v21 }
0x3656   :  { %5260 = vpow2.f32 %v3957_v20 }
0x365f   :  { %v5259_v24 = vpop.eup %5258 }
0x3660   :  { %v5261_v26 = vpop.eup %5260  ;;  %v3964_v54 = vsel %vm165_vm4, %v5259_v24, 0.0 }
0x3661   :  { %3965 = vadd.xlane.f32.xlu1 %v3964_v54  ;;  %v3961_v27 = vsel %vm165_vm4, %v5261_v26, 0.0 }
0x3662   :  { %3962 = vadd.xlane.f32.xlu0 %v3961_v27 }
0x36ee   :  { %v3966_v6 = vpop.xlane.xlu1 %3965 }
0x36ef   :  { %5262 = vlog2.f32 %v3966_v6  ;;  %v3963_v29 = vpop.xlane.xlu0 %3962 }
0x36f0   :  { %5264 = vlog2.f32 %v3963_v29 }
0x36f9   :  { %v5263_v38 = vpop.eup %5262 }
0x36fa   :  { %v5265_v31 = vpop.eup %5264  ;;  %v3970_v32 = vmul.f32 0.6931472, %v5263_v38 }
0x36fb   :  { %v3968_v16 = vmul.f32 0.6931472, %v5265_v31 }
0x36fc   :  { %v3972_v13 = vadd.f32 %v3970_v32, %v3954_v47 }
0x36fd   :  { %v3971_v41 = vadd.f32 %v3968_v16, %v3951_v10 }
0x36fe   :  { %v3974_v37 = vsub.f32 %v3946_v58, %v3972_v13 }
0x36ff   :  { %v3973_v43 = vsub.f32 %v3941_v8, %v3971_v41 }
0x3700   :  { %3976 = vst.msk [vmem:[#allocation8 + $0x8] sm:$0xff] %vm165_vm4, %v3974_v37 }
0x3701   :  { %3975 = vst.msk [vmem:[#allocation8] sm:$0xff] %vm165_vm4, %v3973_v43 }
0x3702   :  { %5300 = shalt.err (!%p5297_p12)
}
0x3703   :  { %s5301_s16 = scalar_lea.hbm %s6209_s3, 256 }
0x3704   :  { %p5302_p13 = scmp.ne.s32.totalorder %s6209_s3, %s5301_s16  ;;  %p5305_p0 = scmp.lt.u32.totalorder %s5301_s16, %s6209_s3 }
0x3706   :  { %p5307_p1 = pnand %p5305_p0, %p5302_p13 }
0x3708   :  { %5310 = shalt.err (!%p5307_p1)
}
0x3709   :  { %s5326_s21 = smov 128   ;;  %s5327_s22 = smov 8  }
0x370a   :  { %3988 = dma.vmem_to_hbm [thread:$0]  %s3983_s12, 256, %s6209_s3, [#allocation7], %s5326_s21, %s5326_s21, %s5327_s22  }
0x370b   :  { %5313 = dma.done.wait [#allocation7], 256  }
0x370c   :  { %5314 = vsyncadd [#allocation7], 4294967040 }
0x370d   :  { %3992 = vsyncpa [#allocation6], 1 }
0x370e   :  { %3993 = vsyncpa [#allocation7], 1 }

</bundles_post_ra>
